<compile_context>
chip_gen: v5e
topology: v5e:2x2
jax: 0.10.0
libtpu: 0.0.40
codegen_flags: <defaults>
</compile_context>

<pallas_src>
import math

import jax
import jax.numpy as jnp
import numpy as np
from jax.experimental import pallas as pl
from jax.experimental.pallas import tpu as pltpu


def _round_up(x: int, m: int) -> int:
    return ((x + m - 1) // m) * m


def _attention_pool_kernel(x_ref, pos0_ref, posr_ref, mean_ref, wq_ref, bq_ref,
                           wkv_ref, bkv_ref, seg_eh_ref, seg_he_ref,
                           wc_ref, bc_ref, o_ref):
    """One grid step = B_TILE batch items of CLIP AttentionPool2d."""
    f32 = jnp.float32
    bf16 = jnp.bfloat16
    B, HW, Ep = x_ref.shape

    x = x_ref[...]                                               # (B, HW, Ep) bf16
    x_flat = x.reshape(B * HW, Ep)

    # Pooled (mean) token: one bf16 MXU matmul against a per-tile ones matrix
    # (no f32 copy of the x tile), then pos[0].
    tok0 = (jnp.dot(mean_ref[...], x_flat, preferred_element_type=f32)
            * (1.0 / HW)) + pos0_ref[...]                        # (B, Ep) f32
    tok0_b = tok0.astype(bf16)

    # Pooled-token projections: standalone Wq*scale; k0/v0 reuse the single
    # shared [Wk|Wv] weight (no duplicated K/V bytes in VMEM).
    q = jnp.dot(tok0_b, wq_ref[...], preferred_element_type=f32) + bq_ref[...]      # (B, Ep)
    kv0 = jnp.dot(tok0_b, wkv_ref[...], preferred_element_type=f32) + bkv_ref[...]  # (B, 2Ep)
    k0 = kv0[:, :Ep]
    v0 = kv0[:, Ep:]

    # Spatial tokens: add positional embedding, project k/v with one matmul.
    toks = (x + posr_ref[...][None]).reshape(B * HW, Ep)                            # bf16
    kv = jnp.dot(toks, wkv_ref[...], preferred_element_type=f32) + bkv_ref[...]     # (B*HW, 2Ep)
    kr = kv[:, :Ep].reshape(B, HW, Ep)
    vr = kv[:, Ep:].reshape(B, HW, Ep)

    # Compact per-head scores: bf16 products x bf16 one-hot (Ep, H) matmul sums
    # each head's lanes; the 1/sqrt(head_dim) scale is already folded into q.
    seg_eh = seg_eh_ref[...]                                     # (Ep, H) bf16
    s0 = jnp.dot((q * k0).astype(bf16), seg_eh,
                 preferred_element_type=f32)                     # (B, H)
    sr = jnp.dot((kr * q[:, None, :]).astype(bf16).reshape(B * HW, Ep), seg_eh,
                 preferred_element_type=f32).reshape(B, HW, -1)  # (B, HW, H)

    # Stable softmax over the S = HW + 1 keys in compact per-head form:
    # EUP work is H lanes wide, not head_dim-replicated E lanes.
    m = jnp.maximum(jnp.max(sr, axis=1), s0)                     # (B, H)
    p0 = jnp.exp(s0 - m)                                         # (B, H)
    pr = jnp.exp(sr - m[:, None, :])                             # (B, HW, H)
    inv = pl.reciprocal(p0 + jnp.sum(pr, axis=1), approx=True)   # (B, H)

    # Broadcast the normalized probabilities back to E lanes (bf16 MXU matmul)
    # and take the weighted value sum.
    seg_he = seg_he_ref[...]                                     # (H, Ep) bf16
    p0e = jnp.dot((p0 * inv).astype(bf16), seg_he,
                  preferred_element_type=f32)                    # (B, Ep)
    pre = jnp.dot((pr * inv[:, None, :]).astype(bf16).reshape(B * HW, -1), seg_he,
                  preferred_element_type=f32).reshape(B, HW, Ep)  # (B, HW, Ep)
    attn = p0e * v0 + jnp.sum(pre * vr, axis=1)                  # (B, Ep)

    out = jnp.dot(attn.astype(bf16), wc_ref[...],
                  preferred_element_type=f32) + bc_ref[...]      # (B, Op)
    o_ref[...] = out.astype(o_ref.dtype)


def attention_pool2d(x_nchw, pos, wq, bq, wk, bk, wv, bv, wc, bc, *,
                     num_heads, batch_tile=32):
    """CLIP AttentionPool2d forward.  x_nchw: (N, C, H, W) -> (N, output_dim)."""
    N, C, Hs, Ws = x_nchw.shape
    E = C
    HW = Hs * Ws
    O = wc.shape[0]
    hd = E // num_heads
    scale = 1.0 / math.sqrt(hd)

    f32, bf16 = jnp.float32, jnp.bfloat16

    # Lane-dense padding: E and O to multiples of 128 so every store is an
    # unmasked vst and the fused k/v split slice is 128-aligned.
    Ep = _round_up(E, 128)
    Op = _round_up(O, 128)

    # Batch tile: target >=32 rows (fills the wide v6e/v7x MXU via the
    # B_TILE*HW spatial matmul, amortizes grid-step overhead) but clamp so
    # tiny batches are not padded excessively.  At real CLIP sizes keep
    # batch_tile <= ~64 on v7x (64 MiB VMEM); v5e/v6e can go higher.
    B_TILE = max(8, min(batch_tile, _round_up(N, 8)))
    N_pad = _round_up(N, B_TILE)

    # NCHW -> (N, HW, E) bf16 tokens, zero-padded batch rows / E lanes.
    x_tok = jnp.transpose(x_nchw.reshape(N, C, HW), (0, 2, 1)).astype(bf16)
    x_tok = jnp.pad(x_tok, ((0, N_pad - N), (0, 0), (0, Ep - E)))

    def pad2(a, rows, cols):
        return jnp.pad(a, ((0, rows - a.shape[0]), (0, cols - a.shape[1])))

    # Pre-transposed weights (kernel never transposes); q scale folded; K/V
    # fused once into a single (Ep, 2Ep) weight (no duplication of Wk/Wv).
    wqT = pad2(wq.T * scale, Ep, Ep).astype(bf16)                    # (Ep, Ep)
    bqp = pad2((bq * scale).reshape(1, E), 1, Ep).astype(f32)        # (1, Ep)
    wkvT = jnp.concatenate([pad2(wk.T, Ep, Ep),
                            pad2(wv.T, Ep, Ep)], axis=1).astype(bf16)   # (Ep, 2Ep)
    bkvp = jnp.concatenate([pad2(bk.reshape(1, E), 1, Ep),
                            pad2(bv.reshape(1, E), 1, Ep)], axis=1).astype(f32)
    wcT = pad2(wc.T, Ep, Op).astype(bf16)                            # (Ep, Op)
    bcp = pad2(bc.reshape(1, O), 1, Op).astype(f32)                  # (1, Op)
    pos0 = pad2(pos[:1], 1, Ep).astype(f32)                          # mean-token pos emb
    posr = pad2(pos[1:], HW, Ep).astype(bf16)                        # spatial pos emb

    # One-hot head-segment matrices (exact in bf16), built once here and
    # passed as constants instead of being re-materialized each grid step.
    lane = np.arange(Ep)
    head = np.arange(num_heads)
    seg_np = ((lane[:, None] // hd) == head[None, :]) & (lane[:, None] < E)
    seg_eh = jnp.asarray(seg_np, dtype=bf16)          # (Ep, H): sum a head's lanes
    seg_he = jnp.asarray(seg_np.T, dtype=bf16)        # (H, Ep): broadcast back

    # Ones matrix computing the per-batch spatial mean as a single MXU matmul.
    rows = np.arange(B_TILE * HW)
    mean_np = (rows[None, :] // HW) == np.arange(B_TILE)[:, None]
    mean_mat = jnp.asarray(mean_np, dtype=bf16)       # (B_TILE, B_TILE*HW)

    const_arrays = (pos0, posr, mean_mat, wqT, bqp, wkvT, bkvp,
                    seg_eh, seg_he, wcT, bcp)

    # VMEM plan: x/out tiles double-buffered, constants counted x2 to stay
    # safe even on the fallback path.  Only override the compiler's default
    # scoped-VMEM limit when the footprint requires it; never request v7x's
    # full 64 MiB physical VMEM.
    const_bytes = sum(int(np.prod(a.shape)) * a.dtype.itemsize for a in const_arrays)
    tile_bytes = B_TILE * HW * Ep * 2 + B_TILE * Op * 4
    footprint = 2 * tile_bytes + 2 * const_bytes
    vmem_limit = None
    if int(footprint * 1.3) > 16 * 1024 * 1024:
        vmem_limit = min(int(footprint * 1.3), 48 * 1024 * 1024)

    cp_kwargs = dict(dimension_semantics=("parallel",))   # batch items independent
    if vmem_limit is not None:
        cp_kwargs["vmem_limit_bytes"] = vmem_limit

    x_spec = pl.BlockSpec((B_TILE, HW, Ep), lambda b: (b, 0, 0))
    out_spec = pl.BlockSpec((B_TILE, Op), lambda b: (b, 0))

    def const_spec(shape, mode):
        if mode is None:
            return pl.BlockSpec(shape, lambda b: (0, 0))
        return pl.BlockSpec(shape, lambda b: (0, 0), pipeline_mode=mode)

    def run(const_mode):
        in_specs = [x_spec] + [const_spec(a.shape, const_mode) for a in const_arrays]
        return pl.pallas_call(
            _attention_pool_kernel,
            out_shape=jax.ShapeDtypeStruct((N_pad, Op), f32),
            grid_spec=pltpu.PrefetchScalarGridSpec(
                num_scalar_prefetch=0,
                grid=(N_pad // B_TILE,),
                in_specs=in_specs,
                out_specs=out_spec,
            ),
            compiler_params=pltpu.CompilerParams(**cp_kwargs),
        )(x_tok, *const_arrays)

    # Grid-invariant inputs are fetched once; request single buffering so the
    # weights are not held twice in VMEM.  If this build does not accept
    # pipeline_mode on the top-level pipeline, fall back to the default
    # double buffering (identical numerics, just more VMEM).
    try:
        out = run(pl.Buffered(1))
    except Exception:
        out = run(None)

    return out[:N, :O]


def reference_attention_pool2d(x_nchw, pos, wq, bq, wk, bk, wv, bv, wc, bc, *, num_heads):
    """Pure-JAX reference mirroring F.multi_head_attention_forward semantics."""
    N, C, H, W = x_nchw.shape
    E = C
    hd = E // num_heads
    x = x_nchw.reshape(N, C, H * W).transpose(2, 0, 1)          # (HW, N, E)
    x = jnp.concatenate([x.mean(axis=0, keepdims=True), x], 0)  # (S, N, E)
    x = x + pos[:, None, :]
    q = x[:1] @ wq.T + bq                                       # (1, N, E)
    k = x @ wk.T + bk                                           # (S, N, E)
    v = x @ wv.T + bv
    scale = 1.0 / np.sqrt(hd)
    qh = (q[0] * scale).reshape(N, num_heads, hd)               # (N, H, hd)
    kh = k.reshape(-1, N, num_heads, hd)                        # (S, N, H, hd)
    vh = v.reshape(-1, N, num_heads, hd)
    sc = jnp.einsum('nhd,snhd->nhs', qh, kh)
    p = jax.nn.softmax(sc, axis=-1)
    o = jnp.einsum('nhs,snhd->nhd', p, vh).reshape(N, E)
    return o @ wc.T + bc


if __name__ == "__main__":
    # Small shapes consistent with the module: spacial_dim=4, embed_dim=32,
    # num_heads=4, output_dim=16, batch=2.
    spacial_dim = 4
    embed_dim = 32
    num_heads = 4
    output_dim = 16
    batch = 2

    key = jax.random.PRNGKey(0)
    keys = jax.random.split(key, 10)

    S = spacial_dim * spacial_dim + 1
    pos = jax.random.normal(keys[0], (S, embed_dim), jnp.float32) / np.sqrt(embed_dim)
    wq = jax.random.normal(keys[1], (embed_dim, embed_dim), jnp.float32) * 0.05
    bq = jax.random.normal(keys[2], (embed_dim,), jnp.float32) * 0.05
    wk = jax.random.normal(keys[3], (embed_dim, embed_dim), jnp.float32) * 0.05
    bk = jax.random.normal(keys[4], (embed_dim,), jnp.float32) * 0.05
    wv = jax.random.normal(keys[5], (embed_dim, embed_dim), jnp.float32) * 0.05
    bv = jax.random.normal(keys[6], (embed_dim,), jnp.float32) * 0.05
    wc = jax.random.normal(keys[7], (output_dim, embed_dim), jnp.float32) * 0.05
    bc = jax.random.normal(keys[8], (output_dim,), jnp.float32) * 0.05

    x = jax.random.normal(keys[9], (batch, embed_dim, spacial_dim, spacial_dim),
                          jnp.float32)

    out = attention_pool2d(x, pos, wq, bq, wk, bk, wv, bv, wc, bc,
                           num_heads=num_heads)
    out = jax.block_until_ready(out)

    ref = reference_attention_pool2d(x, pos, wq, bq, wk, bk, wv, bv, wc, bc,
                                     num_heads=num_heads)
    # bf16 matmul inputs + approx reciprocal -> slightly looser tolerance.
    np.testing.assert_allclose(np.asarray(out), np.asarray(ref),
                               rtol=2e-2, atol=2e-2)

    print("KERNEL_OK")
</pallas_src>

<mosaic_0001>
module attributes {stable_mosaic.version = 11 : i64} {
  func.func @_attention_pool_kernel(%arg0: i32, %arg1: memref<8x16x128xbf16, #tpu.memory_space<vmem>>, %arg2: memref<1x128xf32, #tpu.memory_space<vmem>>, %arg3: memref<16x128xbf16, #tpu.memory_space<vmem>>, %arg4: memref<8x128xbf16, #tpu.memory_space<vmem>>, %arg5: memref<128x128xbf16, #tpu.memory_space<vmem>>, %arg6: memref<1x128xf32, #tpu.memory_space<vmem>>, %arg7: memref<128x256xbf16, #tpu.memory_space<vmem>>, %arg8: memref<1x256xf32, #tpu.memory_space<vmem>>, %arg9: memref<128x4xbf16, #tpu.memory_space<vmem>>, %arg10: memref<4x128xbf16, #tpu.memory_space<vmem>>, %arg11: memref<128x128xbf16, #tpu.memory_space<vmem>>, %arg12: memref<1x128xf32, #tpu.memory_space<vmem>>, %arg13: memref<8x128xf32, #tpu.memory_space<vmem>>) attributes {dimension_semantics = [#tpu.dimension_semantics<parallel>], iteration_bounds = array<i64: 1>, scalar_prefetch = 0 : i64, scratch_operands = 0 : i64, tpu.core_type = #tpu.core_type<tc>, window_params = [{transform_indices = @transform_0, window_bounds = array<i64: 8, 16, 128>}, {pipeline_mode = #tpu.pipeline_mode<synchronous>, transform_indices = @transform_1, window_bounds = array<i64: 1, 128>}, {pipeline_mode = #tpu.pipeline_mode<synchronous>, transform_indices = @transform_2, window_bounds = array<i64: 16, 128>}, {pipeline_mode = #tpu.pipeline_mode<synchronous>, transform_indices = @transform_3, window_bounds = array<i64: 8, 128>}, {pipeline_mode = #tpu.pipeline_mode<synchronous>, transform_indices = @transform_4, window_bounds = array<i64: 128, 128>}, {pipeline_mode = #tpu.pipeline_mode<synchronous>, transform_indices = @transform_5, window_bounds = array<i64: 1, 128>}, {pipeline_mode = #tpu.pipeline_mode<synchronous>, transform_indices = @transform_6, window_bounds = array<i64: 128, 256>}, {pipeline_mode = #tpu.pipeline_mode<synchronous>, transform_indices = @transform_7, window_bounds = array<i64: 1, 256>}, {pipeline_mode = #tpu.pipeline_mode<synchronous>, transform_indices = @transform_8, window_bounds = array<i64: 128, 4>}, {pipeline_mode = #tpu.pipeline_mode<synchronous>, transform_indices = @transform_9, window_bounds = array<i64: 4, 128>}, {pipeline_mode = #tpu.pipeline_mode<synchronous>, transform_indices = @transform_10, window_bounds = array<i64: 128, 128>}, {pipeline_mode = #tpu.pipeline_mode<synchronous>, transform_indices = @transform_11, window_bounds = array<i64: 1, 128>}, {transform_indices = @transform_12, window_bounds = array<i64: 8, 128>}]} {
    %c0 = arith.constant 0 : index
    %c0_0 = arith.constant 0 : index
    %c0_1 = arith.constant 0 : index
    %0 = vector.load %arg1[%c0, %c0_0, %c0_1] : memref<8x16x128xbf16, #tpu.memory_space<vmem>>, vector<8x16x128xbf16>
    %1 = vector.shape_cast %0 : vector<8x16x128xbf16> to vector<128x128xbf16>
    %c0_2 = arith.constant 0 : index
    %c0_3 = arith.constant 0 : index
    %2 = vector.load %arg4[%c0_2, %c0_3] : memref<8x128xbf16, #tpu.memory_space<vmem>>, vector<8x128xbf16>
    %cst = arith.constant dense<0.000000e+00> : vector<8x128xf32>
    %3 = tpu.matmul %2, %1, %cst {dimension_numbers = #tpu.dot_dimension_numbers<[1], [0], [0], [1], [0, 0, 1, 1], [], []>} : vector<8x128xbf16>, vector<128x128xbf16>, vector<8x128xf32> -> vector<8x128xf32>
    %cst_4 = arith.constant 6.250000e-02 : f32
    %4 = vector.broadcast %cst_4 : f32 to vector<8x128xf32>
    %5 = arith.mulf %3, %4 : vector<8x128xf32>
    %c0_5 = arith.constant 0 : index
    %c0_6 = arith.constant 0 : index
    %6 = vector.load %arg2[%c0_5, %c0_6] : memref<1x128xf32, #tpu.memory_space<vmem>>, vector<1x128xf32>
    %7 = vector.broadcast %6 : vector<1x128xf32> to vector<8x128xf32>
    %8 = arith.addf %5, %7 : vector<8x128xf32>
    %9 = arith.truncf %8 : vector<8x128xf32> to vector<8x128xbf16>
    %c0_7 = arith.constant 0 : index
    %c0_8 = arith.constant 0 : index
    %10 = vector.load %arg5[%c0_7, %c0_8] : memref<128x128xbf16, #tpu.memory_space<vmem>>, vector<128x128xbf16>
    %cst_9 = arith.constant dense<0.000000e+00> : vector<8x128xf32>
    %11 = tpu.matmul %9, %10, %cst_9 {dimension_numbers = #tpu.dot_dimension_numbers<[1], [0], [0], [1], [0, 0, 1, 1], [], []>} : vector<8x128xbf16>, vector<128x128xbf16>, vector<8x128xf32> -> vector<8x128xf32>
    %c0_10 = arith.constant 0 : index
    %c0_11 = arith.constant 0 : index
    %12 = vector.load %arg6[%c0_10, %c0_11] : memref<1x128xf32, #tpu.memory_space<vmem>>, vector<1x128xf32>
    %13 = vector.broadcast %12 : vector<1x128xf32> to vector<8x128xf32>
    %14 = arith.addf %11, %13 : vector<8x128xf32>
    %c0_12 = arith.constant 0 : index
    %c0_13 = arith.constant 0 : index
    %15 = vector.load %arg7[%c0_12, %c0_13] : memref<128x256xbf16, #tpu.memory_space<vmem>>, vector<128x256xbf16>
    %cst_14 = arith.constant dense<0.000000e+00> : vector<8x256xf32>
    %16 = tpu.matmul %9, %15, %cst_14 {dimension_numbers = #tpu.dot_dimension_numbers<[1], [0], [0], [1], [0, 0, 1, 1], [], []>} : vector<8x128xbf16>, vector<128x256xbf16>, vector<8x256xf32> -> vector<8x256xf32>
    %c0_15 = arith.constant 0 : index
    %c0_16 = arith.constant 0 : index
    %17 = vector.load %arg8[%c0_15, %c0_16] : memref<1x256xf32, #tpu.memory_space<vmem>>, vector<1x256xf32>
    %18 = vector.broadcast %17 : vector<1x256xf32> to vector<8x256xf32>
    %19 = arith.addf %16, %18 : vector<8x256xf32>
    %20 = vector.extract_strided_slice %19 {offsets = [0, 0], sizes = [8, 128], strides = [1, 1]} : vector<8x256xf32> to vector<8x128xf32>
    %21 = vector.extract_strided_slice %19 {offsets = [0, 128], sizes = [8, 128], strides = [1, 1]} : vector<8x256xf32> to vector<8x128xf32>
    %c0_17 = arith.constant 0 : index
    %c0_18 = arith.constant 0 : index
    %22 = vector.load %arg3[%c0_17, %c0_18] : memref<16x128xbf16, #tpu.memory_space<vmem>>, vector<16x128xbf16>
    %23 = vector.shape_cast %22 : vector<16x128xbf16> to vector<1x16x128xbf16>
    %24 = vector.broadcast %23 : vector<1x16x128xbf16> to vector<8x16x128xbf16>
    %25 = arith.addf %0, %24 : vector<8x16x128xbf16>
    %26 = vector.shape_cast %25 : vector<8x16x128xbf16> to vector<128x128xbf16>
    %c0_19 = arith.constant 0 : index
    %c0_20 = arith.constant 0 : index
    %27 = vector.load %arg7[%c0_19, %c0_20] : memref<128x256xbf16, #tpu.memory_space<vmem>>, vector<128x256xbf16>
    %cst_21 = arith.constant dense<0.000000e+00> : vector<128x256xf32>
    %28 = tpu.matmul %26, %27, %cst_21 {dimension_numbers = #tpu.dot_dimension_numbers<[1], [0], [0], [1], [0, 0, 1, 1], [], []>} : vector<128x128xbf16>, vector<128x256xbf16>, vector<128x256xf32> -> vector<128x256xf32>
    %c0_22 = arith.constant 0 : index
    %c0_23 = arith.constant 0 : index
    %29 = vector.load %arg8[%c0_22, %c0_23] : memref<1x256xf32, #tpu.memory_space<vmem>>, vector<1x256xf32>
    %30 = vector.broadcast %29 : vector<1x256xf32> to vector<128x256xf32>
    %31 = arith.addf %28, %30 : vector<128x256xf32>
    %32 = vector.extract_strided_slice %31 {offsets = [0, 0], sizes = [128, 128], strides = [1, 1]} : vector<128x256xf32> to vector<128x128xf32>
    %33 = vector.shape_cast %32 : vector<128x128xf32> to vector<8x16x128xf32>
    %34 = vector.extract_strided_slice %31 {offsets = [0, 128], sizes = [128, 128], strides = [1, 1]} : vector<128x256xf32> to vector<128x128xf32>
    %35 = vector.shape_cast %34 : vector<128x128xf32> to vector<8x16x128xf32>
    %c0_24 = arith.constant 0 : index
    %c0_25 = arith.constant 0 : index
    %36 = vector.load %arg9[%c0_24, %c0_25] : memref<128x4xbf16, #tpu.memory_space<vmem>>, vector<128x4xbf16>
    %37 = arith.mulf %14, %20 : vector<8x128xf32>
    %38 = arith.truncf %37 : vector<8x128xf32> to vector<8x128xbf16>
    %cst_26 = arith.constant dense<0.000000e+00> : vector<8x4xf32>
    %39 = tpu.matmul %38, %36, %cst_26 {dimension_numbers = #tpu.dot_dimension_numbers<[1], [0], [0], [1], [0, 0, 1, 1], [], []>} : vector<8x128xbf16>, vector<128x4xbf16>, vector<8x4xf32> -> vector<8x4xf32>
    %40 = vector.shape_cast %14 : vector<8x128xf32> to vector<8x1x128xf32>
    %41 = vector.broadcast %40 : vector<8x1x128xf32> to vector<8x16x128xf32>
    %42 = arith.mulf %33, %41 : vector<8x16x128xf32>
    %43 = arith.truncf %42 : vector<8x16x128xf32> to vector<8x16x128xbf16>
    %44 = vector.shape_cast %43 : vector<8x16x128xbf16> to vector<128x128xbf16>
    %cst_27 = arith.constant dense<0.000000e+00> : vector<128x4xf32>
    %45 = tpu.matmul %44, %36, %cst_27 {dimension_numbers = #tpu.dot_dimension_numbers<[1], [0], [0], [1], [0, 0, 1, 1], [], []>} : vector<128x128xbf16>, vector<128x4xbf16>, vector<128x4xf32> -> vector<128x4xf32>
    %46 = vector.shape_cast %45 : vector<128x4xf32> to vector<8x16x4xf32>
    %cst_28 = arith.constant dense<0xFF800000> : vector<8x4xf32>
    %47 = vector.multi_reduction <maximumf>, %46, %cst_28 [1] : vector<8x16x4xf32> to vector<8x4xf32>
    %48 = arith.maximumf %47, %39 : vector<8x4xf32>
    %49 = arith.subf %39, %48 : vector<8x4xf32>
    %50 = math.exp %49 : vector<8x4xf32>
    %51 = vector.shape_cast %48 : vector<8x4xf32> to vector<8x1x4xf32>
    %52 = vector.broadcast %51 : vector<8x1x4xf32> to vector<8x16x4xf32>
    %53 = arith.subf %46, %52 : vector<8x16x4xf32>
    %54 = math.exp %53 : vector<8x16x4xf32>
    %cst_29 = arith.constant dense<0.000000e+00> : vector<8x4xf32>
    %55 = vector.multi_reduction <add>, %54, %cst_29 [1] : vector<8x16x4xf32> to vector<8x4xf32>
    %56 = arith.addf %50, %55 : vector<8x4xf32>
    %57 = tpu.reciprocal %56 {approx = true} : vector<8x4xf32> -> vector<8x4xf32>
    %c0_30 = arith.constant 0 : index
    %c0_31 = arith.constant 0 : index
    %58 = vector.load %arg10[%c0_30, %c0_31] : memref<4x128xbf16, #tpu.memory_space<vmem>>, vector<4x128xbf16>
    %59 = arith.mulf %50, %57 : vector<8x4xf32>
    %60 = arith.truncf %59 : vector<8x4xf32> to vector<8x4xbf16>
    %cst_32 = arith.constant dense<0.000000e+00> : vector<8x128xf32>
    %61 = tpu.matmul %60, %58, %cst_32 {dimension_numbers = #tpu.dot_dimension_numbers<[1], [0], [0], [1], [0, 0, 1, 1], [], []>} : vector<8x4xbf16>, vector<4x128xbf16>, vector<8x128xf32> -> vector<8x128xf32>
    %62 = vector.shape_cast %57 : vector<8x4xf32> to vector<8x1x4xf32>
    %63 = vector.broadcast %62 : vector<8x1x4xf32> to vector<8x16x4xf32>
    %64 = arith.mulf %54, %63 : vector<8x16x4xf32>
    %65 = arith.truncf %64 : vector<8x16x4xf32> to vector<8x16x4xbf16>
    %66 = vector.shape_cast %65 : vector<8x16x4xbf16> to vector<128x4xbf16>
    %cst_33 = arith.constant dense<0.000000e+00> : vector<128x128xf32>
    %67 = tpu.matmul %66, %58, %cst_33 {dimension_numbers = #tpu.dot_dimension_numbers<[1], [0], [0], [1], [0, 0, 1, 1], [], []>} : vector<128x4xbf16>, vector<4x128xbf16>, vector<128x128xf32> -> vector<128x128xf32>
    %68 = vector.shape_cast %67 : vector<128x128xf32> to vector<8x16x128xf32>
    %69 = arith.mulf %61, %21 : vector<8x128xf32>
    %70 = arith.mulf %68, %35 : vector<8x16x128xf32>
    %cst_34 = arith.constant dense<0.000000e+00> : vector<8x128xf32>
    %71 = vector.multi_reduction <add>, %70, %cst_34 [1] : vector<8x16x128xf32> to vector<8x128xf32>
    %72 = arith.addf %69, %71 : vector<8x128xf32>
    %73 = arith.truncf %72 : vector<8x128xf32> to vector<8x128xbf16>
    %c0_35 = arith.constant 0 : index
    %c0_36 = arith.constant 0 : index
    %74 = vector.load %arg11[%c0_35, %c0_36] : memref<128x128xbf16, #tpu.memory_space<vmem>>, vector<128x128xbf16>
    %cst_37 = arith.constant dense<0.000000e+00> : vector<8x128xf32>
    %75 = tpu.matmul %73, %74, %cst_37 {dimension_numbers = #tpu.dot_dimension_numbers<[1], [0], [0], [1], [0, 0, 1, 1], [], []>} : vector<8x128xbf16>, vector<128x128xbf16>, vector<8x128xf32> -> vector<8x128xf32>
    %c0_38 = arith.constant 0 : index
    %c0_39 = arith.constant 0 : index
    %76 = vector.load %arg12[%c0_38, %c0_39] : memref<1x128xf32, #tpu.memory_space<vmem>>, vector<1x128xf32>
    %77 = vector.broadcast %76 : vector<1x128xf32> to vector<8x128xf32>
    %78 = arith.addf %75, %77 : vector<8x128xf32>
    %c0_40 = arith.constant 0 : index
    %c0_41 = arith.constant 0 : index
    %79 = vector.load %arg13[%c0_40, %c0_41] : memref<8x128xf32, #tpu.memory_space<vmem>>, vector<8x128xf32>
    tpu.vector_store %arg13[%c0_40, %c0_41], %78 {strides = array<i32>} : memref<8x128xf32, #tpu.memory_space<vmem>>, vector<8x128xf32>,
    return
  }
  func.func @transform_0(%arg0: i32) -> (i32, i32, i32) {
    %c0_i32 = arith.constant 0 : i32
    %c0_i32_0 = arith.constant 0 : i32
    %c0_i32_1 = arith.constant 0 : i32
    return %arg0, %c0_i32, %c0_i32_0 : i32, i32, i32
  }
  func.func @transform_1(%arg0: i32) -> (i32, i32) {
    %c0_i32 = arith.constant 0 : i32
    %c0_i32_0 = arith.constant 0 : i32
    %c0_i32_1 = arith.constant 0 : i32
    return %c0_i32, %c0_i32_0 : i32, i32
  }
  func.func @transform_2(%arg0: i32) -> (i32, i32) {
    %c0_i32 = arith.constant 0 : i32
    %c0_i32_0 = arith.constant 0 : i32
    %c0_i32_1 = arith.constant 0 : i32
    return %c0_i32, %c0_i32_0 : i32, i32
  }
  func.func @transform_3(%arg0: i32) -> (i32, i32) {
    %c0_i32 = arith.constant 0 : i32
    %c0_i32_0 = arith.constant 0 : i32
    %c0_i32_1 = arith.constant 0 : i32
    return %c0_i32, %c0_i32_0 : i32, i32
  }
  func.func @transform_4(%arg0: i32) -> (i32, i32) {
    %c0_i32 = arith.constant 0 : i32
    %c0_i32_0 = arith.constant 0 : i32
    %c0_i32_1 = arith.constant 0 : i32
    return %c0_i32, %c0_i32_0 : i32, i32
  }
  func.func @transform_5(%arg0: i32) -> (i32, i32) {
    %c0_i32 = arith.constant 0 : i32
    %c0_i32_0 = arith.constant 0 : i32
    %c0_i32_1 = arith.constant 0 : i32
    return %c0_i32, %c0_i32_0 : i32, i32
  }
  func.func @transform_6(%arg0: i32) -> (i32, i32) {
    %c0_i32 = arith.constant 0 : i32
    %c0_i32_0 = arith.constant 0 : i32
    %c0_i32_1 = arith.constant 0 : i32
    return %c0_i32, %c0_i32_0 : i32, i32
  }
  func.func @transform_7(%arg0: i32) -> (i32, i32) {
    %c0_i32 = arith.constant 0 : i32
    %c0_i32_0 = arith.constant 0 : i32
    %c0_i32_1 = arith.constant 0 : i32
    return %c0_i32, %c0_i32_0 : i32, i32
  }
  func.func @transform_8(%arg0: i32) -> (i32, i32) {
    %c0_i32 = arith.constant 0 : i32
    %c0_i32_0 = arith.constant 0 : i32
    %c0_i32_1 = arith.constant 0 : i32
    return %c0_i32, %c0_i32_0 : i32, i32
  }
  func.func @transform_9(%arg0: i32) -> (i32, i32) {
    %c0_i32 = arith.constant 0 : i32
    %c0_i32_0 = arith.constant 0 : i32
    %c0_i32_1 = arith.constant 0 : i32
    return %c0_i32, %c0_i32_0 : i32, i32
  }
  func.func @transform_10(%arg0: i32) -> (i32, i32) {
    %c0_i32 = arith.constant 0 : i32
    %c0_i32_0 = arith.constant 0 : i32
    %c0_i32_1 = arith.constant 0 : i32
    return %c0_i32, %c0_i32_0 : i32, i32
  }
  func.func @transform_11(%arg0: i32) -> (i32, i32) {
    %c0_i32 = arith.constant 0 : i32
    %c0_i32_0 = arith.constant 0 : i32
    %c0_i32_1 = arith.constant 0 : i32
    return %c0_i32, %c0_i32_0 : i32, i32
  }
  func.func @transform_12(%arg0: i32) -> (i32, i32) {
    %c0_i32 = arith.constant 0 : i32
    %c0_i32_0 = arith.constant 0 : i32
    return %arg0, %c0_i32 : i32, i32
  }
}

module attributes {stable_mosaic.version = 11 : i64} {
  func.func @_attention_pool_kernel(%arg0: i32, %arg1: memref<8x16x128xbf16, #tpu.memory_space<vmem>>, %arg2: memref<1x128xf32, #tpu.memory_space<vmem>>, %arg3: memref<16x128xbf16, #tpu.memory_space<vmem>>, %arg4: memref<8x128xbf16, #tpu.memory_space<vmem>>, %arg5: memref<128x128xbf16, #tpu.memory_space<vmem>>, %arg6: memref<1x128xf32, #tpu.memory_space<vmem>>, %arg7: memref<128x256xbf16, #tpu.memory_space<vmem>>, %arg8: memref<1x256xf32, #tpu.memory_space<vmem>>, %arg9: memref<128x4xbf16, #tpu.memory_space<vmem>>, %arg10: memref<4x128xbf16, #tpu.memory_space<vmem>>, %arg11: memref<128x128xbf16, #tpu.memory_space<vmem>>, %arg12: memref<1x128xf32, #tpu.memory_space<vmem>>, %arg13: memref<8x128xf32, #tpu.memory_space<vmem>>) attributes {dimension_semantics = [#tpu.dimension_semantics<parallel>], iteration_bounds = array<i64: 1>, scalar_prefetch = 0 : i64, scratch_operands = 0 : i64, tpu.core_type = #tpu.core_type<tc>, window_params = [{transform_indices = @transform_0, window_bounds = array<i64: 8, 16, 128>}, {pipeline_mode = #tpu.pipeline_mode<synchronous>, transform_indices = @transform_1, window_bounds = array<i64: 1, 128>}, {pipeline_mode = #tpu.pipeline_mode<synchronous>, transform_indices = @transform_2, window_bounds = array<i64: 16, 128>}, {pipeline_mode = #tpu.pipeline_mode<synchronous>, transform_indices = @transform_3, window_bounds = array<i64: 8, 128>}, {pipeline_mode = #tpu.pipeline_mode<synchronous>, transform_indices = @transform_4, window_bounds = array<i64: 128, 128>}, {pipeline_mode = #tpu.pipeline_mode<synchronous>, transform_indices = @transform_5, window_bounds = array<i64: 1, 128>}, {pipeline_mode = #tpu.pipeline_mode<synchronous>, transform_indices = @transform_6, window_bounds = array<i64: 128, 256>}, {pipeline_mode = #tpu.pipeline_mode<synchronous>, transform_indices = @transform_7, window_bounds = array<i64: 1, 256>}, {pipeline_mode = #tpu.pipeline_mode<synchronous>, transform_indices = @transform_8, window_bounds = array<i64: 128, 4>}, {pipeline_mode = #tpu.pipeline_mode<synchronous>, transform_indices = @transform_9, window_bounds = array<i64: 4, 128>}, {pipeline_mode = #tpu.pipeline_mode<synchronous>, transform_indices = @transform_10, window_bounds = array<i64: 128, 128>}, {pipeline_mode = #tpu.pipeline_mode<synchronous>, transform_indices = @transform_11, window_bounds = array<i64: 1, 128>}, {transform_indices = @transform_12, window_bounds = array<i64: 8, 128>}]} {
    %c0 = arith.constant 0 : index
    %c0_0 = arith.constant 0 : index
    %c0_1 = arith.constant 0 : index
    %0 = vector.load %arg1[%c0, %c0_0, %c0_1] : memref<8x16x128xbf16, #tpu.memory_space<vmem>>, vector<8x16x128xbf16>
    %1 = vector.shape_cast %0 : vector<8x16x128xbf16> to vector<128x128xbf16>
    %c0_2 = arith.constant 0 : index
    %c0_3 = arith.constant 0 : index
    %2 = vector.load %arg4[%c0_2, %c0_3] : memref<8x128xbf16, #tpu.memory_space<vmem>>, vector<8x128xbf16>
    %cst = arith.constant dense<0.000000e+00> : vector<8x128xf32>
    %3 = tpu.matmul %2, %1, %cst {dimension_numbers = #tpu.dot_dimension_numbers<[1], [0], [0], [1], [0, 0, 1, 1], [], []>} : vector<8x128xbf16>, vector<128x128xbf16>, vector<8x128xf32> -> vector<8x128xf32>
    %cst_4 = arith.constant 6.250000e-02 : f32
    %4 = vector.broadcast %cst_4 : f32 to vector<8x128xf32>
    %5 = arith.mulf %3, %4 : vector<8x128xf32>
    %c0_5 = arith.constant 0 : index
    %c0_6 = arith.constant 0 : index
    %6 = vector.load %arg2[%c0_5, %c0_6] : memref<1x128xf32, #tpu.memory_space<vmem>>, vector<1x128xf32>
    %7 = vector.broadcast %6 : vector<1x128xf32> to vector<8x128xf32>
    %8 = arith.addf %5, %7 : vector<8x128xf32>
    %9 = arith.truncf %8 : vector<8x128xf32> to vector<8x128xbf16>
    %c0_7 = arith.constant 0 : index
    %c0_8 = arith.constant 0 : index
    %10 = vector.load %arg5[%c0_7, %c0_8] : memref<128x128xbf16, #tpu.memory_space<vmem>>, vector<128x128xbf16>
    %cst_9 = arith.constant dense<0.000000e+00> : vector<8x128xf32>
    %11 = tpu.matmul %9, %10, %cst_9 {dimension_numbers = #tpu.dot_dimension_numbers<[1], [0], [0], [1], [0, 0, 1, 1], [], []>} : vector<8x128xbf16>, vector<128x128xbf16>, vector<8x128xf32> -> vector<8x128xf32>
    %c0_10 = arith.constant 0 : index
    %c0_11 = arith.constant 0 : index
    %12 = vector.load %arg6[%c0_10, %c0_11] : memref<1x128xf32, #tpu.memory_space<vmem>>, vector<1x128xf32>
    %13 = vector.broadcast %12 : vector<1x128xf32> to vector<8x128xf32>
    %14 = arith.addf %11, %13 : vector<8x128xf32>
    %c0_12 = arith.constant 0 : index
    %c0_13 = arith.constant 0 : index
    %15 = vector.load %arg7[%c0_12, %c0_13] : memref<128x256xbf16, #tpu.memory_space<vmem>>, vector<128x256xbf16>
    %cst_14 = arith.constant dense<0.000000e+00> : vector<8x256xf32>
    %16 = tpu.matmul %9, %15, %cst_14 {dimension_numbers = #tpu.dot_dimension_numbers<[1], [0], [0], [1], [0, 0, 1, 1], [], []>} : vector<8x128xbf16>, vector<128x256xbf16>, vector<8x256xf32> -> vector<8x256xf32>
    %c0_15 = arith.constant 0 : index
    %c0_16 = arith.constant 0 : index
    %17 = vector.load %arg8[%c0_15, %c0_16] : memref<1x256xf32, #tpu.memory_space<vmem>>, vector<1x256xf32>
    %18 = vector.broadcast %17 : vector<1x256xf32> to vector<8x256xf32>
    %19 = arith.addf %16, %18 : vector<8x256xf32>
    %20 = vector.extract_strided_slice %19 {offsets = [0, 0], sizes = [8, 128], strides = [1, 1]} : vector<8x256xf32> to vector<8x128xf32>
    %21 = vector.extract_strided_slice %19 {offsets = [0, 128], sizes = [8, 128], strides = [1, 1]} : vector<8x256xf32> to vector<8x128xf32>
    %c0_17 = arith.constant 0 : index
    %c0_18 = arith.constant 0 : index
    %22 = vector.load %arg3[%c0_17, %c0_18] : memref<16x128xbf16, #tpu.memory_space<vmem>>, vector<16x128xbf16>
    %23 = vector.shape_cast %22 : vector<16x128xbf16> to vector<1x16x128xbf16>
    %24 = vector.broadcast %23 : vector<1x16x128xbf16> to vector<8x16x128xbf16>
    %25 = arith.addf %0, %24 : vector<8x16x128xbf16>
    %26 = vector.shape_cast %25 : vector<8x16x128xbf16> to vector<128x128xbf16>
    %c0_19 = arith.constant 0 : index
    %c0_20 = arith.constant 0 : index
    %27 = vector.load %arg7[%c0_19, %c0_20] : memref<128x256xbf16, #tpu.memory_space<vmem>>, vector<128x256xbf16>
    %cst_21 = arith.constant dense<0.000000e+00> : vector<128x256xf32>
    %28 = tpu.matmul %26, %27, %cst_21 {dimension_numbers = #tpu.dot_dimension_numbers<[1], [0], [0], [1], [0, 0, 1, 1], [], []>} : vector<128x128xbf16>, vector<128x256xbf16>, vector<128x256xf32> -> vector<128x256xf32>
    %c0_22 = arith.constant 0 : index
    %c0_23 = arith.constant 0 : index
    %29 = vector.load %arg8[%c0_22, %c0_23] : memref<1x256xf32, #tpu.memory_space<vmem>>, vector<1x256xf32>
    %30 = vector.broadcast %29 : vector<1x256xf32> to vector<128x256xf32>
    %31 = arith.addf %28, %30 : vector<128x256xf32>
    %32 = vector.extract_strided_slice %31 {offsets = [0, 0], sizes = [128, 128], strides = [1, 1]} : vector<128x256xf32> to vector<128x128xf32>
    %33 = vector.shape_cast %32 : vector<128x128xf32> to vector<8x16x128xf32>
    %34 = vector.extract_strided_slice %31 {offsets = [0, 128], sizes = [128, 128], strides = [1, 1]} : vector<128x256xf32> to vector<128x128xf32>
    %35 = vector.shape_cast %34 : vector<128x128xf32> to vector<8x16x128xf32>
    %c0_24 = arith.constant 0 : index
    %c0_25 = arith.constant 0 : index
    %36 = vector.load %arg9[%c0_24, %c0_25] : memref<128x4xbf16, #tpu.memory_space<vmem>>, vector<128x4xbf16>
    %37 = arith.mulf %14, %20 : vector<8x128xf32>
    %38 = arith.truncf %37 : vector<8x128xf32> to vector<8x128xbf16>
    %cst_26 = arith.constant dense<0.000000e+00> : vector<8x4xf32>
    %39 = tpu.matmul %38, %36, %cst_26 {dimension_numbers = #tpu.dot_dimension_numbers<[1], [0], [0], [1], [0, 0, 1, 1], [], []>} : vector<8x128xbf16>, vector<128x4xbf16>, vector<8x4xf32> -> vector<8x4xf32>
    %40 = vector.shape_cast %14 : vector<8x128xf32> to vector<8x1x128xf32>
    %41 = vector.broadcast %40 : vector<8x1x128xf32> to vector<8x16x128xf32>
    %42 = arith.mulf %33, %41 : vector<8x16x128xf32>
    %43 = arith.truncf %42 : vector<8x16x128xf32> to vector<8x16x128xbf16>
    %44 = vector.shape_cast %43 : vector<8x16x128xbf16> to vector<128x128xbf16>
    %cst_27 = arith.constant dense<0.000000e+00> : vector<128x4xf32>
    %45 = tpu.matmul %44, %36, %cst_27 {dimension_numbers = #tpu.dot_dimension_numbers<[1], [0], [0], [1], [0, 0, 1, 1], [], []>} : vector<128x128xbf16>, vector<128x4xbf16>, vector<128x4xf32> -> vector<128x4xf32>
    %46 = vector.shape_cast %45 : vector<128x4xf32> to vector<8x16x4xf32>
    %cst_28 = arith.constant dense<0xFF800000> : vector<8x4xf32>
    %47 = vector.multi_reduction <maximumf>, %46, %cst_28 [1] : vector<8x16x4xf32> to vector<8x4xf32>
    %48 = arith.maximumf %47, %39 : vector<8x4xf32>
    %49 = arith.subf %39, %48 : vector<8x4xf32>
    %50 = math.exp %49 : vector<8x4xf32>
    %51 = vector.shape_cast %48 : vector<8x4xf32> to vector<8x1x4xf32>
    %52 = vector.broadcast %51 : vector<8x1x4xf32> to vector<8x16x4xf32>
    %53 = arith.subf %46, %52 : vector<8x16x4xf32>
    %54 = math.exp %53 : vector<8x16x4xf32>
    %cst_29 = arith.constant dense<0.000000e+00> : vector<8x4xf32>
    %55 = vector.multi_reduction <add>, %54, %cst_29 [1] : vector<8x16x4xf32> to vector<8x4xf32>
    %56 = arith.addf %50, %55 : vector<8x4xf32>
    %57 = tpu.reciprocal %56 {approx = true} : vector<8x4xf32> -> vector<8x4xf32>
    %c0_30 = arith.constant 0 : index
    %c0_31 = arith.constant 0 : index
    %58 = vector.load %arg10[%c0_30, %c0_31] : memref<4x128xbf16, #tpu.memory_space<vmem>>, vector<4x128xbf16>
    %59 = arith.mulf %50, %57 : vector<8x4xf32>
    %60 = arith.truncf %59 : vector<8x4xf32> to vector<8x4xbf16>
    %cst_32 = arith.constant dense<0.000000e+00> : vector<8x128xf32>
    %61 = tpu.matmul %60, %58, %cst_32 {dimension_numbers = #tpu.dot_dimension_numbers<[1], [0], [0], [1], [0, 0, 1, 1], [], []>} : vector<8x4xbf16>, vector<4x128xbf16>, vector<8x128xf32> -> vector<8x128xf32>
    %62 = vector.shape_cast %57 : vector<8x4xf32> to vector<8x1x4xf32>
    %63 = vector.broadcast %62 : vector<8x1x4xf32> to vector<8x16x4xf32>
    %64 = arith.mulf %54, %63 : vector<8x16x4xf32>
    %65 = arith.truncf %64 : vector<8x16x4xf32> to vector<8x16x4xbf16>
    %66 = vector.shape_cast %65 : vector<8x16x4xbf16> to vector<128x4xbf16>
    %cst_33 = arith.constant dense<0.000000e+00> : vector<128x128xf32>
    %67 = tpu.matmul %66, %58, %cst_33 {dimension_numbers = #tpu.dot_dimension_numbers<[1], [0], [0], [1], [0, 0, 1, 1], [], []>} : vector<128x4xbf16>, vector<4x128xbf16>, vector<128x128xf32> -> vector<128x128xf32>
    %68 = vector.shape_cast %67 : vector<128x128xf32> to vector<8x16x128xf32>
    %69 = arith.mulf %61, %21 : vector<8x128xf32>
    %70 = arith.mulf %68, %35 : vector<8x16x128xf32>
    %cst_34 = arith.constant dense<0.000000e+00> : vector<8x128xf32>
    %71 = vector.multi_reduction <add>, %70, %cst_34 [1] : vector<8x16x128xf32> to vector<8x128xf32>
    %72 = arith.addf %69, %71 : vector<8x128xf32>
    %73 = arith.truncf %72 : vector<8x128xf32> to vector<8x128xbf16>
    %c0_35 = arith.constant 0 : index
    %c0_36 = arith.constant 0 : index
    %74 = vector.load %arg11[%c0_35, %c0_36] : memref<128x128xbf16, #tpu.memory_space<vmem>>, vector<128x128xbf16>
    %cst_37 = arith.constant dense<0.000000e+00> : vector<8x128xf32>
    %75 = tpu.matmul %73, %74, %cst_37 {dimension_numbers = #tpu.dot_dimension_numbers<[1], [0], [0], [1], [0, 0, 1, 1], [], []>} : vector<8x128xbf16>, vector<128x128xbf16>, vector<8x128xf32> -> vector<8x128xf32>
    %c0_38 = arith.constant 0 : index
    %c0_39 = arith.constant 0 : index
    %76 = vector.load %arg12[%c0_38, %c0_39] : memref<1x128xf32, #tpu.memory_space<vmem>>, vector<1x128xf32>
    %77 = vector.broadcast %76 : vector<1x128xf32> to vector<8x128xf32>
    %78 = arith.addf %75, %77 : vector<8x128xf32>
    %c0_40 = arith.constant 0 : index
    %c0_41 = arith.constant 0 : index
    %79 = vector.load %arg13[%c0_40, %c0_41] : memref<8x128xf32, #tpu.memory_space<vmem>>, vector<8x128xf32>
    tpu.vector_store %arg13[%c0_40, %c0_41], %78 {strides = array<i32>} : memref<8x128xf32, #tpu.memory_space<vmem>>, vector<8x128xf32>,
    return
  }
  func.func @transform_0(%arg0: i32) -> (i32, i32, i32) {
    %c0_i32 = arith.constant 0 : i32
    %c0_i32_0 = arith.constant 0 : i32
    %c0_i32_1 = arith.constant 0 : i32
    return %arg0, %c0_i32, %c0_i32_0 : i32, i32, i32
  }
  func.func @transform_1(%arg0: i32) -> (i32, i32) {
    %c0_i32 = arith.constant 0 : i32
    %c0_i32_0 = arith.constant 0 : i32
    %c0_i32_1 = arith.constant 0 : i32
    return %c0_i32, %c0_i32_0 : i32, i32
  }
  func.func @transform_2(%arg0: i32) -> (i32, i32) {
    %c0_i32 = arith.constant 0 : i32
    %c0_i32_0 = arith.constant 0 : i32
    %c0_i32_1 = arith.constant 0 : i32
    return %c0_i32, %c0_i32_0 : i32, i32
  }
  func.func @transform_3(%arg0: i32) -> (i32, i32) {
    %c0_i32 = arith.constant 0 : i32
    %c0_i32_0 = arith.constant 0 : i32
    %c0_i32_1 = arith.constant 0 : i32
    return %c0_i32, %c0_i32_0 : i32, i32
  }
  func.func @transform_4(%arg0: i32) -> (i32, i32) {
    %c0_i32 = arith.constant 0 : i32
    %c0_i32_0 = arith.constant 0 : i32
    %c0_i32_1 = arith.constant 0 : i32
    return %c0_i32, %c0_i32_0 : i32, i32
  }
  func.func @transform_5(%arg0: i32) -> (i32, i32) {
    %c0_i32 = arith.constant 0 : i32
    %c0_i32_0 = arith.constant 0 : i32
    %c0_i32_1 = arith.constant 0 : i32
    return %c0_i32, %c0_i32_0 : i32, i32
  }
  func.func @transform_6(%arg0: i32) -> (i32, i32) {
    %c0_i32 = arith.constant 0 : i32
    %c0_i32_0 = arith.constant 0 : i32
    %c0_i32_1 = arith.constant 0 : i32
    return %c0_i32, %c0_i32_0 : i32, i32
  }
  func.func @transform_7(%arg0: i32) -> (i32, i32) {
    %c0_i32 = arith.constant 0 : i32
    %c0_i32_0 = arith.constant 0 : i32
    %c0_i32_1 = arith.constant 0 : i32
    return %c0_i32, %c0_i32_0 : i32, i32
  }
  func.func @transform_8(%arg0: i32) -> (i32, i32) {
    %c0_i32 = arith.constant 0 : i32
    %c0_i32_0 = arith.constant 0 : i32
    %c0_i32_1 = arith.constant 0 : i32
    return %c0_i32, %c0_i32_0 : i32, i32
  }
  func.func @transform_9(%arg0: i32) -> (i32, i32) {
    %c0_i32 = arith.constant 0 : i32
    %c0_i32_0 = arith.constant 0 : i32
    %c0_i32_1 = arith.constant 0 : i32
    return %c0_i32, %c0_i32_0 : i32, i32
  }
  func.func @transform_10(%arg0: i32) -> (i32, i32) {
    %c0_i32 = arith.constant 0 : i32
    %c0_i32_0 = arith.constant 0 : i32
    %c0_i32_1 = arith.constant 0 : i32
    return %c0_i32, %c0_i32_0 : i32, i32
  }
  func.func @transform_11(%arg0: i32) -> (i32, i32) {
    %c0_i32 = arith.constant 0 : i32
    %c0_i32_0 = arith.constant 0 : i32
    %c0_i32_1 = arith.constant 0 : i32
    return %c0_i32, %c0_i32_0 : i32, i32
  }
  func.func @transform_12(%arg0: i32) -> (i32, i32) {
    %c0_i32 = arith.constant 0 : i32
    %c0_i32_0 = arith.constant 0 : i32
    return %arg0, %c0_i32 : i32, i32
  }
}

</mosaic_0001>

<bundles_post_ra>
// kernel: tpu_custom_call.1
= control target key start
LH: loop header
LB: loop body
LE: loop exit
PB: predicated region body
PF: predicated region fallthrough
CT: control target
= control target key end

     0   :  { %17 = vsyncpa [#allocation3], 0  ;;  %s2555_s0 = inlined_call_operand.vmem [shape: bf16[8,16,128], index: 0, kind: input, shape index: {}]   ;;  %s2556_s1 = inlined_call_operand.hbm [shape: f32[1,128], index: 1, kind: input, shape index: {}]   ;;  %s2557_s2 = inlined_call_operand.hbm [shape: bf16[16,128], index: 2, kind: input, shape index: {}]   ;;  %s2558_s3 = inlined_call_operand.hbm [shape: bf16[8,128], index: 3, kind: input, shape index: {}]   ;;  %s2559_s4 = inlined_call_operand.hbm [shape: bf16[128,128], index: 4, kind: input, shape index: {}]   ;;  %s2560_s5 = inlined_call_operand.hbm [shape: f32[1,128], index: 5, kind: input, shape index: {}]   ;;  %s2561_s6 = inlined_call_operand.hbm [shape: bf16[128,256], index: 6, kind: input, shape index: {}]   ;;  %s2562_s7 = inlined_call_operand.vmem [shape: f32[1,256], index: 7, kind: input, shape index: {}]   ;;  %s2563_s8 = inlined_call_operand.vmem [shape: bf16[128,4], index: 8, kind: input, shape index: {}]   ;;  %s2564_s9 = inlined_call_operand.vmem [shape: bf16[4,128], index: 9, kind: input, shape index: {}]   ;;  %s2565_s10 = inlined_call_operand.hbm [shape: bf16[128,128], index: 10, kind: input, shape index: {}]   ;;  %s2566_s11 = inlined_call_operand.vmem [shape: f32[1,128], index: 11, kind: input, shape index: {}]   ;;  %s2567_s12 = inlined_call_operand.hbm [shape: f32[8,128], index: 12, kind: output, shape index: {}]  }
   0x1   :  { %18 = vsyncpa [#allocation6], 0 }
   0x2   :  { %19 = vsyncpa [#allocation9], 0 }
   0x3   :  { %20 = vsyncpa [#allocation12], 0  ;;  %s39_s23 = sshll.u32 %s2557_s2, 4  ;;  %s40_s23 = int_to_ptr.hbm [resolvable:$true] %s39_s23 }
   0x4   :  { %21 = vsyncpa [#allocation4], 0  ;;  %s2037_s24 = smov [#allocation5]   ;;  %s63_s28 = sshll.u32 %s2559_s4, 4  ;;  %s64_s28 = int_to_ptr.hbm [resolvable:$true] %s63_s28 }
   0x5   :  { %s41_s25 = sshll.u32 %s2037_s24, 4  ;;  %s2038_s29 = smov 64   ;;  %s42_s25 = int_to_ptr.vmem [resolvable:$true] %s41_s25 }
   0x6   :  { %s2039_s30 = smov 4   ;;  %s2040_s13 = smov [#allocation8]  }
   0x7   :  { %47 = dma.hbm_to_vmem [thread:$0]  %s40_s23, 128, %s42_s25, [#allocation6], %s2038_s29, %s2038_s29, %s2039_s30  }
   0x8   :  { %s65_s14 = sshll.u32 %s2040_s13, 4  ;;  %s87_s16 = sshll.u32 %s2561_s6, 4  ;;  %s66_s14 = int_to_ptr.vmem [resolvable:$true] %s65_s14  ;;  %s88_s16 = int_to_ptr.hbm [resolvable:$true] %s87_s16 }
   0x9   :  { %71 = dma.hbm_to_vmem [thread:$0]  %s64_s28, 1024, %s66_s14, [#allocation9], %s2038_s29, %s2038_s29, %s2039_s30  }
   0xa   :  { %s2041_s4 = smov [#allocation11]   ;;  %s29_s20 = sshll.u32 %s2556_s1, 4  ;;  %s30_s20 = int_to_ptr.hbm [resolvable:$true] %s29_s20 }
   0xb   :  { %s89_s17 = sshll.u32 %s2041_s4, 4  ;;  %s2042_s21 = smov 128   ;;  %s90_s17 = int_to_ptr.vmem [resolvable:$true] %s89_s17 }
   0xc   :  { %s2043_s22 = smov 8   ;;  %s2044_s23 = smov [#allocation2]  }
   0xd   :  { %95 = dma.hbm_to_vmem [thread:$0]  %s88_s16, 2048, %s90_s17, [#allocation12], %s2042_s21, %s2042_s21, %s2043_s22  }
   0xe   :  { %s31_s24 = sshll.u32 %s2044_s23, 4  ;;  %s53_s26 = sshll.u32 %s2558_s3, 4  ;;  %s32_s24 = int_to_ptr.vmem [resolvable:$true] %s31_s24  ;;  %s54_s26 = int_to_ptr.hbm [resolvable:$true] %s53_s26 }
   0xf   :  { %34 = dma.hbm_to_vmem [thread:$0]  %s30_s20, 16, %s32_s24, [#allocation3]  }
  0x10   :  { %s77_s13 = sshll.u32 %s2560_s5, 4  ;;  %s2045_s14 = smov [#allocation7]   ;;  %s78_s13 = int_to_ptr.hbm [resolvable:$true] %s77_s13 }
  0x11   :  { %s55_s15 = sshll.u32 %s2045_s14, 4  ;;  %s2046_s1 = smov [#allocation10]   ;;  %s56_s15 = int_to_ptr.vmem [resolvable:$true] %s55_s15 }
  0x12   :  { %58 = dma.hbm_to_vmem [thread:$0]  %s54_s26, 64, %s56_s15, [#allocation6]  }
  0x13   :  { %s79_s2 = sshll.u32 %s2046_s1, 4  ;;  %s106_s17 = sshll.u32 %s2565_s10, 4  ;;  %s80_s2 = int_to_ptr.vmem [resolvable:$true] %s79_s2  ;;  %s107_s17 = int_to_ptr.hbm [resolvable:$true] %s106_s17 }
  0x14   :  { %82 = dma.hbm_to_vmem [thread:$0]  %s78_s13, 16, %s80_s2, [#allocation9]  }
  0x15   :  { %s2047_s3 = smov [#allocation13]  }
  0x16   :  { %s108_s18 = sshll.u32 %s2047_s3, 4  ;;  %s109_s18 = int_to_ptr.vmem [resolvable:$true] %s108_s18 }
  0x17   :  { %114 = dma.hbm_to_vmem [thread:$0]  %s107_s17, 1024, %s109_s18, [#allocation12], %s2038_s29, %s2038_s29, %s2039_s30  }
  0x18   :  { %2027 = dma.done.wait [#allocation3], 16  }
  0x19   :  { %2028 = vsyncadd [#allocation3], 4294967280 }
  0x1a   :  { %2029 = dma.done.wait [#allocation6], 192  }
  0x1b   :  { %2030 = vsyncadd [#allocation6], 4294967104 }
  0x1c   :  { %2031 = dma.done.wait [#allocation9], 1040  }
  0x1d   :  { %2032 = vsyncadd [#allocation9], 4294966256 }
  0x1e   :  { %2033 = dma.done.wait [#allocation12], 3072  }
  0x1f   :  { %2034 = vsyncadd [#allocation12], 4294964224  ;;  %v1739_v0 = vld [vmem:[%s2555_s0 + $0x38] sm:$0xff]  ;;  %v1738_v1 = vld [vmem:[%s2555_s0 + $0x30] sm:$0xff]  ;;  %vm870_vm0 = vcmask 31744   ;;  %vm976_vm1 = vcmask 1041409  }
  0x20   :  { %211 = vmatpush.bf16.msra.mxu0 %v1739_v0  ;;  %v1653_v2 = vld [vmem:[#allocation11 + $0x70] sm:$0xf]  ;;  %v1763_v3 = vld [vmem:[#allocation11 + $0x74] sm:$0xf0]  ;;  %v1645_v5 = vld [vmem:[#allocation11 + $0x60] sm:$0xf] }
  0x21   :  { %v1654_v4 = vor.u32 %v1763_v3, %v1653_v2  ;;  %v1761_v6 = vld [vmem:[#allocation11 + $0x64] sm:$0xf0]  ;;  %v1737_v7 = vld [vmem:[%s2555_s0 + $0x28] sm:$0xff]  ;;  %v1637_v9 = vld [vmem:[#allocation11 + $0x50] sm:$0xf]  ;;  %vm979_vm2 = vcmask 1042434  }
  0x22   :  { %v1646_v8 = vor.u32 %v1761_v6, %v1645_v5  ;;  %v1759_v10 = vld [vmem:[#allocation11 + $0x54] sm:$0xf0]  ;;  %v1736_v11 = vld [vmem:[%s2555_s0 + $0x20] sm:$0xff]  ;;  %v1629_v13 = vld [vmem:[#allocation11 + $0x40] sm:$0xf]  ;;  %vm982_vm3 = vcmask 1043459  }
  0x23   :  { %414 = vmatpush.bf16.msra.mxu2 %v1654_v4  ;;  %v1638_v12 = vor.u32 %v1759_v10, %v1637_v9  ;;  %v1757_v14 = vld [vmem:[#allocation11 + $0x44] sm:$0xf0]  ;;  %v1621_v17 = vld [vmem:[#allocation11 + $0x30] sm:$0xf]  ;;  %v1755_v18 = vld [vmem:[#allocation11 + $0x34] sm:$0xf0] }
  0x24   :  { %212 = vmatpush.bf16.msra.mxu0 %v1738_v1  ;;  %v1735_v15 = vld [vmem:[%s2555_s0 + $0x18] sm:$0xff]  ;;  %v1630_v16 = vor.u32 %v1757_v14, %v1629_v13  ;;  %v1734_v19 = vld [vmem:[%s2555_s0 + $0x10] sm:$0xff]  ;;  %v1622_v20 = vor.u32 %v1755_v18, %v1621_v17  ;;  %v1733_v23 = vld [vmem:[%s2555_s0 + $0x8] sm:$0xff]  ;;  %vm1152_vm4 = vcmask 1041408   ;;  %vm985_vm5 = vcmask 1044484   ;;  %s2048_s5 = smov [#allocation14]  }
  0x25   :  { %v1613_v21 = vld [vmem:[#allocation11 + $0x20] sm:$0xf]  ;;  %v1753_v22 = vld [vmem:[#allocation11 + $0x24] sm:$0xf0]  ;;  %v1605_v25 = vld [vmem:[#allocation11 + $0x10] sm:$0xf] }
  0x26   :  { %v1614_v24 = vor.u32 %v1753_v22, %v1613_v21  ;;  %v1751_v26 = vld [vmem:[#allocation11 + $0x14] sm:$0xf0]  ;;  %v1732_v27 = vld [vmem:[%s2555_s0] sm:$0xff]  ;;  %v1597_v29 = vld [vmem:[#allocation11] sm:$0xf]  ;;  %vm988_vm6 = vcmask 1045509  }
  0x27   :  { %415 = vmatpush.bf16.msra.mxu2 %v1646_v8  ;;  %v1606_v28 = vor.u32 %v1751_v26, %v1605_v25  ;;  %v1749_v30 = vld [vmem:[#allocation11 + $0x4] sm:$0xf0]  ;;  %v162_v31 = vld [vmem:[#allocation7] sm:$0xf]  ;;  %v146_v33 = vld [vmem:[%s2555_s0] sm:$0xff]   ;;  %vm991_vm7 = vcmask 1046534  }
  0x28   :  { %213 = vmatpush.bf16.msra.mxu0 %v1737_v7  ;;  %v1598_v32 = vor.u32 %v1749_v30, %v1597_v29  ;;  %v1781_v34 = vld [vmem:[#allocation5] sm:$0xff]   ;;  %v442_v37 = vunpack.c.l.bf16 %v146_v33  ;;  %v443_v38 = vunpack.c.h.bf16 %v146_v33  ;;  %v150_v55 = vld [vmem:[%s2555_s0 + $0x10] sm:$0xff]   ;;  %v152_v3 = vld [vmem:[%s2555_s0 + $0x18] sm:$0xff]   ;;  %vm994_vm8 = vcmask 1047559   ;;  %s1516_s10 = sshll.u32 %s2048_s5, 4  ;;  %s1518_s29 = sshll.u32 %s2567_s12, 4  ;;  %s1517_s10 = int_to_ptr.vmem [resolvable:$true] %s1516_s10  ;;  %s1519_s29 = int_to_ptr.hbm [resolvable:$true] %s1518_s29 }
  0x29   :  { %v2171_v35 = vunpack.c.l.bf16 %v1781_v34  ;;  %v2173_v36 = vunpack.c.h.bf16 %v1781_v34  ;;  %v148_v45 = vld [vmem:[%s2555_s0 + $0x8] sm:$0xff]   ;;  %v446_v57 = vunpack.c.l.bf16 %v150_v55  ;;  %v447_v58 = vunpack.c.h.bf16 %v150_v55  ;;  %v1746_v62 = vld [vmem:[#allocation8 + $0x30] sm:$0xff]  ;;  %v1745_v9 = vld [vmem:[#allocation8 + $0x28] sm:$0xff] }
  0x2a   :  { %v444_v47 = vunpack.c.l.bf16 %v148_v45  ;;  %v445_v48 = vunpack.c.h.bf16 %v148_v45  ;;  %v1747_v61 = vld [vmem:[#allocation8 + $0x38] sm:$0xff]  ;;  %v448_v5 = vunpack.c.l.bf16 %v152_v3  ;;  %v449_v6 = vunpack.c.h.bf16 %v152_v3  ;;  %v1744_v13 = vld [vmem:[#allocation8 + $0x20] sm:$0xff]  ;;  %v1742_v26 = vld [vmem:[#allocation8 + $0x10] sm:$0xff] }
  0x2b   :  { %416 = vmatpush.bf16.msra.mxu2 %v1638_v12  ;;  %v460_v39 = vadd.f32 %v2171_v35, %v442_v37  ;;  %v461_v40 = vadd.f32 %v2173_v36, %v443_v38  ;;  %v464_v59 = vadd.f32 %v2171_v35, %v446_v57  ;;  %v465_v60 = vadd.f32 %v2173_v36, %v447_v58  ;;  %v1762_v10 = vld [vmem:[#allocation11 + $0x74] sm:$0xf]  ;;  %v1756_v33 = vld [vmem:[#allocation11 + $0x44] sm:$0xf]  ;;  %v1631_v34 = vld [vmem:[#allocation11 + $0x48] sm:$0xf0] }
  0x2c   :  { %214 = vmatpush.bf16.msra.mxu0 %v1736_v11  ;;  %v462_v49 = vadd.f32 %v2171_v35, %v444_v47  ;;  %v463_v50 = vadd.f32 %v2173_v36, %v445_v48  ;;  %299 = vmatpush.bf16.msra.mxu1 %v1747_v61  ;;  %v466_v7 = vadd.f32 %v2171_v35, %v448_v5  ;;  %v1655_v11 = vld [vmem:[#allocation11 + $0x78] sm:$0xf0]  ;;  %v154_v25 = vld [vmem:[%s2555_s0 + $0x20] sm:$0xff]   ;;  %v1615_v45 = vld [vmem:[#allocation11 + $0x28] sm:$0xf0] }
  0x2d   :  { %v476_v41 = vpack.c.bf16 %v460_v39, %v460_v39  ;;  %v477_v42 = vpack.c.bf16 %v461_v40, %v461_v40  ;;  %v480_v63 = vpack.c.bf16 %v464_v59, %v464_v59  ;;  %v481_v0 = vpack.c.bf16 %v465_v60, %v465_v60  ;;  %v1743_v21 = vld [vmem:[#allocation8 + $0x18] sm:$0xff]  ;;  %v1740_v40 = vld [vmem:[#allocation8] sm:$0xff]  ;;  %v1599_v61 = vld [vmem:[#allocation11 + $0x8] sm:$0xf0] }
  0x2e   :  { %v478_v51 = vpack.c.bf16 %v462_v49, %v462_v49  ;;  %v479_v52 = vpack.c.bf16 %v463_v50, %v463_v50  ;;  %v1658_v14 = vor.u32 %v1762_v10, %v1655_v11  ;;  %v451_v29 = vunpack.c.h.bf16 %v154_v25  ;;  %v1754_v38 = vld [vmem:[#allocation11 + $0x34] sm:$0xf]  ;;  %v1623_v39 = vld [vmem:[#allocation11 + $0x38] sm:$0xf0]  ;;  %v1748_v60 = vld [vmem:[#allocation11 + $0x4] sm:$0xf] }
  0x2f   :  { %417 = vmatpush.bf16.msra.mxu2 %v1630_v16  ;;  %v508_v43 = vunpack.c.l.b16 %v476_v41  ;;  %v509_v44 = vunpack.c.l.b16 %v477_v42  ;;  %v512_v1 = vunpack.c.l.b16 %v480_v63  ;;  %v513_v2 = vunpack.c.l.b16 %v481_v0  ;;  %v156_v50 = vld [vmem:[%s2555_s0 + $0x28] sm:$0xff]   ;;  %v158_v3 = vld [vmem:[%s2555_s0 + $0x30] sm:$0xff]  }
  0x30   :  { %215 = vmatpush.bf16.msra.mxu0 %v1735_v15  ;;  %v510_v53 = vunpack.c.l.b16 %v478_v51  ;;  %v511_v54 = vunpack.c.l.b16 %v479_v52  ;;  %300 = vmatpush.bf16.msra.mxu1 %v1746_v62  ;;  %v1647_v15 = vld [vmem:[#allocation11 + $0x68] sm:$0xf0]  ;;  %v1634_v37 = vor.u32 %v1756_v33, %v1631_v34  ;;  %v1626_v41 = vor.u32 %v1754_v38, %v1623_v39  ;;  %v1607_v55 = vld [vmem:[#allocation11 + $0x18] sm:$0xf0]  ;;  %v1766_v33 = vld [vmem:[%s2563_s8 + $0x10] sm:$0xff] }
  0x31   :  { %v2180_v46 = vpack.c.b16 %v509_v44, %v508_v43  ;;  %427 = vmatpush.bf16.msra.mxu3 %v1658_v14  ;;  %v1752_v44 = vld [vmem:[#allocation11 + $0x24] sm:$0xf]  ;;  %v452_v52 = vunpack.c.l.bf16 %v156_v50  ;;  %v1602_v62 = vor.u32 %v1748_v60, %v1599_v61  ;;  %v1765_v34 = vld [vmem:[%s2563_s8 + $0x8] sm:$0xff]  ;;  %v1764_v38 = vld [vmem:[%s2563_s8] sm:$0xff] }
  0x32   :  { %v2188_v56 = vpack.c.b16 %v511_v54, %v510_v53  ;;  %v1618_v47 = vor.u32 %v1752_v44, %v1615_v45  ;;  %v453_v53 = vunpack.c.h.bf16 %v156_v50  ;;  %v1750_v54 = vld [vmem:[#allocation11 + $0x14] sm:$0xf] }
  0x33   :  { %418 = vmatpush.bf16.msra.mxu2 %v1622_v20  ;;  %v1610_v57 = vor.u32 %v1750_v54, %v1607_v55  ;;  %v470_v58 = vadd.f32 %v2171_v35, %v452_v52 }
  0x34   :  { %216 = vmatpush.bf16.msra.mxu0 %v1734_v19  ;;  %301 = vmatpush.bf16.msra.mxu1 %v1745_v9  ;;  %v1758_v19 = vld [vmem:[#allocation11 + $0x54] sm:$0xf]  ;;  %v471_v59 = vadd.f32 %v2173_v36, %v453_v53 }
  0x35   :  { %v486_v63 = vpack.c.bf16 %v470_v58, %v470_v58 }
  0x36   :  { %v487_v0 = vpack.c.bf16 %v471_v59, %v471_v59 }
  0x37   :  { %419 = vmatpush.bf16.msra.mxu2 %v1614_v24 }
  0x38   :  { %217 = vmatpush.bf16.msra.mxu0 %v1733_v23  ;;  %302 = vmatpush.bf16.msra.mxu1 %v1744_v13 }
  0x3b   :  { %420 = vmatpush.bf16.msra.mxu2 %v1606_v28 }
  0x3c   :  { %218 = vmatpush.bf16.msra.mxu0 %v1732_v27  ;;  %303 = vmatpush.bf16.msra.mxu1 %v1743_v21 }
  0x3f   :  { %219 = vmatmul.bf16.vlgmr.msra.gmra.mxu0 %v162_v31  ;;  %421 = vmatpush.bf16.msra.mxu2 %v1598_v32  ;;  %v469_v31 = vadd.f32 %v2173_v36, %v451_v29 }
  0x40   :  { %540 = vmatpush.bf16.msrb.mxu0 %v1654_v4  ;;  %v2196_v4 = vpack.c.b16 %v513_v2, %v512_v1  ;;  %304 = vmatpush.bf16.msra.mxu1 %v1742_v26  ;;  %v518_v1 = vunpack.c.l.b16 %v486_v63  ;;  %v519_v2 = vunpack.c.l.b16 %v487_v0 }
  0x41   :  { %v485_v43 = vpack.c.bf16 %v469_v31, %v469_v31 }
  0x42   :  { %v529_v5 = vpack.c.b16 %v519_v2, %v518_v1 }
  0x43   :  { %v517_v49 = vunpack.c.l.b16 %v485_v43 }
  0x44   :  { %541 = vmatpush.bf16.msrb.mxu0 %v1646_v8  ;;  %v467_v8 = vadd.f32 %v2173_v36, %v449_v6  ;;  %v454_v6 = vunpack.c.l.bf16 %v158_v3 }
  0x46   :  { %v483_v17 = vpack.c.bf16 %v467_v8, %v467_v8  ;;  %v472_v8 = vadd.f32 %v2171_v35, %v454_v6 }
  0x48   :  { %542 = vmatpush.bf16.msrb.mxu0 %v1638_v12  ;;  %v1760_v12 = vld [vmem:[#allocation11 + $0x64] sm:$0xf]  ;;  %v515_v23 = vunpack.c.l.b16 %v483_v17  ;;  %v488_v10 = vpack.c.bf16 %v472_v8, %v472_v8 }
  0x49   :  { %v1650_v18 = vor.u32 %v1760_v12, %v1647_v15 }
  0x4a   :  { %v520_v12 = vunpack.c.l.b16 %v488_v10 }
  0x4b   :  { %428 = vmatpush.bf16.msra.mxu3 %v1650_v18 }
  0x4c   :  { %543 = vmatpush.bf16.msrb.mxu0 %v1630_v16  ;;  %v482_v16 = vpack.c.bf16 %v466_v7, %v466_v7  ;;  %v455_v7 = vunpack.c.h.bf16 %v158_v3 }
  0x4e   :  { %v514_v22 = vunpack.c.l.b16 %v482_v16  ;;  %v473_v9 = vadd.f32 %v2173_v36, %v455_v7 }
  0x50   :  { %544 = vmatpush.bf16.msrb.mxu0 %v1622_v20  ;;  %v1639_v20 = vld [vmem:[#allocation11 + $0x58] sm:$0xf0]  ;;  %v2204_v27 = vpack.c.b16 %v515_v23, %v514_v22  ;;  %v489_v11 = vpack.c.bf16 %v473_v9, %v473_v9 }
  0x52   :  { %v521_v13 = vunpack.c.l.b16 %v489_v11 }
  0x54   :  { %545 = vmatpush.bf16.msrb.mxu0 %v1614_v24  ;;  %v1642_v24 = vor.u32 %v1758_v19, %v1639_v20  ;;  %v530_v15 = vpack.c.b16 %v521_v13, %v520_v12 }
  0x56   :  { %429 = vmatpush.bf16.msra.mxu3 %v1642_v24 }
  0x58   :  { %546 = vmatpush.bf16.msrb.mxu0 %v1606_v28  ;;  %v450_v28 = vunpack.c.l.bf16 %v154_v25 }
  0x5a   :  { %v468_v30 = vadd.f32 %v2171_v35, %v450_v28  ;;  %430 = vmatpush.bf16.msra.mxu3 %v1634_v37 }
  0x5c   :  { %547 = vmatpush.bf16.msrb.mxu0 %v1598_v32  ;;  %v1741_v32 = vld [vmem:[#allocation8 + $0x8] sm:$0xff]  ;;  %v484_v42 = vpack.c.bf16 %v468_v30, %v468_v30 }
  0x5d   :  { %305 = vmatpush.bf16.msra.mxu1 %v1741_v32 }
  0x5e   :  { %431 = vmatpush.bf16.msra.mxu3 %v1626_v41  ;;  %v516_v48 = vunpack.c.l.b16 %v484_v42  ;;  %v1797_v42 = vld [vmem:[#allocation10] ss:$0 sm:$0xff] }
  0x5f   :  { %548 = vmatmul.bf16.vlgmr.msrb.gmra.mxu0 %v2180_v46 }
  0x60   :  { %v2212_v51 = vpack.c.b16 %v517_v49, %v516_v48 }
  0x61   :  { %306 = vmatpush.bf16.msra.mxu1 %v1740_v40 }
  0x62   :  { %432 = vmatpush.bf16.msra.mxu3 %v1618_v47 }
  0x65   :  { %589 = vmatpush.bf16.msrb.mxu1 %v1658_v14  ;;  %v160_v14 = vld [vmem:[%s2555_s0 + $0x38] sm:$0xff]  }
  0x66   :  { %433 = vmatpush.bf16.msra.mxu3 %v1610_v57  ;;  %v456_v16 = vunpack.c.l.bf16 %v160_v14  ;;  %v457_v17 = vunpack.c.h.bf16 %v160_v14 }
  0x68   :  { %v474_v20 = vadd.f32 %v2171_v35, %v456_v16  ;;  %v475_v21 = vadd.f32 %v2173_v36, %v457_v17  ;;  %v1771_v35 = vld [vmem:[%s2563_s8 + $0x38] sm:$0xff]  ;;  %v1770_v36 = vld [vmem:[%s2563_s8 + $0x30] sm:$0xff] }
  0x69   :  { %590 = vmatpush.bf16.msrb.mxu1 %v1650_v18  ;;  %v1796_v18 = vld [vmem:[#allocation2] ss:$0 sm:$0xff] }
  0x6a   :  { %434 = vmatpush.bf16.msra.mxu3 %v1602_v62  ;;  %v491_v25 = vpack.c.bf16 %v475_v21, %v475_v21 }
  0x6c   :  { %v523_v30 = vunpack.c.l.b16 %v491_v25 }
  0x6d   :  { %591 = vmatpush.bf16.msrb.mxu1 %v1642_v24  ;;  %v490_v24 = vpack.c.bf16 %v474_v20, %v474_v20 }
  0x6e   :  { %821 = vmatpush.bf16.msrb.mxu3 %v1771_v35 }
  0x6f   :  { %553 = vmatmul.bf16.gmra.mxu0 %v2188_v56  ;;  %v522_v29 = vunpack.c.l.b16 %v490_v24 }
  0x71   :  { %592 = vmatpush.bf16.msrb.mxu1 %v1634_v37  ;;  %v531_v31 = vpack.c.b16 %v523_v30, %v522_v29 }
  0x72   :  { %822 = vmatpush.bf16.msrb.mxu3 %v1770_v36 }
  0x75   :  { %593 = vmatpush.bf16.msrb.mxu1 %v1626_v41  ;;  %v2259_v41 = vld [vmem:[%s2562_s7] sm:$0x3] }
  0x76   :  { %v2262_v43 = vperm.slane %v2259_v41, 0 }
  0x79   :  { %594 = vmatpush.bf16.msrb.mxu1 %v1618_v47 }
  0x7d   :  { %595 = vmatpush.bf16.msrb.mxu1 %v1610_v57 }
  0x7f   :  { %558 = vmatmul.bf16.gmra.mxu0 %v2196_v4 }
  0x81   :  { %596 = vmatpush.bf16.msrb.mxu1 %v1602_v62 }
  0x8f   :  { %563 = vmatmul.bf16.gmra.mxu0 %v2204_v27 }
  0x9f   :  { %568 = vmatmul.bf16.gmra.mxu0 %v2212_v51 }
  0xaf   :  { %573 = vmatmul.bf16.gmra.mxu0 %v529_v5 }
  0xbc   :  { %v220_v19 = vpop.f32.mrf.mxu0 }
  0xbd   :  { %v224_v22 = vmul.f32 0.0625, %v220_v19 }
  0xbf   :  { %578 = vmatmul.bf16.gmra.mxu0 %v530_v15  ;;  %v229_v23 = vadd.f32 %v1796_v18, %v224_v22 }
  0xc1   :  { %v230_v26 = vpack.c.bf16 %v229_v23, %v229_v23 }
  0xc3   :  { %307 = vmatmul.bf16.vlgmr.msra.gmra.mxu1 %v230_v26  ;;  %422 = vmatmul.bf16.vlgmr.msra.gmra.mxu2 %v230_v26 }
  0xc4   :  { %435 = vmatmul.bf16.vlgmr.msra.gmra.mxu3 %v230_v26  ;;  %v222_v28 = vpop.f32.mrf.mxu0  ;;  %704 = vmatpush.bf16.msra.mxu1 %v1771_v35 }
  0xc8   :  { %705 = vmatpush.bf16.msra.mxu1 %v1770_v36 }
  0xcf   :  { %583 = vmatmul.bf16.gmra.mxu0 %v531_v31 }
  0xd3   :  { %597 = vmatmul.bf16.vlgmr.msrb.gmra.mxu1 %v2180_v46  ;;  %v1769_v46 = vld [vmem:[%s2563_s8 + $0x28] sm:$0xff] }
  0xd4   :  { %823 = vmatpush.bf16.msrb.mxu3 %v1769_v46  ;;  %706 = vmatpush.bf16.msra.mxu1 %v1769_v46 }
  0xdc   :  { %v549_v32 = vpop.f32.mrf.mxu0 }
  0xdd   :  { %v550_v47 = vadd.f32 %v549_v32, %v2262_v43 }
  0xe3   :  { %602 = vmatmul.bf16.gmra.mxu1 %v2188_v56  ;;  %v1768_v56 = vld [vmem:[%s2563_s8 + $0x20] sm:$0xff] }
  0xe4   :  { %824 = vmatpush.bf16.msrb.mxu3 %v1768_v56  ;;  %707 = vmatpush.bf16.msra.mxu1 %v1768_v56 }
  0xf3   :  { %607 = vmatmul.bf16.gmra.mxu1 %v2196_v4  ;;  %v1767_v4 = vld [vmem:[%s2563_s8 + $0x18] sm:$0xff] }
  0xf4   :  { %825 = vmatpush.bf16.msrb.mxu3 %v1767_v4  ;;  %708 = vmatpush.bf16.msra.mxu1 %v1767_v4 }
  0xf8   :  { %826 = vmatpush.bf16.msrb.mxu3 %v1766_v33  ;;  %709 = vmatpush.bf16.msra.mxu1 %v1766_v33 }
  0xfc   :  { %827 = vmatpush.bf16.msrb.mxu3 %v1765_v34  ;;  %710 = vmatpush.bf16.msra.mxu1 %v1765_v34 }
 0x100   :  { %828 = vmatpush.bf16.msrb.mxu3 %v1764_v38  ;;  %711 = vmatpush.bf16.msra.mxu1 %v1764_v38 }
 0x103   :  { %612 = vmatmul.bf16.gmra.mxu1 %v2204_v27  ;;  %v551_v27 = vpop.f32.mrf.mxu0 }
 0x104   :  { %v552_v48 = vadd.f32 %v551_v27, %v2262_v43 }
 0x10b   :  { %v554_v37 = vpop.f32.mrf.mxu0 }
 0x10c   :  { %v555_v63 = vadd.f32 %v554_v37, %v2262_v43 }
 0x113   :  { %617 = vmatmul.bf16.gmra.mxu1 %v2212_v51  ;;  %v556_v39 = vpop.f32.mrf.mxu0 }
 0x114   :  { %v557_v0 = vadd.f32 %v556_v39, %v2262_v43 }
 0x11b   :  { %v559_v40 = vpop.f32.mrf.mxu0 }
 0x11c   :  { %v560_v19 = vadd.f32 %v559_v40, %v2262_v43 }
 0x123   :  { %622 = vmatmul.bf16.gmra.mxu1 %v529_v5  ;;  %v561_v50 = vpop.f32.mrf.mxu0 }
 0x124   :  { %v562_v20 = vadd.f32 %v561_v50, %v2262_v43 }
 0x12b   :  { %v564_v5 = vpop.f32.mrf.mxu0 }
 0x12c   :  { %v565_v32 = vadd.f32 %v564_v5, %v2262_v43 }
 0x133   :  { %627 = vmatmul.bf16.gmra.mxu1 %v530_v15  ;;  %v566_v17 = vpop.f32.mrf.mxu0 }
 0x134   :  { %v567_v46 = vadd.f32 %v566_v17, %v2262_v43 }
 0x13b   :  { %v569_v26 = vpop.f32.mrf.mxu0 }
 0x140   :  { %v308_v44 = vpop.f32.mrf.mxu1 }
 0x141   :  { %v2264_v45 = vadd.f32 %v1797_v42, %v308_v44 }
 0x143   :  { %632 = vmatmul.bf16.gmra.mxu1 %v531_v31  ;;  %v725_v49 = vperm.slane %v2264_v45, 0  ;;  %v718_v58 = vrot.slane %v2264_v45, 1  ;;  %v719_v16 = vrot.slane %v2264_v45, 2  ;;  %v720_v35 = vrot.slane %v2264_v45, 3  ;;  %v571_v27 = vpop.f32.mrf.mxu0 }
 0x144   :  { %v572_v50 = vadd.f32 %v571_v27, %v2262_v43 }
 0x145   :  { %v741_v51 = vmul.f32 %v725_v49, %v550_v47  ;;  %v742_v52 = vmul.f32 %v725_v49, %v552_v48  ;;  %v726_v2 = vperm.slane %v718_v58, 0  ;;  %v727_v22 = vperm.slane %v719_v16, 0 }
 0x146   :  { %v423_v53 = vpop.f32.mrf.mxu2  ;;  %v728_v4 = vperm.slane %v720_v35, 0  ;;  %v721_v47 = vrot.slane %v2264_v45, 4  ;;  %v570_v49 = vadd.f32 %v569_v26, %v2262_v43 }
 0x147   :  { %v2269_v54 = vpop.f32.mrf.mxu3  ;;  %v757_v55 = vpack.c.bf16 %v741_v51, %v741_v51  ;;  %v758_v57 = vpack.c.bf16 %v742_v52, %v742_v52  ;;  %v424_v60 = vadd.f32 %v423_v53, %v2262_v43  ;;  %v743_v8 = vmul.f32 %v726_v2, %v555_v63 }
 0x148   :  { %v310_v59 = vpop.f32.mrf.mxu1  ;;  %v744_v9 = vmul.f32 %v726_v2, %v557_v0  ;;  %v745_v23 = vmul.f32 %v727_v22, %v560_v19  ;;  %v746_v24 = vmul.f32 %v727_v22, %v562_v20  ;;  %v747_v33 = vmul.f32 %v728_v4, %v565_v32 }
 0x149   :  { %v789_v61 = vunpack.c.l.b16 %v757_v55  ;;  %v790_v62 = vunpack.c.l.b16 %v758_v57  ;;  %v654_v3 = vmul.f32 %v424_v60, %v2264_v45  ;;  %v759_v12 = vpack.c.bf16 %v743_v8, %v743_v8 }
 0x14a   :  { %v760_v13 = vpack.c.bf16 %v744_v9, %v744_v9  ;;  %v761_v28 = vpack.c.bf16 %v745_v23, %v745_v23  ;;  %v762_v29 = vpack.c.bf16 %v746_v24, %v746_v24  ;;  %v748_v34 = vmul.f32 %v728_v4, %v567_v46 }
 0x14b   :  { %v805_v1 = vpack.c.b16 %v790_v62, %v789_v61  ;;  %v655_v11 = vpack.c.bf16 %v654_v3, %v654_v3  ;;  %v791_v14 = vunpack.c.l.b16 %v759_v12  ;;  %v763_v38 = vpack.c.bf16 %v747_v33, %v747_v33  ;;  %v574_v40 = vpop.f32.mrf.mxu0 }
 0x14c   :  { %v792_v15 = vunpack.c.l.b16 %v760_v13  ;;  %v793_v30 = vunpack.c.l.b16 %v761_v28  ;;  %v794_v31 = vunpack.c.l.b16 %v762_v29  ;;  %v764_v39 = vpack.c.bf16 %v748_v34, %v748_v34 }
 0x14d   :  { %829 = vmatmul.bf16.vlgmr.msrb.gmra.mxu3 %v805_v1  ;;  %v795_v42 = vunpack.c.l.b16 %v763_v38  ;;  %v729_v52 = vperm.slane %v721_v47, 0  ;;  %v722_v63 = vrot.slane %v2264_v45, 5  ;;  %v575_v2 = vadd.f32 %v574_v40, %v2262_v43 }
 0x14e   :  { %v425_v6 = vpop.f32.mrf.mxu2  ;;  %v806_v21 = vpack.c.b16 %v792_v15, %v791_v14  ;;  %v807_v56 = vpack.c.b16 %v794_v31, %v793_v30  ;;  %v796_v44 = vunpack.c.l.b16 %v764_v39  ;;  %v723_v14 = vrot.slane %v2264_v45, 6 }
 0x14f   :  { %v438_v7 = vpop.f32.mrf.mxu3  ;;  %v749_v53 = vmul.f32 %v729_v52, %v570_v49  ;;  %v750_v55 = vmul.f32 %v729_v52, %v572_v50  ;;  %v730_v6 = vperm.slane %v722_v63, 0 }
 0x150   :  { %v2276_v10 = vpop.f32.mrf.mxu1  ;;  %v808_v51 = vpack.c.b16 %v796_v44, %v795_v42 }
 0x151   :  { %v765_v59 = vpack.c.bf16 %v749_v53, %v749_v53  ;;  %v766_v60 = vpack.c.bf16 %v750_v55, %v750_v55  ;;  %v751_v7 = vmul.f32 %v730_v6, %v575_v2 }
 0x153   :  { %712 = vmatmul.bf16.vlgmr.msra.gmra.mxu1 %v655_v11  ;;  %v576_v57 = vpop.f32.mrf.mxu0  ;;  %v797_v61 = vunpack.c.l.b16 %v765_v59  ;;  %v798_v62 = vunpack.c.l.b16 %v766_v60  ;;  %v767_v11 = vpack.c.bf16 %v751_v7, %v751_v7 }
 0x154   :  { %v577_v3 = vadd.f32 %v576_v57, %v2262_v43 }
 0x155   :  { %v809_v5 = vpack.c.b16 %v798_v62, %v797_v61  ;;  %v799_v15 = vunpack.c.l.b16 %v767_v11 }
 0x156   :  { %v752_v8 = vmul.f32 %v730_v6, %v577_v3 }
 0x158   :  { %v2279_v18 = vpop.f32.mrf.mxu1  ;;  %v768_v12 = vpack.c.bf16 %v752_v8, %v752_v8 }
 0x15a   :  { %v800_v16 = vunpack.c.l.b16 %v768_v12 }
 0x15b   :  { %v579_v1 = vpop.f32.mrf.mxu0 }
 0x15c   :  { %v580_v19 = vadd.f32 %v579_v1, %v2262_v43  ;;  %v810_v22 = vpack.c.b16 %v800_v16, %v799_v15 }
 0x15d   :  { %834 = vmatmul.bf16.gmra.mxu3 %v806_v21  ;;  %v731_v21 = vperm.slane %v723_v14, 0 }
 0x15f   :  { %v753_v26 = vmul.f32 %v731_v21, %v580_v19 }
 0x160   :  { %v2283_v25 = vpop.f32.mrf.mxu1 }
 0x161   :  { %v769_v30 = vpack.c.bf16 %v753_v26, %v753_v26 }
 0x163   :  { %v581_v13 = vpop.f32.mrf.mxu0  ;;  %v801_v31 = vunpack.c.l.b16 %v769_v30 }
 0x164   :  { %v582_v20 = vadd.f32 %v581_v13, %v2262_v43 }
 0x166   :  { %v754_v24 = vmul.f32 %v731_v21, %v582_v20 }
 0x168   :  { %v2286_v36 = vpop.f32.mrf.mxu1  ;;  %v770_v29 = vpack.c.bf16 %v754_v24, %v754_v24 }
 0x16a   :  { %v802_v35 = vunpack.c.l.b16 %v770_v29 }
 0x16b   :  { %v584_v23 = vpop.f32.mrf.mxu0 }
 0x16c   :  { %v811_v27 = vpack.c.b16 %v802_v35, %v801_v31  ;;  %v585_v33 = vadd.f32 %v584_v23, %v2262_v43 }
 0x16d   :  { %839 = vmatmul.bf16.gmra.mxu3 %v807_v56  ;;  %v724_v56 = vrot.slane %v2264_v45, 7 }
 0x16f   :  { %v732_v34 = vperm.slane %v724_v56, 0 }
 0x170   :  { %v2290_v37 = vpop.f32.mrf.mxu1 }
 0x171   :  { %v755_v40 = vmul.f32 %v732_v34, %v585_v33 }
 0x173   :  { %v586_v32 = vpop.f32.mrf.mxu0  ;;  %v771_v44 = vpack.c.bf16 %v755_v40, %v755_v40 }
 0x174   :  { %v587_v4 = vadd.f32 %v586_v32, %v2262_v43 }
 0x175   :  { %v803_v50 = vunpack.c.l.b16 %v771_v44 }
 0x176   :  { %v756_v38 = vmul.f32 %v732_v34, %v587_v4 }
 0x178   :  { %v2293_v48 = vpop.f32.mrf.mxu1  ;;  %v772_v42 = vpack.c.bf16 %v756_v38, %v756_v38 }
 0x17a   :  { %v804_v47 = vunpack.c.l.b16 %v772_v42 }
 0x17d   :  { %844 = vmatmul.bf16.gmra.mxu3 %v808_v51  ;;  %v812_v51 = vpack.c.b16 %v804_v47, %v803_v50 }
 0x180   :  { %v2297_v58 = vpop.f32.mrf.mxu1 }
 0x188   :  { %v2300_v0 = vpop.f32.mrf.mxu1 }
 0x18d   :  { %849 = vmatmul.bf16.gmra.mxu3 %v809_v5 }
 0x190   :  { %v2304_v9 = vpop.f32.mrf.mxu1 }
 0x198   :  { %v2307_v17 = vpop.f32.mrf.mxu1 }
 0x19d   :  { %854 = vmatmul.bf16.gmra.mxu3 %v810_v22 }
 0x1a0   :  { %v2311_v28 = vpop.f32.mrf.mxu1 }
 0x1a8   :  { %v2313_v46 = vpop.f32.mrf.mxu1 }
 0x1ad   :  { %859 = vmatmul.bf16.gmra.mxu3 %v811_v27 }
 0x1b0   :  { %v2318_v39 = vpop.f32.mrf.mxu1 }
 0x1b8   :  { %v2320_v49 = vpop.f32.mrf.mxu1 }
 0x1bd   :  { %864 = vmatmul.bf16.gmra.mxu3 %v812_v51 }
 0x1c0   :  { %v2322_v45 = vpop.f32.mrf.mxu1 }
 0x1c8   :  { %v2324_v52 = vpop.f32.mrf.mxu1 }
 0x1d0   :  { %v2326_v53 = vpop.f32.mrf.mxu1  ;;  %v830_v43 = vpop.f32.mrf.mxu3 }
 0x1d1   :  { %v871_v59 = vsel %vm870_vm0, %v830_v43, -inf  ;;  %v944_v35 = vrot.slane %v2326_v53, 1 }
 0x1d8   :  { %v715_v55 = vpop.f32.mrf.mxu1  ;;  %v832_v57 = vpop.f32.mrf.mxu3 }
 0x1d9   :  { %v872_v60 = vsel %vm870_vm0, %v832_v57, -inf }
 0x1da   :  { %v873_v61 = vmax.f32 %v871_v59, %v872_v60 }
 0x1dc   :  { %v874_v62 = vrot.slane %v873_v61, 4 }
 0x1de   :  { %v875_v63 = vmax.f32 %v873_v61, %v874_v62 }
 0x1e0   :  { %v876_v1 = vrot.slane %v875_v63, 2  ;;  %v835_v2 = vpop.f32.mrf.mxu3 }
 0x1e1   :  { %v880_v11 = vsel %vm870_vm0, %v835_v2, -inf }
 0x1e2   :  { %v877_v3 = vmax.f32 %v875_v63, %v876_v1 }
 0x1e4   :  { %v878_v5 = vrot.slane %v877_v3, 1 }
 0x1e6   :  { %v879_v6 = vmax.f32 %v877_v3, %v878_v5 }
 0x1e8   :  { %v959_v7 = vmax.f32 %v879_v6, %v2326_v53  ;;  %v837_v8 = vpop.f32.mrf.mxu3 }
 0x1e9   :  { %v881_v12 = vsel %vm870_vm0, %v837_v8, -inf }
 0x1ea   :  { %v1000_v13 = vperm.slane %v959_v7, 0  ;;  %v882_v14 = vmax.f32 %v880_v11, %v881_v12 }
 0x1ec   :  { %v1008_v15 = vsub.f32 %v830_v43, %v1000_v13  ;;  %v1009_v16 = vsub.f32 %v832_v57, %v1000_v13  ;;  %v883_v19 = vrot.slane %v882_v14, 4 }
 0x1ee   :  { %v1024_v20 = vmul.f32 1.442695, %v1008_v15  ;;  %v1026_v21 = vmul.f32 1.442695, %v1009_v16  ;;  %v884_v22 = vmax.f32 %v882_v14, %v883_v19 }
 0x1f0   :  { %1799 = vpow2.f32 %v1024_v20  ;;  %v885_v23 = vrot.slane %v884_v22, 2  ;;  %v840_v24 = vpop.f32.mrf.mxu3 }
 0x1f1   :  { %1801 = vpow2.f32 %v1026_v21  ;;  %v889_v38 = vsel %vm870_vm0, %v840_v24, -inf }
 0x1f2   :  { %v886_v26 = vmax.f32 %v884_v22, %v885_v23 }
 0x1f4   :  { %v887_v29 = vrot.slane %v886_v26, 1 }
 0x1f6   :  { %v2333_v30 = vpop.eup %1799  ;;  %v888_v31 = vmax.f32 %v886_v26, %v887_v29 }
 0x1f7   :  { %v2336_v32 = vpop.eup %1801  ;;  %v1056_v56 = vsel %vm870_vm0, %v2333_v30, 0.0 }
 0x1f8   :  { %v1057_v4 = vsel %vm870_vm0, %v2336_v32, 0.0  ;;  %v960_v27 = vmax.f32 %v888_v31, %v944_v35  ;;  %v842_v33 = vpop.f32.mrf.mxu3 }
 0x1f9   :  { %v1058_v34 = vadd.f32 %v1057_v4, %v1056_v56  ;;  %v890_v40 = vsel %vm870_vm0, %v842_v33, -inf }
 0x1fa   :  { %v975_v42 = vrot.slane %v960_v27, 7  ;;  %v1001_v44 = vperm.slane %v960_v27, 0  ;;  %v891_v47 = vmax.f32 %v889_v38, %v890_v40 }
 0x1fb   :  { %v1059_v63 = vrot.slane %v1058_v34, 4 }
 0x1fc   :  { %v977_v50 = vsel %vm976_vm1, %v975_v42, %v959_v7  ;;  %v1010_v51 = vsub.f32 %v835_v2, %v1001_v44  ;;  %v1011_v43 = vsub.f32 %v837_v8, %v1001_v44  ;;  %v892_v55 = vrot.slane %v891_v47, 4 }
 0x1fd   :  { %v1060_v5 = vadd.f32 %v1059_v63, %v1058_v34  ;;  %v945_v7 = vrot.slane %v2326_v53, 2 }
 0x1fe   :  { %v1028_v57 = vmul.f32 1.442695, %v1010_v51  ;;  %v1030_v59 = vmul.f32 1.442695, %v1011_v43  ;;  %v893_v60 = vmax.f32 %v891_v47, %v892_v55 }
 0x1ff   :  { %v1061_v15 = vrot.slane %v1060_v5, 2 }
 0x200   :  { %1803 = vpow2.f32 %v1028_v57  ;;  %v894_v61 = vrot.slane %v893_v60, 2  ;;  %v2345_v62 = vpop.f32.mrf.mxu3 }
 0x201   :  { %1805 = vpow2.f32 %v1030_v59  ;;  %v898_v19 = vsel %vm870_vm0, %v2345_v62, -inf  ;;  %v1062_v4 = vadd.f32 %v1061_v15, %v1060_v5 }
 0x202   :  { %v895_v1 = vmax.f32 %v893_v60, %v894_v61 }
 0x203   :  { %v1063_v44 = vrot.slane %v1062_v4, 1 }
 0x204   :  { %v896_v3 = vrot.slane %v895_v1, 1 }
 0x205   :  { %v1064_v57 = vadd.f32 %v1063_v44, %v1062_v4  ;;  %v947_v44 = vrot.slane %v2326_v53, 4 }
 0x206   :  { %v2347_v6 = vpop.eup %1803  ;;  %v897_v11 = vmax.f32 %v895_v1, %v896_v3 }
 0x207   :  { %v2350_v2 = vpop.eup %1805  ;;  %v1065_v8 = vsel %vm870_vm0, %v2347_v6, 0.0 }
 0x208   :  { %v1066_v12 = vsel %vm870_vm0, %v2350_v2, 0.0  ;;  %v961_v13 = vmax.f32 %v897_v11, %v945_v7  ;;  %v847_v14 = vpop.f32.mrf.mxu3 }
 0x209   :  { %v1067_v16 = vadd.f32 %v1066_v12, %v1065_v8  ;;  %v899_v20 = vsel %vm870_vm0, %v847_v14, -inf }
 0x20a   :  { %v978_v21 = vrot.slane %v961_v13, 6  ;;  %v1002_v22 = vperm.slane %v961_v13, 0  ;;  %v900_v23 = vmax.f32 %v898_v19, %v899_v20 }
 0x20b   :  { %v1068_v26 = vrot.slane %v1067_v16, 4 }
 0x20c   :  { %v980_v29 = vsel %vm979_vm2, %v978_v21, %v977_v50  ;;  %v2360_v31 = vsub.f32 %v840_v24, %v1002_v22  ;;  %v2362_v35 = vsub.f32 %v842_v33, %v1002_v22  ;;  %v901_v56 = vrot.slane %v900_v23, 4 }
 0x20d   :  { %v1069_v27 = vadd.f32 %v1068_v26, %v1067_v16  ;;  %v946_v24 = vrot.slane %v2326_v53, 3 }
 0x20e   :  { %v902_v34 = vmax.f32 %v900_v23, %v901_v56 }
 0x20f   :  { %v1070_v38 = vrot.slane %v1069_v27, 2 }
 0x210   :  { %v903_v40 = vrot.slane %v902_v34, 2  ;;  %v850_v42 = vpop.f32.mrf.mxu3 }
 0x211   :  { %v1071_v47 = vadd.f32 %v1070_v38, %v1069_v27  ;;  %v907_v7 = vsel %vm870_vm0, %v850_v42, -inf }
 0x212   :  { %v904_v51 = vmax.f32 %v902_v34, %v903_v40 }
 0x213   :  { %v1072_v43 = vrot.slane %v1071_v47, 1 }
 0x214   :  { %v905_v55 = vrot.slane %v904_v51, 1 }
 0x215   :  { %v1073_v59 = vadd.f32 %v1072_v43, %v1071_v47 }
 0x216   :  { %v906_v60 = vmax.f32 %v904_v51, %v905_v55 }
 0x217   :  { %v2366_v33 = vsel %vm976_vm1, %v1073_v59, %v1064_v57  ;;  %v948_v59 = vrot.slane %v2326_v53, 5 }
 0x218   :  { %v962_v50 = vmax.f32 %v906_v60, %v946_v24  ;;  %v852_v61 = vpop.f32.mrf.mxu3 }
 0x219   :  { %v908_v11 = vsel %vm870_vm0, %v852_v61, -inf }
 0x21a   :  { %v981_v63 = vrot.slane %v962_v50, 5  ;;  %v1003_v1 = vperm.slane %v962_v50, 0  ;;  %v909_v8 = vmax.f32 %v907_v7, %v908_v11 }
 0x21c   :  { %v2369_v3 = vsel %vm982_vm3, %v981_v63, %v980_v29  ;;  %v1015_v5 = vsub.f32 %v847_v14, %v1003_v1  ;;  %v910_v13 = vrot.slane %v909_v8, 4 }
 0x21e   :  { %v911_v15 = vmax.f32 %v909_v8, %v910_v13  ;;  %v1014_v8 = vsub.f32 %v2345_v62, %v1003_v1 }
 0x220   :  { %v855_v12 = vpop.f32.mrf.mxu3  ;;  %v912_v22 = vrot.slane %v911_v15, 2 }
 0x221   :  { %v916_v19 = vsel %vm870_vm0, %v855_v12, -inf }
 0x222   :  { %v913_v29 = vmax.f32 %v911_v15, %v912_v22 }
 0x224   :  { %v914_v27 = vrot.slane %v913_v29, 1 }
 0x226   :  { %v915_v38 = vmax.f32 %v913_v29, %v914_v27 }
 0x228   :  { %v857_v16 = vpop.f32.mrf.mxu3  ;;  %v2378_v57 = vmax.f32 %v915_v38, %v947_v44 }
 0x229   :  { %v917_v20 = vsel %vm870_vm0, %v857_v16, -inf }
 0x22a   :  { %v918_v21 = vmax.f32 %v916_v19, %v917_v20  ;;  %v1004_v63 = vperm.slane %v2378_v57, 0  ;;  %v1032_v19 = vmul.f32 1.442695, %v2360_v31 }
 0x22c   :  { %v919_v23 = vrot.slane %v918_v21, 4  ;;  %v1016_v20 = vsub.f32 %v850_v42, %v1004_v63  ;;  %v1017_v22 = vsub.f32 %v852_v61, %v1004_v63  ;;  %1807 = vpow2.f32 %v1032_v19 }
 0x22e   :  { %v920_v26 = vmax.f32 %v918_v21, %v919_v23  ;;  %v1034_v21 = vmul.f32 1.442695, %v2362_v35  ;;  %v1040_v38 = vmul.f32 1.442695, %v1016_v20  ;;  %v1042_v62 = vmul.f32 1.442695, %v1017_v22 }
 0x230   :  { %v921_v56 = vrot.slane %v920_v26, 2  ;;  %v860_v14 = vpop.f32.mrf.mxu3  ;;  %1809 = vpow2.f32 %v1034_v21 }
 0x231   :  { %v925_v51 = vsel %vm870_vm0, %v860_v14, -inf }
 0x232   :  { %v922_v4 = vmax.f32 %v920_v26, %v921_v56  ;;  %v1036_v26 = vmul.f32 1.442695, %v1014_v8  ;;  %v1038_v56 = vmul.f32 1.442695, %v1015_v5 }
 0x234   :  { %v923_v34 = vrot.slane %v922_v4, 1  ;;  %1811 = vpow2.f32 %v1036_v26 }
 0x235   :  { %1813 = vpow2.f32 %v1038_v56 }
 0x236   :  { %v924_v47 = vmax.f32 %v922_v4, %v923_v34  ;;  %v949_v34 = vrot.slane %v2326_v53, 6  ;;  %1815 = vpow2.f32 %v1040_v38 }
 0x237   :  { %1817 = vpow2.f32 %v1042_v62 }
 0x238   :  { %v862_v40 = vpop.f32.mrf.mxu3  ;;  %v2381_v24 = vmax.f32 %v924_v47, %v948_v59 }
 0x239   :  { %v926_v43 = vsel %vm870_vm0, %v862_v40, -inf }
 0x23a   :  { %v927_v55 = vmax.f32 %v925_v51, %v926_v43  ;;  %v1005_v13 = vperm.slane %v2381_v24, 0  ;;  %v2397_v43 = vpop.eup %1807 }
 0x23b   :  { %v1074_v20 = vsel %vm870_vm0, %v2397_v43, 0.0 }
 0x23c   :  { %v928_v60 = vrot.slane %v927_v55, 4  ;;  %v1018_v29 = vsub.f32 %v855_v12, %v1005_v13  ;;  %v1019_v4 = vsub.f32 %v857_v16, %v1005_v13 }
 0x23e   :  { %v929_v50 = vmax.f32 %v927_v55, %v928_v60  ;;  %v1044_v31 = vmul.f32 1.442695, %v1018_v29  ;;  %v1046_v61 = vmul.f32 1.442695, %v1019_v4  ;;  %v2399_v55 = vpop.eup %1809 }
 0x23f   :  { %v2401_v63 = vpop.eup %1811  ;;  %v1075_v21 = vsel %vm870_vm0, %v2399_v55, 0.0 }
 0x240   :  { %v930_v11 = vrot.slane %v929_v50, 2  ;;  %v2384_v7 = vpop.f32.mrf.mxu3  ;;  %1819 = vpow2.f32 %v1044_v31  ;;  %v1076_v62 = vadd.f32 %v1075_v21, %v1074_v20 }
 0x241   :  { %v934_v35 = vsel %vm870_vm0, %v2384_v7, -inf  ;;  %1821 = vpow2.f32 %v1046_v61 }
 0x242   :  { %v931_v15 = vmax.f32 %v929_v50, %v930_v11  ;;  %v2403_v11 = vpop.eup %1813 }
 0x243   :  { %v2405_v13 = vpop.eup %1815  ;;  %v1084_v26 = vsel %vm870_vm0, %v2403_v11, 0.0 }
 0x244   :  { %v932_v23 = vrot.slane %v931_v15, 1  ;;  %v1092_v56 = vsel %vm870_vm0, %v2405_v13, 0.0 }
 0x246   :  { %v933_v27 = vmax.f32 %v931_v15, %v932_v23  ;;  %v1083_v23 = vsel %vm870_vm0, %v2401_v63, 0.0 }
 0x248   :  { %v2391_v1 = vmax.f32 %v933_v27, %v949_v34  ;;  %v867_v44 = vpop.f32.mrf.mxu3  ;;  %v950_v34 = vrot.slane %v2326_v53, 7 }
 0x249   :  { %v935_v42 = vsel %vm870_vm0, %v867_v44, -inf }
 0x24a   :  { %v1006_v5 = vperm.slane %v2391_v1, 0  ;;  %v936_v12 = vmax.f32 %v934_v35, %v935_v42  ;;  %v1085_v42 = vadd.f32 %v1084_v26, %v1083_v23 }
 0x24c   :  { %v1020_v16 = vsub.f32 %v860_v14, %v1006_v5  ;;  %v1021_v47 = vsub.f32 %v862_v40, %v1006_v5  ;;  %v937_v51 = vrot.slane %v936_v12, 4  ;;  %v2407_v14 = vpop.eup %1817 }
 0x24d   :  { %v2409_v15 = vpop.eup %1819  ;;  %v1093_v4 = vsel %vm870_vm0, %v2407_v14, 0.0 }
 0x24e   :  { %v1048_v59 = vmul.f32 1.442695, %v1020_v16  ;;  %v1050_v60 = vmul.f32 1.442695, %v1021_v47  ;;  %v938_v50 = vmax.f32 %v936_v12, %v937_v51  ;;  %v2411_v19 = vpop.eup %1821  ;;  %v1101_v31 = vsel %vm870_vm0, %v2409_v15, 0.0 }
 0x24f   :  { %v1102_v35 = vsel %vm870_vm0, %v2411_v19, 0.0  ;;  %v1094_v16 = vadd.f32 %v1093_v4, %v1092_v56 }
 0x250   :  { %1823 = vpow2.f32 %v1048_v59  ;;  %v939_v8 = vrot.slane %v938_v50, 2  ;;  %v1103_v47 = vadd.f32 %v1102_v35, %v1101_v31  ;;  %v1077_v59 = vrot.slane %v1076_v62, 4 }
 0x251   :  { %1825 = vpow2.f32 %v1050_v60  ;;  %v984_v31 = vrot.slane %v2378_v57, 4 }
 0x252   :  { %v940_v40 = vmax.f32 %v938_v50, %v939_v8  ;;  %v1146_v50 = vld [vmem:[%s2564_s9] sm:$0x3]  ;;  %v1086_v8 = vrot.slane %v1085_v42, 4  ;;  %v1104_v23 = vrot.slane %v1103_v47, 4  ;;  %v1078_v56 = vadd.f32 %v1077_v59, %v1076_v62 }
 0x253   :  { %v1154_v21 = vsel %vm1152_vm4, %v1146_v50, 0  ;;  %v986_v62 = vsel %vm985_vm5, %v984_v31, %v2369_v3 }
 0x254   :  { %v941_v22 = vrot.slane %v940_v40, 1  ;;  %1163 = vmatpush.bf16.msrb.mxu2 %v1154_v21 }
 0x256   :  { %v2421_v29 = vpop.eup %1823  ;;  %v942_v27 = vmax.f32 %v940_v40, %v941_v22  ;;  %v1095_v22 = vrot.slane %v1094_v16, 4 }
 0x257   :  { %v2428_v38 = vpop.eup %1825  ;;  %v1110_v61 = vsel %vm870_vm0, %v2421_v29, 0.0 }
 0x258   :  { %v1111_v5 = vsel %vm870_vm0, %v2428_v38, 0.0  ;;  %v966_v12 = vmax.f32 %v942_v27, %v950_v34  ;;  %1296 = vmatpush.bf16.msra.mxu2 %v1154_v21  ;;  %v1087_v34 = vadd.f32 %v1086_v8, %v1085_v42  ;;  %v1096_v35 = vadd.f32 %v1095_v22, %v1094_v16 }
 0x259   :  { %v1112_v60 = vadd.f32 %v1111_v5, %v1110_v61  ;;  %v987_v61 = vrot.slane %v2381_v24, 3  ;;  %v1079_v5 = vrot.slane %v1078_v56, 2 }
 0x25a   :  { %v1007_v51 = vperm.slane %v966_v12, 0  ;;  %v993_v50 = vrot.slane %v966_v12, 1  ;;  %v1097_v57 = vrot.slane %v1096_v35, 2 }
 0x25b   :  { %v1113_v4 = vrot.slane %v1112_v60, 4  ;;  %v989_v42 = vsel %vm988_vm6, %v987_v61, %v986_v62  ;;  %v1080_v59 = vadd.f32 %v1079_v5, %v1078_v56 }
 0x25c   :  { %v1022_v40 = vsub.f32 %v2384_v7, %v1007_v51  ;;  %v1023_v20 = vsub.f32 %v867_v44, %v1007_v51  ;;  %v1105_v7 = vadd.f32 %v1104_v23, %v1103_v47  ;;  %v990_v44 = vrot.slane %v2391_v1, 2 }
 0x25d   :  { %v1114_v51 = vadd.f32 %v1113_v4, %v1112_v60  ;;  %v1098_v3 = vadd.f32 %v1097_v57, %v1096_v35 }
 0x25e   :  { %v1052_v26 = vmul.f32 1.442695, %v1022_v40  ;;  %v1054_v27 = vmul.f32 1.442695, %v1023_v20  ;;  %v1088_v40 = vrot.slane %v1087_v34, 2  ;;  %v1106_v24 = vrot.slane %v1105_v7, 2 }
 0x25f   :  { %v992_v47 = vsel %vm991_vm7, %v990_v44, %v989_v42  ;;  %v1115_v1 = vrot.slane %v1114_v51, 2  ;;  %v1099_v61 = vrot.slane %v1098_v3, 1 }
 0x260   :  { %1827 = vpow2.f32 %v1052_v26  ;;  %v995_v8 = vsel %vm994_vm8, %v993_v50, %v992_v47  ;;  %v1089_v20 = vadd.f32 %v1088_v40, %v1087_v34  ;;  %v1107_v22 = vadd.f32 %v1106_v24, %v1105_v7 }
 0x261   :  { %1829 = vpow2.f32 %v1054_v27  ;;  %v997_v23 = vsub.f32 %v2326_v53, %v995_v8  ;;  %v1081_v27 = vrot.slane %v1080_v59, 1  ;;  %v1116_v4 = vadd.f32 %v1115_v1, %v1114_v51 }
 0x262   :  { %v1090_v56 = vrot.slane %v1089_v20, 1  ;;  %v1108_v44 = vrot.slane %v1107_v22, 1  ;;  %v1100_v35 = vadd.f32 %v1099_v61, %v1098_v3 }
 0x263   :  { %v998_v5 = vmul.f32 1.442695, %v997_v23  ;;  %v1082_v62 = vadd.f32 %v1081_v27, %v1080_v59  ;;  %v1117_v42 = vrot.slane %v1116_v4, 1 }
 0x264   :  { %v1091_v47 = vadd.f32 %v1090_v56, %v1089_v20  ;;  %v1109_v40 = vadd.f32 %v1108_v44, %v1107_v22 }
 0x265   :  { %1831 = vpow2.f32 %v998_v5  ;;  %v1137_v53 = vsel %vm979_vm2, %v1082_v62, %v2366_v33  ;;  %v1118_v7 = vadd.f32 %v1117_v42, %v1116_v4 }
 0x266   :  { %v2448_v16 = vpop.eup %1827  ;;  %v1138_v51 = vsel %vm982_vm3, %v1091_v47, %v1137_v53 }
 0x267   :  { %v1119_v12 = vsel %vm870_vm0, %v2448_v16, 0.0  ;;  %v2454_v60 = vpop.eup %1829  ;;  %v1139_v1 = vsel %vm985_vm5, %v1100_v35, %v1138_v51 }
 0x268   :  { %v1120_v21 = vsel %vm870_vm0, %v2454_v60, 0.0  ;;  %v1140_v8 = vsel %vm988_vm6, %v1109_v40, %v1139_v1 }
 0x269   :  { %v1121_v26 = vadd.f32 %v1120_v21, %v1119_v12  ;;  %v1141_v59 = vsel %vm991_vm7, %v1118_v7, %v1140_v8 }
 0x26b   :  { %v1122_v31 = vrot.slane %v1121_v26, 4  ;;  %v1832_v20 = vpop.eup %1831 }
 0x26d   :  { %v1123_v50 = vadd.f32 %v1122_v31, %v1121_v26 }
 0x26f   :  { %v1124_v34 = vrot.slane %v1123_v50, 2 }
 0x271   :  { %v1125_v57 = vadd.f32 %v1124_v34, %v1123_v50 }
 0x273   :  { %v1126_v24 = vrot.slane %v1125_v57, 1 }
 0x275   :  { %v1127_v12 = vadd.f32 %v1126_v24, %v1125_v57 }
 0x277   :  { %v1142_v3 = vsel %vm994_vm8, %v1127_v12, %v1141_v59 }
 0x278   :  { %v1144_v21 = vadd.f32 %v1832_v20, %v1142_v3 }
 0x27a   :  { %1833 = vrcp.f32 %v1144_v21 }
 0x280   :  { %v2466_v22 = vpop.eup %1833 }
 0x281   :  { %v1147_v33 = vmul.f32 %v2466_v22, %v1832_v20  ;;  %v1177_v23 = vperm.slane %v2466_v22, 0  ;;  %v1170_v26 = vrot.slane %v2466_v22, 1  ;;  %v1175_v35 = vrot.slane %v2466_v22, 6 }
 0x282   :  { %v1176_v7 = vrot.slane %v2466_v22, 7 }
 0x283   :  { %v1148_v27 = vpack.c.bf16 %v1147_v33, %v1147_v33  ;;  %v1193_v4 = vmul.f32 %v2333_v30, %v1177_v23  ;;  %v1194_v56 = vmul.f32 %v2336_v32, %v1177_v23  ;;  %v1178_v31 = vperm.slane %v1170_v26, 0 }
 0x284   :  { %v1183_v32 = vperm.slane %v1175_v35, 0 }
 0x285   :  { %1691 = vmatmul.msk.bf16.vlgmr.msrb.gmra.mxu2 %vm870_vm0, %v1148_v27  ;;  %v1209_v61 = vpack.c.bf16 %v1193_v4, %v1193_v4  ;;  %v1210_v44 = vpack.c.bf16 %v1194_v56, %v1194_v56  ;;  %v1195_v5 = vmul.f32 %v2347_v6, %v1178_v31  ;;  %v1196_v50 = vmul.f32 %v2350_v2, %v1178_v31 }
 0x286   :  { %v1205_v51 = vmul.f32 %v2421_v29, %v1183_v32  ;;  %v1206_v24 = vmul.f32 %v2428_v38, %v1183_v32  ;;  %v1184_v6 = vperm.slane %v1176_v7, 0  ;;  %v1171_v29 = vrot.slane %v2466_v22, 2 }
 0x287   :  { %v1241_v62 = vunpack.c.l.b16 %v1209_v61  ;;  %v1242_v42 = vunpack.c.l.b16 %v1210_v44  ;;  %v1211_v47 = vpack.c.bf16 %v1195_v5, %v1195_v5  ;;  %v1212_v34 = vpack.c.bf16 %v1196_v50, %v1196_v50 }
 0x288   :  { %v1221_v1 = vpack.c.bf16 %v1205_v51, %v1205_v51  ;;  %v1222_v2 = vpack.c.bf16 %v1206_v24, %v1206_v24  ;;  %v1207_v8 = vmul.f32 %v2448_v16, %v1184_v6  ;;  %v1208_v12 = vmul.f32 %v2454_v60, %v1184_v6 }
 0x289   :  { %v1257_v40 = vpack.c.b16 %v1242_v42, %v1241_v62  ;;  %v1243_v57 = vunpack.c.l.b16 %v1211_v47  ;;  %v1244_v30 = vunpack.c.l.b16 %v1212_v34  ;;  %v1179_v38 = vperm.slane %v1171_v29, 0 }
 0x28a   :  { %v1253_v59 = vunpack.c.l.b16 %v1221_v1  ;;  %v1254_v20 = vunpack.c.l.b16 %v1222_v2  ;;  %v1223_v3 = vpack.c.bf16 %v1207_v8, %v1207_v8  ;;  %v1224_v21 = vpack.c.bf16 %v1208_v12, %v1208_v12 }
 0x28b   :  { %v1258_v53 = vpack.c.b16 %v1244_v30, %v1243_v57  ;;  %v1197_v4 = vmul.f32 %v2397_v43, %v1179_v38  ;;  %v1198_v16 = vmul.f32 %v2399_v55, %v1179_v38  ;;  %v1172_v44 = vrot.slane %v2466_v22, 3 }
 0x28c   :  { %v1263_v33 = vpack.c.b16 %v1254_v20, %v1253_v59  ;;  %v1255_v23 = vunpack.c.l.b16 %v1223_v3  ;;  %v1256_v26 = vunpack.c.l.b16 %v1224_v21  ;;  %v1173_v55 = vrot.slane %v2466_v22, 4 }
 0x28d   :  { %v1213_v60 = vpack.c.bf16 %v1197_v4, %v1197_v4  ;;  %v1214_v56 = vpack.c.bf16 %v1198_v16, %v1198_v16  ;;  %v1180_v50 = vperm.slane %v1172_v44, 0 }
 0x28e   :  { %v1264_v27 = vpack.c.b16 %v1256_v26, %v1255_v23  ;;  %v1181_v57 = vperm.slane %v1173_v55, 0 }
 0x28f   :  { %v1245_v31 = vunpack.c.l.b16 %v1213_v60  ;;  %v1246_v61 = vunpack.c.l.b16 %v1214_v56  ;;  %v1199_v62 = vmul.f32 %v2401_v63, %v1180_v50  ;;  %v1200_v42 = vmul.f32 %v2403_v11, %v1180_v50 }
 0x290   :  { %v1201_v30 = vmul.f32 %v2405_v13, %v1181_v57  ;;  %v1174_v11 = vrot.slane %v2466_v22, 5 }
 0x291   :  { %v1259_v5 = vpack.c.b16 %v1246_v61, %v1245_v31  ;;  %v1215_v47 = vpack.c.bf16 %v1199_v62, %v1199_v62  ;;  %v1216_v34 = vpack.c.bf16 %v1200_v42, %v1200_v42 }
 0x292   :  { %v1217_v32 = vpack.c.bf16 %v1201_v30, %v1201_v30  ;;  %v1182_v6 = vperm.slane %v1174_v11, 0 }
 0x293   :  { %v1247_v35 = vunpack.c.l.b16 %v1215_v47  ;;  %v1248_v43 = vunpack.c.l.b16 %v1216_v34 }
 0x294   :  { %v1249_v51 = vunpack.c.l.b16 %v1217_v32  ;;  %v1203_v1 = vmul.f32 %v2409_v15, %v1182_v6  ;;  %v1204_v2 = vmul.f32 %v2411_v19, %v1182_v6  ;;  %v1779_v19 = vld [vmem:[#allocation13 + $0x38] sm:$0xff] }
 0x295   :  { %1692 = vmatmul.msk.bf16.vlgmr.msra.gmra.mxu2 %vm870_vm0, %v1257_v40  ;;  %v1260_v40 = vpack.c.b16 %v1248_v43, %v1247_v35  ;;  %1497 = vmatpush.bf16.msra.mxu0 %v1779_v19  ;;  %v1775_v19 = vld [vmem:[#allocation13 + $0x18] sm:$0xff] }
 0x296   :  { %v1219_v8 = vpack.c.bf16 %v1203_v1, %v1203_v1  ;;  %v1220_v12 = vpack.c.bf16 %v1204_v2, %v1204_v2 }
 0x298   :  { %v1251_v59 = vunpack.c.l.b16 %v1219_v8  ;;  %v1252_v13 = vunpack.c.l.b16 %v1220_v12 }
 0x29a   :  { %v1262_v20 = vpack.c.b16 %v1252_v13, %v1251_v59 }
 0x2a5   :  { %1693 = vmatmul.msk.bf16.gmra.mxu2 %vm870_vm0, %v1258_v53  ;;  %v1202_v53 = vmul.f32 %v2407_v14, %v1181_v57  ;;  %v2502_v14 = vperm.slane %v2259_v41, 1 }
 0x2a7   :  { %v1218_v7 = vpack.c.bf16 %v1202_v53, %v1202_v53  ;;  %v437_v22 = vadd.f32 %v2269_v54, %v2502_v14  ;;  %v599_v23 = vadd.f32 %v2276_v10, %v2502_v14  ;;  %v601_v41 = vadd.f32 %v2279_v18, %v2502_v14 }
 0x2a8   :  { %v604_v54 = vadd.f32 %v2283_v25, %v2502_v14  ;;  %v606_v31 = vadd.f32 %v2286_v36, %v2502_v14  ;;  %v609_v42 = vadd.f32 %v2290_v37, %v2502_v14  ;;  %v611_v36 = vadd.f32 %v2293_v48, %v2502_v14 }
 0x2a9   :  { %v1250_v63 = vunpack.c.l.b16 %v1218_v7  ;;  %v616_v48 = vadd.f32 %v2300_v0, %v2502_v14  ;;  %v621_v0 = vadd.f32 %v2307_v17, %v2502_v14  ;;  %v626_v17 = vadd.f32 %v2313_v46, %v2502_v14 }
 0x2aa   :  { %v631_v46 = vadd.f32 %v2320_v49, %v2502_v14  ;;  %v636_v49 = vadd.f32 %v2324_v52, %v2502_v14  ;;  %v1798_v52 = vld [vmem:[%s2566_s11] ss:$0 sm:$0xff] }
 0x2ab   :  { %v1261_v24 = vpack.c.b16 %v1250_v63, %v1249_v51  ;;  %v1776_v63 = vld [vmem:[#allocation13 + $0x20] sm:$0xff] }
 0x2b5   :  { %1694 = vmatmul.msk.bf16.gmra.mxu2 %vm870_vm0, %v1259_v5  ;;  %v1777_v5 = vld [vmem:[#allocation13 + $0x28] sm:$0xff] }
 0x2c5   :  { %1695 = vmatmul.msk.bf16.gmra.mxu2 %vm870_vm0, %v1260_v40 }
 0x2d5   :  { %1696 = vmatmul.msk.bf16.gmra.mxu2 %vm870_vm0, %v1261_v24  ;;  %v614_v24 = vadd.f32 %v2297_v58, %v2502_v14 }
 0x2e5   :  { %1697 = vmatmul.msk.bf16.gmra.mxu2 %vm870_vm0, %v1262_v20 }
 0x2f5   :  { %1698 = vmatmul.msk.bf16.gmra.mxu2 %vm870_vm0, %v1263_v33 }
 0x305   :  { %1699 = vmatmul.msk.bf16.gmra.mxu2 %vm870_vm0, %v1264_v27  ;;  %v1778_v27 = vld [vmem:[#allocation13 + $0x30] sm:$0xff] }
 0x306   :  { %1498 = vmatpush.bf16.msra.mxu0 %v1778_v27 }
 0x308   :  { %v1165_v15 = vpop.f32.mrf.mxu2 }
 0x309   :  { %v2507_v3 = vmul.f32 %v1165_v15, %v437_v22 }
 0x30a   :  { %1499 = vmatpush.bf16.msra.mxu0 %v1777_v5 }
 0x30e   :  { %1500 = vmatpush.bf16.msra.mxu0 %v1776_v63 }
 0x310   :  { %v1167_v21 = vpop.f32.mrf.mxu2 }
 0x312   :  { %1501 = vmatpush.bf16.msra.mxu0 %v1775_v19 }
 0x318   :  { %v1298_v26 = vpop.f32.mrf.mxu2 }
 0x319   :  { %v1339_v29 = vmul.f32 %v1298_v26, %v599_v23 }
 0x320   :  { %v1300_v33 = vpop.f32.mrf.mxu2 }
 0x321   :  { %v1340_v38 = vmul.f32 %v1300_v33, %v601_v41 }
 0x323   :  { %v1355_v4 = vadd.f32 %v1340_v38, %v1339_v29  ;;  %v619_v38 = vadd.f32 %v2304_v9, %v2502_v14  ;;  %v624_v9 = vadd.f32 %v2311_v28, %v2502_v14  ;;  %v629_v28 = vadd.f32 %v2318_v39, %v2502_v14 }
 0x324   :  { %v634_v39 = vadd.f32 %v2322_v45, %v2502_v14 }
 0x325   :  { %v1356_v56 = vrot.slane %v1355_v4, 4 }
 0x327   :  { %v1357_v10 = vadd.f32 %v1356_v56, %v1355_v4  ;;  %v1774_v56 = vld [vmem:[#allocation13 + $0x10] sm:$0xff] }
 0x328   :  { %v1303_v16 = vpop.f32.mrf.mxu2  ;;  %1502 = vmatpush.bf16.msra.mxu0 %v1774_v56 }
 0x329   :  { %v1341_v60 = vmul.f32 %v1303_v16, %v604_v54  ;;  %v1358_v50 = vrot.slane %v1357_v10, 2 }
 0x32b   :  { %v1359_v47 = vadd.f32 %v1358_v50, %v1357_v10 }
 0x32d   :  { %v1360_v55 = vrot.slane %v1359_v47, 1 }
 0x32f   :  { %v1361_v30 = vadd.f32 %v1360_v55, %v1359_v47 }
 0x330   :  { %v1305_v61 = vpop.f32.mrf.mxu2 }
 0x331   :  { %v1342_v44 = vmul.f32 %v1305_v61, %v606_v31 }
 0x333   :  { %v1362_v18 = vadd.f32 %v1342_v44, %v1341_v60 }
 0x335   :  { %v1363_v62 = vrot.slane %v1362_v18, 4 }
 0x337   :  { %v1364_v34 = vadd.f32 %v1363_v62, %v1362_v18 }
 0x338   :  { %v1308_v25 = vpop.f32.mrf.mxu2 }
 0x339   :  { %v1365_v35 = vrot.slane %v1364_v34, 2  ;;  %v1343_v43 = vmul.f32 %v1308_v25, %v609_v42  ;;  %v1773_v42 = vld [vmem:[#allocation13 + $0x8] sm:$0xff] }
 0x33a   :  { %1503 = vmatpush.bf16.msra.mxu0 %v1773_v42 }
 0x33b   :  { %v1366_v40 = vadd.f32 %v1365_v35, %v1364_v34 }
 0x33d   :  { %v1367_v57 = vrot.slane %v1366_v40, 1 }
 0x33f   :  { %v1368_v53 = vadd.f32 %v1367_v57, %v1366_v40 }
 0x340   :  { %v1310_v32 = vpop.f32.mrf.mxu2 }
 0x341   :  { %v1419_v7 = vsel %vm976_vm1, %v1368_v53, %v1361_v30  ;;  %v1344_v51 = vmul.f32 %v1310_v32, %v611_v36 }
 0x343   :  { %v1369_v11 = vadd.f32 %v1344_v51, %v1343_v43 }
 0x345   :  { %v1370_v37 = vrot.slane %v1369_v11, 4 }
 0x347   :  { %v1371_v6 = vadd.f32 %v1370_v37, %v1369_v11 }
 0x348   :  { %v1313_v1 = vpop.f32.mrf.mxu2 }
 0x349   :  { %v1372_v2 = vrot.slane %v1371_v6, 2  ;;  %v1345_v8 = vmul.f32 %v1313_v1, %v614_v24 }
 0x34b   :  { %v1373_v12 = vadd.f32 %v1372_v2, %v1371_v6 }
 0x34d   :  { %v1374_v59 = vrot.slane %v1373_v12, 1 }
 0x34f   :  { %v1375_v13 = vadd.f32 %v1374_v59, %v1373_v12 }
 0x350   :  { %v1315_v20 = vpop.f32.mrf.mxu2 }
 0x351   :  { %v1420_v22 = vsel %vm979_vm2, %v1375_v13, %v1419_v7  ;;  %v1346_v15 = vmul.f32 %v1315_v20, %v616_v48  ;;  %v1772_v7 = vld [vmem:[#allocation13] sm:$0xff] }
 0x352   :  { %1504 = vmatpush.bf16.msra.mxu0 %v1772_v7 }
 0x353   :  { %v1376_v21 = vadd.f32 %v1346_v15, %v1345_v8 }
 0x355   :  { %v1377_v23 = vrot.slane %v1376_v21, 4 }
 0x357   :  { %v1378_v26 = vadd.f32 %v1377_v23, %v1376_v21 }
 0x358   :  { %v1318_v58 = vpop.f32.mrf.mxu2 }
 0x359   :  { %v1379_v29 = vrot.slane %v1378_v26, 2  ;;  %v1347_v16 = vmul.f32 %v1318_v58, %v619_v38 }
 0x35b   :  { %v1380_v41 = vadd.f32 %v1379_v29, %v1378_v26 }
 0x35d   :  { %v1381_v33 = vrot.slane %v1380_v41, 1 }
 0x35f   :  { %v1382_v27 = vadd.f32 %v1381_v33, %v1380_v41 }
 0x360   :  { %v1320_v4 = vpop.f32.mrf.mxu2 }
 0x361   :  { %v1421_v54 = vsel %vm982_vm3, %v1382_v27, %v1420_v22  ;;  %v1348_v60 = vmul.f32 %v1320_v4, %v621_v0 }
 0x363   :  { %v1383_v31 = vadd.f32 %v1348_v60, %v1347_v16 }
 0x365   :  { %v1384_v10 = vrot.slane %v1383_v31, 4 }
 0x367   :  { %v1385_v61 = vadd.f32 %v1384_v10, %v1383_v31 }
 0x368   :  { %v1323_v44 = vpop.f32.mrf.mxu2 }
 0x369   :  { %v1386_v5 = vrot.slane %v1385_v61, 2  ;;  %v1349_v25 = vmul.f32 %v1323_v44, %v624_v9 }
 0x36b   :  { %v1387_v50 = vadd.f32 %v1386_v5, %v1385_v61 }
 0x36d   :  { %v1388_v18 = vrot.slane %v1387_v50, 1 }
 0x36f   :  { %v1389_v62 = vadd.f32 %v1388_v18, %v1387_v50 }
 0x370   :  { %v1325_v47 = vpop.f32.mrf.mxu2 }
 0x371   :  { %v1422_v34 = vsel %vm985_vm5, %v1389_v62, %v1421_v54  ;;  %v1350_v35 = vmul.f32 %v1325_v47, %v626_v17 }
 0x373   :  { %v1390_v43 = vadd.f32 %v1350_v35, %v1349_v25 }
 0x375   :  { %v1391_v55 = vrot.slane %v1390_v43, 4 }
 0x377   :  { %v1392_v40 = vadd.f32 %v1391_v55, %v1390_v43 }
 0x378   :  { %v1328_v57 = vpop.f32.mrf.mxu2 }
 0x379   :  { %v1393_v36 = vrot.slane %v1392_v40, 2  ;;  %v1351_v11 = vmul.f32 %v1328_v57, %v629_v28 }
 0x37b   :  { %v1394_v30 = vadd.f32 %v1393_v36, %v1392_v40 }
 0x37d   :  { %v1395_v53 = vrot.slane %v1394_v30, 1 }
 0x37f   :  { %v1396_v32 = vadd.f32 %v1395_v53, %v1394_v30 }
 0x380   :  { %v1330_v51 = vpop.f32.mrf.mxu2 }
 0x381   :  { %v1423_v63 = vsel %vm988_vm6, %v1396_v32, %v1422_v34  ;;  %v1352_v37 = vmul.f32 %v1330_v51, %v631_v46 }
 0x383   :  { %v1397_v24 = vadd.f32 %v1352_v37, %v1351_v11 }
 0x385   :  { %v1398_v6 = vrot.slane %v1397_v24, 4 }
 0x387   :  { %v1399_v1 = vadd.f32 %v1398_v6, %v1397_v24 }
 0x388   :  { %v1333_v2 = vpop.f32.mrf.mxu2 }
 0x389   :  { %v1400_v8 = vrot.slane %v1399_v1, 2  ;;  %v1353_v20 = vmul.f32 %v1333_v2, %v634_v39 }
 0x38b   :  { %v1401_v12 = vadd.f32 %v1400_v8, %v1399_v1 }
 0x38d   :  { %v1402_v59 = vrot.slane %v1401_v12, 1 }
 0x38f   :  { %v1403_v48 = vadd.f32 %v1402_v59, %v1401_v12 }
 0x390   :  { %v1335_v13 = vpop.f32.mrf.mxu2 }
 0x391   :  { %v1354_v22 = vmul.f32 %v1335_v13, %v636_v49  ;;  %v1424_v15 = vsel %vm991_vm7, %v1403_v48, %v1423_v63 }
 0x393   :  { %v1404_v19 = vadd.f32 %v1354_v22, %v1353_v20 }
 0x395   :  { %v1405_v21 = vrot.slane %v1404_v19, 4 }
 0x397   :  { %v1406_v23 = vadd.f32 %v1405_v21, %v1404_v19 }
 0x399   :  { %v1407_v26 = vrot.slane %v1406_v23, 2 }
 0x39b   :  { %v1408_v58 = vadd.f32 %v1407_v26, %v1406_v23 }
 0x39d   :  { %v1409_v29 = vrot.slane %v1408_v58, 1 }
 0x39f   :  { %v1410_v41 = vadd.f32 %v1409_v29, %v1408_v58 }
 0x3a1   :  { %v1425_v33 = vsel %vm994_vm8, %v1410_v41, %v1424_v15 }
 0x3a2   :  { %v1427_v45 = vadd.f32 %v1425_v33, %v2507_v3 }
 0x3a4   :  { %v1428_v38 = vpack.c.bf16 %v1427_v45, %v1427_v45 }
 0x3a6   :  { %1505 = vmatmul.bf16.vlgmr.msra.gmra.mxu0 %v1428_v38 }
 0x423   :  { %v1506_v14 = vpop.f32.mrf.mxu0 }
 0x424   :  { %v1507_v0 = vadd.f32 %v1798_v52, %v1506_v14 }
 0x426   :  { %1510 = vst [vmem:[#allocation14] sm:$0xff] %v1507_v0 }
 0x427   :  { %1521 = dma.vmem_to_hbm [thread:$0]  %s1517_s10, 128, %s1519_s29, [#allocation4]  }
 0x42b   :  { %v1508_v27 = vpop.f32.mrf.mxu0 }
 0x42c   :  { %2035 = dma.done.wait [#allocation4], 128  }
 0x42d   :  { %2036 = vsyncadd [#allocation4], 4294967168 }
 0x42e   :  { %1526 = vsyncpa [#allocation3], 1 }
 0x42f   :  { %1527 = vsyncpa [#allocation6], 1 }
 0x430   :  { %1528 = vsyncpa [#allocation9], 1 }
 0x431   :  { %1529 = vsyncpa [#allocation12], 1 }
 0x432   :  { %1530 = vsyncpa [#allocation4], 1 }

// kernel: tpu_custom_call.1
= control target key start
LH: loop header
LB: loop body
LE: loop exit
PB: predicated region body
PF: predicated region fallthrough
CT: control target
= control target key end

     0   :  { %17 = vsyncpa [#allocation3], 0  ;;  %s2555_s0 = inlined_call_operand.vmem [shape: bf16[8,16,128], index: 0, kind: input, shape index: {}]   ;;  %s2556_s1 = inlined_call_operand.hbm [shape: f32[1,128], index: 1, kind: input, shape index: {}]   ;;  %s2557_s2 = inlined_call_operand.hbm [shape: bf16[16,128], index: 2, kind: input, shape index: {}]   ;;  %s2558_s3 = inlined_call_operand.hbm [shape: bf16[8,128], index: 3, kind: input, shape index: {}]   ;;  %s2559_s4 = inlined_call_operand.hbm [shape: bf16[128,128], index: 4, kind: input, shape index: {}]   ;;  %s2560_s5 = inlined_call_operand.hbm [shape: f32[1,128], index: 5, kind: input, shape index: {}]   ;;  %s2561_s6 = inlined_call_operand.hbm [shape: bf16[128,256], index: 6, kind: input, shape index: {}]   ;;  %s2562_s7 = inlined_call_operand.vmem [shape: f32[1,256], index: 7, kind: input, shape index: {}]   ;;  %s2563_s8 = inlined_call_operand.vmem [shape: bf16[128,4], index: 8, kind: input, shape index: {}]   ;;  %s2564_s9 = inlined_call_operand.vmem [shape: bf16[4,128], index: 9, kind: input, shape index: {}]   ;;  %s2565_s10 = inlined_call_operand.hbm [shape: bf16[128,128], index: 10, kind: input, shape index: {}]   ;;  %s2566_s11 = inlined_call_operand.vmem [shape: f32[1,128], index: 11, kind: input, shape index: {}]   ;;  %s2567_s12 = inlined_call_operand.hbm [shape: f32[8,128], index: 12, kind: output, shape index: {}]  }
   0x1   :  { %18 = vsyncpa [#allocation6], 0 }
   0x2   :  { %19 = vsyncpa [#allocation9], 0 }
   0x3   :  { %20 = vsyncpa [#allocation12], 0  ;;  %s39_s23 = sshll.u32 %s2557_s2, 4  ;;  %s40_s23 = int_to_ptr.hbm [resolvable:$true] %s39_s23 }
   0x4   :  { %21 = vsyncpa [#allocation4], 0  ;;  %s2037_s24 = smov [#allocation5]   ;;  %s63_s28 = sshll.u32 %s2559_s4, 4  ;;  %s64_s28 = int_to_ptr.hbm [resolvable:$true] %s63_s28 }
   0x5   :  { %s41_s25 = sshll.u32 %s2037_s24, 4  ;;  %s2038_s29 = smov 64   ;;  %s42_s25 = int_to_ptr.vmem [resolvable:$true] %s41_s25 }
   0x6   :  { %s2039_s30 = smov 4   ;;  %s2040_s13 = smov [#allocation8]  }
   0x7   :  { %47 = dma.hbm_to_vmem [thread:$0]  %s40_s23, 128, %s42_s25, [#allocation6], %s2038_s29, %s2038_s29, %s2039_s30  }
   0x8   :  { %s65_s14 = sshll.u32 %s2040_s13, 4  ;;  %s87_s16 = sshll.u32 %s2561_s6, 4  ;;  %s66_s14 = int_to_ptr.vmem [resolvable:$true] %s65_s14  ;;  %s88_s16 = int_to_ptr.hbm [resolvable:$true] %s87_s16 }
   0x9   :  { %71 = dma.hbm_to_vmem [thread:$0]  %s64_s28, 1024, %s66_s14, [#allocation9], %s2038_s29, %s2038_s29, %s2039_s30  }
   0xa   :  { %s2041_s4 = smov [#allocation11]   ;;  %s29_s20 = sshll.u32 %s2556_s1, 4  ;;  %s30_s20 = int_to_ptr.hbm [resolvable:$true] %s29_s20 }
   0xb   :  { %s89_s17 = sshll.u32 %s2041_s4, 4  ;;  %s2042_s21 = smov 128   ;;  %s90_s17 = int_to_ptr.vmem [resolvable:$true] %s89_s17 }
   0xc   :  { %s2043_s22 = smov 8   ;;  %s2044_s23 = smov [#allocation2]  }
   0xd   :  { %95 = dma.hbm_to_vmem [thread:$0]  %s88_s16, 2048, %s90_s17, [#allocation12], %s2042_s21, %s2042_s21, %s2043_s22  }
   0xe   :  { %s31_s24 = sshll.u32 %s2044_s23, 4  ;;  %s53_s26 = sshll.u32 %s2558_s3, 4  ;;  %s32_s24 = int_to_ptr.vmem [resolvable:$true] %s31_s24  ;;  %s54_s26 = int_to_ptr.hbm [resolvable:$true] %s53_s26 }
   0xf   :  { %34 = dma.hbm_to_vmem [thread:$0]  %s30_s20, 16, %s32_s24, [#allocation3]  }
  0x10   :  { %s77_s13 = sshll.u32 %s2560_s5, 4  ;;  %s2045_s14 = smov [#allocation7]   ;;  %s78_s13 = int_to_ptr.hbm [resolvable:$true] %s77_s13 }
  0x11   :  { %s55_s15 = sshll.u32 %s2045_s14, 4  ;;  %s2046_s1 = smov [#allocation10]   ;;  %s56_s15 = int_to_ptr.vmem [resolvable:$true] %s55_s15 }
  0x12   :  { %58 = dma.hbm_to_vmem [thread:$0]  %s54_s26, 64, %s56_s15, [#allocation6]  }
  0x13   :  { %s79_s2 = sshll.u32 %s2046_s1, 4  ;;  %s106_s17 = sshll.u32 %s2565_s10, 4  ;;  %s80_s2 = int_to_ptr.vmem [resolvable:$true] %s79_s2  ;;  %s107_s17 = int_to_ptr.hbm [resolvable:$true] %s106_s17 }
  0x14   :  { %82 = dma.hbm_to_vmem [thread:$0]  %s78_s13, 16, %s80_s2, [#allocation9]  }
  0x15   :  { %s2047_s3 = smov [#allocation13]  }
  0x16   :  { %s108_s18 = sshll.u32 %s2047_s3, 4  ;;  %s109_s18 = int_to_ptr.vmem [resolvable:$true] %s108_s18 }
  0x17   :  { %114 = dma.hbm_to_vmem [thread:$0]  %s107_s17, 1024, %s109_s18, [#allocation12], %s2038_s29, %s2038_s29, %s2039_s30  }
  0x18   :  { %2027 = dma.done.wait [#allocation3], 16  }
  0x19   :  { %2028 = vsyncadd [#allocation3], 4294967280 }
  0x1a   :  { %2029 = dma.done.wait [#allocation6], 192  }
  0x1b   :  { %2030 = vsyncadd [#allocation6], 4294967104 }
  0x1c   :  { %2031 = dma.done.wait [#allocation9], 1040  }
  0x1d   :  { %2032 = vsyncadd [#allocation9], 4294966256 }
  0x1e   :  { %2033 = dma.done.wait [#allocation12], 3072  }
  0x1f   :  { %2034 = vsyncadd [#allocation12], 4294964224  ;;  %v1739_v0 = vld [vmem:[%s2555_s0 + $0x38] sm:$0xff]  ;;  %v1738_v1 = vld [vmem:[%s2555_s0 + $0x30] sm:$0xff]  ;;  %vm870_vm0 = vcmask 31744   ;;  %vm976_vm1 = vcmask 1041409  }
  0x20   :  { %211 = vmatpush.bf16.msra.mxu0 %v1739_v0  ;;  %v1653_v2 = vld [vmem:[#allocation11 + $0x70] sm:$0xf]  ;;  %v1763_v3 = vld [vmem:[#allocation11 + $0x74] sm:$0xf0]  ;;  %v1645_v5 = vld [vmem:[#allocation11 + $0x60] sm:$0xf] }
  0x21   :  { %v1654_v4 = vor.u32 %v1763_v3, %v1653_v2  ;;  %v1761_v6 = vld [vmem:[#allocation11 + $0x64] sm:$0xf0]  ;;  %v1737_v7 = vld [vmem:[%s2555_s0 + $0x28] sm:$0xff]  ;;  %v1637_v9 = vld [vmem:[#allocation11 + $0x50] sm:$0xf]  ;;  %vm979_vm2 = vcmask 1042434  }
  0x22   :  { %v1646_v8 = vor.u32 %v1761_v6, %v1645_v5  ;;  %v1759_v10 = vld [vmem:[#allocation11 + $0x54] sm:$0xf0]  ;;  %v1736_v11 = vld [vmem:[%s2555_s0 + $0x20] sm:$0xff]  ;;  %v1629_v13 = vld [vmem:[#allocation11 + $0x40] sm:$0xf]  ;;  %vm982_vm3 = vcmask 1043459  }
  0x23   :  { %414 = vmatpush.bf16.msra.mxu2 %v1654_v4  ;;  %v1638_v12 = vor.u32 %v1759_v10, %v1637_v9  ;;  %v1757_v14 = vld [vmem:[#allocation11 + $0x44] sm:$0xf0]  ;;  %v1621_v17 = vld [vmem:[#allocation11 + $0x30] sm:$0xf]  ;;  %v1755_v18 = vld [vmem:[#allocation11 + $0x34] sm:$0xf0] }
  0x24   :  { %212 = vmatpush.bf16.msra.mxu0 %v1738_v1  ;;  %v1735_v15 = vld [vmem:[%s2555_s0 + $0x18] sm:$0xff]  ;;  %v1630_v16 = vor.u32 %v1757_v14, %v1629_v13  ;;  %v1734_v19 = vld [vmem:[%s2555_s0 + $0x10] sm:$0xff]  ;;  %v1622_v20 = vor.u32 %v1755_v18, %v1621_v17  ;;  %v1733_v23 = vld [vmem:[%s2555_s0 + $0x8] sm:$0xff]  ;;  %vm1152_vm4 = vcmask 1041408   ;;  %vm985_vm5 = vcmask 1044484   ;;  %s2048_s5 = smov [#allocation14]  }
  0x25   :  { %v1613_v21 = vld [vmem:[#allocation11 + $0x20] sm:$0xf]  ;;  %v1753_v22 = vld [vmem:[#allocation11 + $0x24] sm:$0xf0]  ;;  %v1605_v25 = vld [vmem:[#allocation11 + $0x10] sm:$0xf] }
  0x26   :  { %v1614_v24 = vor.u32 %v1753_v22, %v1613_v21  ;;  %v1751_v26 = vld [vmem:[#allocation11 + $0x14] sm:$0xf0]  ;;  %v1732_v27 = vld [vmem:[%s2555_s0] sm:$0xff]  ;;  %v1597_v29 = vld [vmem:[#allocation11] sm:$0xf]  ;;  %vm988_vm6 = vcmask 1045509  }
  0x27   :  { %415 = vmatpush.bf16.msra.mxu2 %v1646_v8  ;;  %v1606_v28 = vor.u32 %v1751_v26, %v1605_v25  ;;  %v1749_v30 = vld [vmem:[#allocation11 + $0x4] sm:$0xf0]  ;;  %v162_v31 = vld [vmem:[#allocation7] sm:$0xf]  ;;  %v146_v33 = vld [vmem:[%s2555_s0] sm:$0xff]   ;;  %vm991_vm7 = vcmask 1046534  }
  0x28   :  { %213 = vmatpush.bf16.msra.mxu0 %v1737_v7  ;;  %v1598_v32 = vor.u32 %v1749_v30, %v1597_v29  ;;  %v1781_v34 = vld [vmem:[#allocation5] sm:$0xff]   ;;  %v442_v37 = vunpack.c.l.bf16 %v146_v33  ;;  %v443_v38 = vunpack.c.h.bf16 %v146_v33  ;;  %v150_v55 = vld [vmem:[%s2555_s0 + $0x10] sm:$0xff]   ;;  %v152_v3 = vld [vmem:[%s2555_s0 + $0x18] sm:$0xff]   ;;  %vm994_vm8 = vcmask 1047559   ;;  %s1516_s10 = sshll.u32 %s2048_s5, 4  ;;  %s1518_s29 = sshll.u32 %s2567_s12, 4  ;;  %s1517_s10 = int_to_ptr.vmem [resolvable:$true] %s1516_s10  ;;  %s1519_s29 = int_to_ptr.hbm [resolvable:$true] %s1518_s29 }
  0x29   :  { %v2171_v35 = vunpack.c.l.bf16 %v1781_v34  ;;  %v2173_v36 = vunpack.c.h.bf16 %v1781_v34  ;;  %v148_v45 = vld [vmem:[%s2555_s0 + $0x8] sm:$0xff]   ;;  %v446_v57 = vunpack.c.l.bf16 %v150_v55  ;;  %v447_v58 = vunpack.c.h.bf16 %v150_v55  ;;  %v1746_v62 = vld [vmem:[#allocation8 + $0x30] sm:$0xff]  ;;  %v1745_v9 = vld [vmem:[#allocation8 + $0x28] sm:$0xff] }
  0x2a   :  { %v444_v47 = vunpack.c.l.bf16 %v148_v45  ;;  %v445_v48 = vunpack.c.h.bf16 %v148_v45  ;;  %v1747_v61 = vld [vmem:[#allocation8 + $0x38] sm:$0xff]  ;;  %v448_v5 = vunpack.c.l.bf16 %v152_v3  ;;  %v449_v6 = vunpack.c.h.bf16 %v152_v3  ;;  %v1744_v13 = vld [vmem:[#allocation8 + $0x20] sm:$0xff]  ;;  %v1742_v26 = vld [vmem:[#allocation8 + $0x10] sm:$0xff] }
  0x2b   :  { %416 = vmatpush.bf16.msra.mxu2 %v1638_v12  ;;  %v460_v39 = vadd.f32 %v2171_v35, %v442_v37  ;;  %v461_v40 = vadd.f32 %v2173_v36, %v443_v38  ;;  %v464_v59 = vadd.f32 %v2171_v35, %v446_v57  ;;  %v465_v60 = vadd.f32 %v2173_v36, %v447_v58  ;;  %v1762_v10 = vld [vmem:[#allocation11 + $0x74] sm:$0xf]  ;;  %v1756_v33 = vld [vmem:[#allocation11 + $0x44] sm:$0xf]  ;;  %v1631_v34 = vld [vmem:[#allocation11 + $0x48] sm:$0xf0] }
  0x2c   :  { %214 = vmatpush.bf16.msra.mxu0 %v1736_v11  ;;  %v462_v49 = vadd.f32 %v2171_v35, %v444_v47  ;;  %v463_v50 = vadd.f32 %v2173_v36, %v445_v48  ;;  %299 = vmatpush.bf16.msra.mxu1 %v1747_v61  ;;  %v466_v7 = vadd.f32 %v2171_v35, %v448_v5  ;;  %v1655_v11 = vld [vmem:[#allocation11 + $0x78] sm:$0xf0]  ;;  %v154_v25 = vld [vmem:[%s2555_s0 + $0x20] sm:$0xff]   ;;  %v1615_v45 = vld [vmem:[#allocation11 + $0x28] sm:$0xf0] }
  0x2d   :  { %v476_v41 = vpack.c.bf16 %v460_v39, %v460_v39  ;;  %v477_v42 = vpack.c.bf16 %v461_v40, %v461_v40  ;;  %v480_v63 = vpack.c.bf16 %v464_v59, %v464_v59  ;;  %v481_v0 = vpack.c.bf16 %v465_v60, %v465_v60  ;;  %v1743_v21 = vld [vmem:[#allocation8 + $0x18] sm:$0xff]  ;;  %v1740_v40 = vld [vmem:[#allocation8] sm:$0xff]  ;;  %v1599_v61 = vld [vmem:[#allocation11 + $0x8] sm:$0xf0] }
  0x2e   :  { %v478_v51 = vpack.c.bf16 %v462_v49, %v462_v49  ;;  %v479_v52 = vpack.c.bf16 %v463_v50, %v463_v50  ;;  %v1658_v14 = vor.u32 %v1762_v10, %v1655_v11  ;;  %v451_v29 = vunpack.c.h.bf16 %v154_v25  ;;  %v1754_v38 = vld [vmem:[#allocation11 + $0x34] sm:$0xf]  ;;  %v1623_v39 = vld [vmem:[#allocation11 + $0x38] sm:$0xf0]  ;;  %v1748_v60 = vld [vmem:[#allocation11 + $0x4] sm:$0xf] }
  0x2f   :  { %417 = vmatpush.bf16.msra.mxu2 %v1630_v16  ;;  %v508_v43 = vunpack.c.l.b16 %v476_v41  ;;  %v509_v44 = vunpack.c.l.b16 %v477_v42  ;;  %v512_v1 = vunpack.c.l.b16 %v480_v63  ;;  %v513_v2 = vunpack.c.l.b16 %v481_v0  ;;  %v156_v50 = vld [vmem:[%s2555_s0 + $0x28] sm:$0xff]   ;;  %v158_v3 = vld [vmem:[%s2555_s0 + $0x30] sm:$0xff]  }
  0x30   :  { %215 = vmatpush.bf16.msra.mxu0 %v1735_v15  ;;  %v510_v53 = vunpack.c.l.b16 %v478_v51  ;;  %v511_v54 = vunpack.c.l.b16 %v479_v52  ;;  %300 = vmatpush.bf16.msra.mxu1 %v1746_v62  ;;  %v1647_v15 = vld [vmem:[#allocation11 + $0x68] sm:$0xf0]  ;;  %v1634_v37 = vor.u32 %v1756_v33, %v1631_v34  ;;  %v1626_v41 = vor.u32 %v1754_v38, %v1623_v39  ;;  %v1607_v55 = vld [vmem:[#allocation11 + $0x18] sm:$0xf0]  ;;  %v1766_v33 = vld [vmem:[%s2563_s8 + $0x10] sm:$0xff] }
  0x31   :  { %v2180_v46 = vpack.c.b16 %v509_v44, %v508_v43  ;;  %427 = vmatpush.bf16.msra.mxu3 %v1658_v14  ;;  %v1752_v44 = vld [vmem:[#allocation11 + $0x24] sm:$0xf]  ;;  %v452_v52 = vunpack.c.l.bf16 %v156_v50  ;;  %v1602_v62 = vor.u32 %v1748_v60, %v1599_v61  ;;  %v1765_v34 = vld [vmem:[%s2563_s8 + $0x8] sm:$0xff]  ;;  %v1764_v38 = vld [vmem:[%s2563_s8] sm:$0xff] }
  0x32   :  { %v2188_v56 = vpack.c.b16 %v511_v54, %v510_v53  ;;  %v1618_v47 = vor.u32 %v1752_v44, %v1615_v45  ;;  %v453_v53 = vunpack.c.h.bf16 %v156_v50  ;;  %v1750_v54 = vld [vmem:[#allocation11 + $0x14] sm:$0xf] }
  0x33   :  { %418 = vmatpush.bf16.msra.mxu2 %v1622_v20  ;;  %v1610_v57 = vor.u32 %v1750_v54, %v1607_v55  ;;  %v470_v58 = vadd.f32 %v2171_v35, %v452_v52 }
  0x34   :  { %216 = vmatpush.bf16.msra.mxu0 %v1734_v19  ;;  %301 = vmatpush.bf16.msra.mxu1 %v1745_v9  ;;  %v1758_v19 = vld [vmem:[#allocation11 + $0x54] sm:$0xf]  ;;  %v471_v59 = vadd.f32 %v2173_v36, %v453_v53 }
  0x35   :  { %v486_v63 = vpack.c.bf16 %v470_v58, %v470_v58 }
  0x36   :  { %v487_v0 = vpack.c.bf16 %v471_v59, %v471_v59 }
  0x37   :  { %419 = vmatpush.bf16.msra.mxu2 %v1614_v24 }
  0x38   :  { %217 = vmatpush.bf16.msra.mxu0 %v1733_v23  ;;  %302 = vmatpush.bf16.msra.mxu1 %v1744_v13 }
  0x3b   :  { %420 = vmatpush.bf16.msra.mxu2 %v1606_v28 }
  0x3c   :  { %218 = vmatpush.bf16.msra.mxu0 %v1732_v27  ;;  %303 = vmatpush.bf16.msra.mxu1 %v1743_v21 }
  0x3f   :  { %219 = vmatmul.bf16.vlgmr.msra.gmra.mxu0 %v162_v31  ;;  %421 = vmatpush.bf16.msra.mxu2 %v1598_v32  ;;  %v469_v31 = vadd.f32 %v2173_v36, %v451_v29 }
  0x40   :  { %540 = vmatpush.bf16.msrb.mxu0 %v1654_v4  ;;  %v2196_v4 = vpack.c.b16 %v513_v2, %v512_v1  ;;  %304 = vmatpush.bf16.msra.mxu1 %v1742_v26  ;;  %v518_v1 = vunpack.c.l.b16 %v486_v63  ;;  %v519_v2 = vunpack.c.l.b16 %v487_v0 }
  0x41   :  { %v485_v43 = vpack.c.bf16 %v469_v31, %v469_v31 }
  0x42   :  { %v529_v5 = vpack.c.b16 %v519_v2, %v518_v1 }
  0x43   :  { %v517_v49 = vunpack.c.l.b16 %v485_v43 }
  0x44   :  { %541 = vmatpush.bf16.msrb.mxu0 %v1646_v8  ;;  %v467_v8 = vadd.f32 %v2173_v36, %v449_v6  ;;  %v454_v6 = vunpack.c.l.bf16 %v158_v3 }
  0x46   :  { %v483_v17 = vpack.c.bf16 %v467_v8, %v467_v8  ;;  %v472_v8 = vadd.f32 %v2171_v35, %v454_v6 }
  0x48   :  { %542 = vmatpush.bf16.msrb.mxu0 %v1638_v12  ;;  %v1760_v12 = vld [vmem:[#allocation11 + $0x64] sm:$0xf]  ;;  %v515_v23 = vunpack.c.l.b16 %v483_v17  ;;  %v488_v10 = vpack.c.bf16 %v472_v8, %v472_v8 }
  0x49   :  { %v1650_v18 = vor.u32 %v1760_v12, %v1647_v15 }
  0x4a   :  { %v520_v12 = vunpack.c.l.b16 %v488_v10 }
  0x4b   :  { %428 = vmatpush.bf16.msra.mxu3 %v1650_v18 }
  0x4c   :  { %543 = vmatpush.bf16.msrb.mxu0 %v1630_v16  ;;  %v482_v16 = vpack.c.bf16 %v466_v7, %v466_v7  ;;  %v455_v7 = vunpack.c.h.bf16 %v158_v3 }
  0x4e   :  { %v514_v22 = vunpack.c.l.b16 %v482_v16  ;;  %v473_v9 = vadd.f32 %v2173_v36, %v455_v7 }
  0x50   :  { %544 = vmatpush.bf16.msrb.mxu0 %v1622_v20  ;;  %v1639_v20 = vld [vmem:[#allocation11 + $0x58] sm:$0xf0]  ;;  %v2204_v27 = vpack.c.b16 %v515_v23, %v514_v22  ;;  %v489_v11 = vpack.c.bf16 %v473_v9, %v473_v9 }
  0x52   :  { %v521_v13 = vunpack.c.l.b16 %v489_v11 }
  0x54   :  { %545 = vmatpush.bf16.msrb.mxu0 %v1614_v24  ;;  %v1642_v24 = vor.u32 %v1758_v19, %v1639_v20  ;;  %v530_v15 = vpack.c.b16 %v521_v13, %v520_v12 }
  0x56   :  { %429 = vmatpush.bf16.msra.mxu3 %v1642_v24 }
  0x58   :  { %546 = vmatpush.bf16.msrb.mxu0 %v1606_v28  ;;  %v450_v28 = vunpack.c.l.bf16 %v154_v25 }
  0x5a   :  { %v468_v30 = vadd.f32 %v2171_v35, %v450_v28  ;;  %430 = vmatpush.bf16.msra.mxu3 %v1634_v37 }
  0x5c   :  { %547 = vmatpush.bf16.msrb.mxu0 %v1598_v32  ;;  %v1741_v32 = vld [vmem:[#allocation8 + $0x8] sm:$0xff]  ;;  %v484_v42 = vpack.c.bf16 %v468_v30, %v468_v30 }
  0x5d   :  { %305 = vmatpush.bf16.msra.mxu1 %v1741_v32 }
  0x5e   :  { %431 = vmatpush.bf16.msra.mxu3 %v1626_v41  ;;  %v516_v48 = vunpack.c.l.b16 %v484_v42  ;;  %v1797_v42 = vld [vmem:[#allocation10] ss:$0 sm:$0xff] }
  0x5f   :  { %548 = vmatmul.bf16.vlgmr.msrb.gmra.mxu0 %v2180_v46 }
  0x60   :  { %v2212_v51 = vpack.c.b16 %v517_v49, %v516_v48 }
  0x61   :  { %306 = vmatpush.bf16.msra.mxu1 %v1740_v40 }
  0x62   :  { %432 = vmatpush.bf16.msra.mxu3 %v1618_v47 }
  0x65   :  { %589 = vmatpush.bf16.msrb.mxu1 %v1658_v14  ;;  %v160_v14 = vld [vmem:[%s2555_s0 + $0x38] sm:$0xff]  }
  0x66   :  { %433 = vmatpush.bf16.msra.mxu3 %v1610_v57  ;;  %v456_v16 = vunpack.c.l.bf16 %v160_v14  ;;  %v457_v17 = vunpack.c.h.bf16 %v160_v14 }
  0x68   :  { %v474_v20 = vadd.f32 %v2171_v35, %v456_v16  ;;  %v475_v21 = vadd.f32 %v2173_v36, %v457_v17  ;;  %v1771_v35 = vld [vmem:[%s2563_s8 + $0x38] sm:$0xff]  ;;  %v1770_v36 = vld [vmem:[%s2563_s8 + $0x30] sm:$0xff] }
  0x69   :  { %590 = vmatpush.bf16.msrb.mxu1 %v1650_v18  ;;  %v1796_v18 = vld [vmem:[#allocation2] ss:$0 sm:$0xff] }
  0x6a   :  { %434 = vmatpush.bf16.msra.mxu3 %v1602_v62  ;;  %v491_v25 = vpack.c.bf16 %v475_v21, %v475_v21 }
  0x6c   :  { %v523_v30 = vunpack.c.l.b16 %v491_v25 }
  0x6d   :  { %591 = vmatpush.bf16.msrb.mxu1 %v1642_v24  ;;  %v490_v24 = vpack.c.bf16 %v474_v20, %v474_v20 }
  0x6e   :  { %821 = vmatpush.bf16.msrb.mxu3 %v1771_v35 }
  0x6f   :  { %553 = vmatmul.bf16.gmra.mxu0 %v2188_v56  ;;  %v522_v29 = vunpack.c.l.b16 %v490_v24 }
  0x71   :  { %592 = vmatpush.bf16.msrb.mxu1 %v1634_v37  ;;  %v531_v31 = vpack.c.b16 %v523_v30, %v522_v29 }
  0x72   :  { %822 = vmatpush.bf16.msrb.mxu3 %v1770_v36 }
  0x75   :  { %593 = vmatpush.bf16.msrb.mxu1 %v1626_v41  ;;  %v2259_v41 = vld [vmem:[%s2562_s7] sm:$0x3] }
  0x76   :  { %v2262_v43 = vperm.slane %v2259_v41, 0 }
  0x79   :  { %594 = vmatpush.bf16.msrb.mxu1 %v1618_v47 }
  0x7d   :  { %595 = vmatpush.bf16.msrb.mxu1 %v1610_v57 }
  0x7f   :  { %558 = vmatmul.bf16.gmra.mxu0 %v2196_v4 }
  0x81   :  { %596 = vmatpush.bf16.msrb.mxu1 %v1602_v62 }
  0x8f   :  { %563 = vmatmul.bf16.gmra.mxu0 %v2204_v27 }
  0x9f   :  { %568 = vmatmul.bf16.gmra.mxu0 %v2212_v51 }
  0xaf   :  { %573 = vmatmul.bf16.gmra.mxu0 %v529_v5 }
  0xbc   :  { %v220_v19 = vpop.f32.mrf.mxu0 }
  0xbd   :  { %v224_v22 = vmul.f32 0.0625, %v220_v19 }
  0xbf   :  { %578 = vmatmul.bf16.gmra.mxu0 %v530_v15  ;;  %v229_v23 = vadd.f32 %v1796_v18, %v224_v22 }
  0xc1   :  { %v230_v26 = vpack.c.bf16 %v229_v23, %v229_v23 }
  0xc3   :  { %307 = vmatmul.bf16.vlgmr.msra.gmra.mxu1 %v230_v26  ;;  %422 = vmatmul.bf16.vlgmr.msra.gmra.mxu2 %v230_v26 }
  0xc4   :  { %435 = vmatmul.bf16.vlgmr.msra.gmra.mxu3 %v230_v26  ;;  %v222_v28 = vpop.f32.mrf.mxu0  ;;  %704 = vmatpush.bf16.msra.mxu1 %v1771_v35 }
  0xc8   :  { %705 = vmatpush.bf16.msra.mxu1 %v1770_v36 }
  0xcf   :  { %583 = vmatmul.bf16.gmra.mxu0 %v531_v31 }
  0xd3   :  { %597 = vmatmul.bf16.vlgmr.msrb.gmra.mxu1 %v2180_v46  ;;  %v1769_v46 = vld [vmem:[%s2563_s8 + $0x28] sm:$0xff] }
  0xd4   :  { %823 = vmatpush.bf16.msrb.mxu3 %v1769_v46  ;;  %706 = vmatpush.bf16.msra.mxu1 %v1769_v46 }
  0xdc   :  { %v549_v32 = vpop.f32.mrf.mxu0 }
  0xdd   :  { %v550_v47 = vadd.f32 %v549_v32, %v2262_v43 }
  0xe3   :  { %602 = vmatmul.bf16.gmra.mxu1 %v2188_v56  ;;  %v1768_v56 = vld [vmem:[%s2563_s8 + $0x20] sm:$0xff] }
  0xe4   :  { %824 = vmatpush.bf16.msrb.mxu3 %v1768_v56  ;;  %707 = vmatpush.bf16.msra.mxu1 %v1768_v56 }
  0xf3   :  { %607 = vmatmul.bf16.gmra.mxu1 %v2196_v4  ;;  %v1767_v4 = vld [vmem:[%s2563_s8 + $0x18] sm:$0xff] }
  0xf4   :  { %825 = vmatpush.bf16.msrb.mxu3 %v1767_v4  ;;  %708 = vmatpush.bf16.msra.mxu1 %v1767_v4 }
  0xf8   :  { %826 = vmatpush.bf16.msrb.mxu3 %v1766_v33  ;;  %709 = vmatpush.bf16.msra.mxu1 %v1766_v33 }
  0xfc   :  { %827 = vmatpush.bf16.msrb.mxu3 %v1765_v34  ;;  %710 = vmatpush.bf16.msra.mxu1 %v1765_v34 }
 0x100   :  { %828 = vmatpush.bf16.msrb.mxu3 %v1764_v38  ;;  %711 = vmatpush.bf16.msra.mxu1 %v1764_v38 }
 0x103   :  { %612 = vmatmul.bf16.gmra.mxu1 %v2204_v27  ;;  %v551_v27 = vpop.f32.mrf.mxu0 }
 0x104   :  { %v552_v48 = vadd.f32 %v551_v27, %v2262_v43 }
 0x10b   :  { %v554_v37 = vpop.f32.mrf.mxu0 }
 0x10c   :  { %v555_v63 = vadd.f32 %v554_v37, %v2262_v43 }
 0x113   :  { %617 = vmatmul.bf16.gmra.mxu1 %v2212_v51  ;;  %v556_v39 = vpop.f32.mrf.mxu0 }
 0x114   :  { %v557_v0 = vadd.f32 %v556_v39, %v2262_v43 }
 0x11b   :  { %v559_v40 = vpop.f32.mrf.mxu0 }
 0x11c   :  { %v560_v19 = vadd.f32 %v559_v40, %v2262_v43 }
 0x123   :  { %622 = vmatmul.bf16.gmra.mxu1 %v529_v5  ;;  %v561_v50 = vpop.f32.mrf.mxu0 }
 0x124   :  { %v562_v20 = vadd.f32 %v561_v50, %v2262_v43 }
 0x12b   :  { %v564_v5 = vpop.f32.mrf.mxu0 }
 0x12c   :  { %v565_v32 = vadd.f32 %v564_v5, %v2262_v43 }
 0x133   :  { %627 = vmatmul.bf16.gmra.mxu1 %v530_v15  ;;  %v566_v17 = vpop.f32.mrf.mxu0 }
 0x134   :  { %v567_v46 = vadd.f32 %v566_v17, %v2262_v43 }
 0x13b   :  { %v569_v26 = vpop.f32.mrf.mxu0 }
 0x140   :  { %v308_v44 = vpop.f32.mrf.mxu1 }
 0x141   :  { %v2264_v45 = vadd.f32 %v1797_v42, %v308_v44 }
 0x143   :  { %632 = vmatmul.bf16.gmra.mxu1 %v531_v31  ;;  %v725_v49 = vperm.slane %v2264_v45, 0  ;;  %v718_v58 = vrot.slane %v2264_v45, 1  ;;  %v719_v16 = vrot.slane %v2264_v45, 2  ;;  %v720_v35 = vrot.slane %v2264_v45, 3  ;;  %v571_v27 = vpop.f32.mrf.mxu0 }
 0x144   :  { %v572_v50 = vadd.f32 %v571_v27, %v2262_v43 }
 0x145   :  { %v741_v51 = vmul.f32 %v725_v49, %v550_v47  ;;  %v742_v52 = vmul.f32 %v725_v49, %v552_v48  ;;  %v726_v2 = vperm.slane %v718_v58, 0  ;;  %v727_v22 = vperm.slane %v719_v16, 0 }
 0x146   :  { %v423_v53 = vpop.f32.mrf.mxu2  ;;  %v728_v4 = vperm.slane %v720_v35, 0  ;;  %v721_v47 = vrot.slane %v2264_v45, 4  ;;  %v570_v49 = vadd.f32 %v569_v26, %v2262_v43 }
 0x147   :  { %v2269_v54 = vpop.f32.mrf.mxu3  ;;  %v757_v55 = vpack.c.bf16 %v741_v51, %v741_v51  ;;  %v758_v57 = vpack.c.bf16 %v742_v52, %v742_v52  ;;  %v424_v60 = vadd.f32 %v423_v53, %v2262_v43  ;;  %v743_v8 = vmul.f32 %v726_v2, %v555_v63 }
 0x148   :  { %v310_v59 = vpop.f32.mrf.mxu1  ;;  %v744_v9 = vmul.f32 %v726_v2, %v557_v0  ;;  %v745_v23 = vmul.f32 %v727_v22, %v560_v19  ;;  %v746_v24 = vmul.f32 %v727_v22, %v562_v20  ;;  %v747_v33 = vmul.f32 %v728_v4, %v565_v32 }
 0x149   :  { %v789_v61 = vunpack.c.l.b16 %v757_v55  ;;  %v790_v62 = vunpack.c.l.b16 %v758_v57  ;;  %v654_v3 = vmul.f32 %v424_v60, %v2264_v45  ;;  %v759_v12 = vpack.c.bf16 %v743_v8, %v743_v8 }
 0x14a   :  { %v760_v13 = vpack.c.bf16 %v744_v9, %v744_v9  ;;  %v761_v28 = vpack.c.bf16 %v745_v23, %v745_v23  ;;  %v762_v29 = vpack.c.bf16 %v746_v24, %v746_v24  ;;  %v748_v34 = vmul.f32 %v728_v4, %v567_v46 }
 0x14b   :  { %v805_v1 = vpack.c.b16 %v790_v62, %v789_v61  ;;  %v655_v11 = vpack.c.bf16 %v654_v3, %v654_v3  ;;  %v791_v14 = vunpack.c.l.b16 %v759_v12  ;;  %v763_v38 = vpack.c.bf16 %v747_v33, %v747_v33  ;;  %v574_v40 = vpop.f32.mrf.mxu0 }
 0x14c   :  { %v792_v15 = vunpack.c.l.b16 %v760_v13  ;;  %v793_v30 = vunpack.c.l.b16 %v761_v28  ;;  %v794_v31 = vunpack.c.l.b16 %v762_v29  ;;  %v764_v39 = vpack.c.bf16 %v748_v34, %v748_v34 }
 0x14d   :  { %829 = vmatmul.bf16.vlgmr.msrb.gmra.mxu3 %v805_v1  ;;  %v795_v42 = vunpack.c.l.b16 %v763_v38  ;;  %v729_v52 = vperm.slane %v721_v47, 0  ;;  %v722_v63 = vrot.slane %v2264_v45, 5  ;;  %v575_v2 = vadd.f32 %v574_v40, %v2262_v43 }
 0x14e   :  { %v425_v6 = vpop.f32.mrf.mxu2  ;;  %v806_v21 = vpack.c.b16 %v792_v15, %v791_v14  ;;  %v807_v56 = vpack.c.b16 %v794_v31, %v793_v30  ;;  %v796_v44 = vunpack.c.l.b16 %v764_v39  ;;  %v723_v14 = vrot.slane %v2264_v45, 6 }
 0x14f   :  { %v438_v7 = vpop.f32.mrf.mxu3  ;;  %v749_v53 = vmul.f32 %v729_v52, %v570_v49  ;;  %v750_v55 = vmul.f32 %v729_v52, %v572_v50  ;;  %v730_v6 = vperm.slane %v722_v63, 0 }
 0x150   :  { %v2276_v10 = vpop.f32.mrf.mxu1  ;;  %v808_v51 = vpack.c.b16 %v796_v44, %v795_v42 }
 0x151   :  { %v765_v59 = vpack.c.bf16 %v749_v53, %v749_v53  ;;  %v766_v60 = vpack.c.bf16 %v750_v55, %v750_v55  ;;  %v751_v7 = vmul.f32 %v730_v6, %v575_v2 }
 0x153   :  { %712 = vmatmul.bf16.vlgmr.msra.gmra.mxu1 %v655_v11  ;;  %v576_v57 = vpop.f32.mrf.mxu0  ;;  %v797_v61 = vunpack.c.l.b16 %v765_v59  ;;  %v798_v62 = vunpack.c.l.b16 %v766_v60  ;;  %v767_v11 = vpack.c.bf16 %v751_v7, %v751_v7 }
 0x154   :  { %v577_v3 = vadd.f32 %v576_v57, %v2262_v43 }
 0x155   :  { %v809_v5 = vpack.c.b16 %v798_v62, %v797_v61  ;;  %v799_v15 = vunpack.c.l.b16 %v767_v11 }
 0x156   :  { %v752_v8 = vmul.f32 %v730_v6, %v577_v3 }
 0x158   :  { %v2279_v18 = vpop.f32.mrf.mxu1  ;;  %v768_v12 = vpack.c.bf16 %v752_v8, %v752_v8 }
 0x15a   :  { %v800_v16 = vunpack.c.l.b16 %v768_v12 }
 0x15b   :  { %v579_v1 = vpop.f32.mrf.mxu0 }
 0x15c   :  { %v580_v19 = vadd.f32 %v579_v1, %v2262_v43  ;;  %v810_v22 = vpack.c.b16 %v800_v16, %v799_v15 }
 0x15d   :  { %834 = vmatmul.bf16.gmra.mxu3 %v806_v21  ;;  %v731_v21 = vperm.slane %v723_v14, 0 }
 0x15f   :  { %v753_v26 = vmul.f32 %v731_v21, %v580_v19 }
 0x160   :  { %v2283_v25 = vpop.f32.mrf.mxu1 }
 0x161   :  { %v769_v30 = vpack.c.bf16 %v753_v26, %v753_v26 }
 0x163   :  { %v581_v13 = vpop.f32.mrf.mxu0  ;;  %v801_v31 = vunpack.c.l.b16 %v769_v30 }
 0x164   :  { %v582_v20 = vadd.f32 %v581_v13, %v2262_v43 }
 0x166   :  { %v754_v24 = vmul.f32 %v731_v21, %v582_v20 }
 0x168   :  { %v2286_v36 = vpop.f32.mrf.mxu1  ;;  %v770_v29 = vpack.c.bf16 %v754_v24, %v754_v24 }
 0x16a   :  { %v802_v35 = vunpack.c.l.b16 %v770_v29 }
 0x16b   :  { %v584_v23 = vpop.f32.mrf.mxu0 }
 0x16c   :  { %v811_v27 = vpack.c.b16 %v802_v35, %v801_v31  ;;  %v585_v33 = vadd.f32 %v584_v23, %v2262_v43 }
 0x16d   :  { %839 = vmatmul.bf16.gmra.mxu3 %v807_v56  ;;  %v724_v56 = vrot.slane %v2264_v45, 7 }
 0x16f   :  { %v732_v34 = vperm.slane %v724_v56, 0 }
 0x170   :  { %v2290_v37 = vpop.f32.mrf.mxu1 }
 0x171   :  { %v755_v40 = vmul.f32 %v732_v34, %v585_v33 }
 0x173   :  { %v586_v32 = vpop.f32.mrf.mxu0  ;;  %v771_v44 = vpack.c.bf16 %v755_v40, %v755_v40 }
 0x174   :  { %v587_v4 = vadd.f32 %v586_v32, %v2262_v43 }
 0x175   :  { %v803_v50 = vunpack.c.l.b16 %v771_v44 }
 0x176   :  { %v756_v38 = vmul.f32 %v732_v34, %v587_v4 }
 0x178   :  { %v2293_v48 = vpop.f32.mrf.mxu1  ;;  %v772_v42 = vpack.c.bf16 %v756_v38, %v756_v38 }
 0x17a   :  { %v804_v47 = vunpack.c.l.b16 %v772_v42 }
 0x17d   :  { %844 = vmatmul.bf16.gmra.mxu3 %v808_v51  ;;  %v812_v51 = vpack.c.b16 %v804_v47, %v803_v50 }
 0x180   :  { %v2297_v58 = vpop.f32.mrf.mxu1 }
 0x188   :  { %v2300_v0 = vpop.f32.mrf.mxu1 }
 0x18d   :  { %849 = vmatmul.bf16.gmra.mxu3 %v809_v5 }
 0x190   :  { %v2304_v9 = vpop.f32.mrf.mxu1 }
 0x198   :  { %v2307_v17 = vpop.f32.mrf.mxu1 }
 0x19d   :  { %854 = vmatmul.bf16.gmra.mxu3 %v810_v22 }
 0x1a0   :  { %v2311_v28 = vpop.f32.mrf.mxu1 }
 0x1a8   :  { %v2313_v46 = vpop.f32.mrf.mxu1 }
 0x1ad   :  { %859 = vmatmul.bf16.gmra.mxu3 %v811_v27 }
 0x1b0   :  { %v2318_v39 = vpop.f32.mrf.mxu1 }
 0x1b8   :  { %v2320_v49 = vpop.f32.mrf.mxu1 }
 0x1bd   :  { %864 = vmatmul.bf16.gmra.mxu3 %v812_v51 }
 0x1c0   :  { %v2322_v45 = vpop.f32.mrf.mxu1 }
 0x1c8   :  { %v2324_v52 = vpop.f32.mrf.mxu1 }
 0x1d0   :  { %v2326_v53 = vpop.f32.mrf.mxu1  ;;  %v830_v43 = vpop.f32.mrf.mxu3 }
 0x1d1   :  { %v871_v59 = vsel %vm870_vm0, %v830_v43, -inf  ;;  %v944_v35 = vrot.slane %v2326_v53, 1 }
 0x1d8   :  { %v715_v55 = vpop.f32.mrf.mxu1  ;;  %v832_v57 = vpop.f32.mrf.mxu3 }
 0x1d9   :  { %v872_v60 = vsel %vm870_vm0, %v832_v57, -inf }
 0x1da   :  { %v873_v61 = vmax.f32 %v871_v59, %v872_v60 }
 0x1dc   :  { %v874_v62 = vrot.slane %v873_v61, 4 }
 0x1de   :  { %v875_v63 = vmax.f32 %v873_v61, %v874_v62 }
 0x1e0   :  { %v876_v1 = vrot.slane %v875_v63, 2  ;;  %v835_v2 = vpop.f32.mrf.mxu3 }
 0x1e1   :  { %v880_v11 = vsel %vm870_vm0, %v835_v2, -inf }
 0x1e2   :  { %v877_v3 = vmax.f32 %v875_v63, %v876_v1 }
 0x1e4   :  { %v878_v5 = vrot.slane %v877_v3, 1 }
 0x1e6   :  { %v879_v6 = vmax.f32 %v877_v3, %v878_v5 }
 0x1e8   :  { %v959_v7 = vmax.f32 %v879_v6, %v2326_v53  ;;  %v837_v8 = vpop.f32.mrf.mxu3 }
 0x1e9   :  { %v881_v12 = vsel %vm870_vm0, %v837_v8, -inf }
 0x1ea   :  { %v1000_v13 = vperm.slane %v959_v7, 0  ;;  %v882_v14 = vmax.f32 %v880_v11, %v881_v12 }
 0x1ec   :  { %v1008_v15 = vsub.f32 %v830_v43, %v1000_v13  ;;  %v1009_v16 = vsub.f32 %v832_v57, %v1000_v13  ;;  %v883_v19 = vrot.slane %v882_v14, 4 }
 0x1ee   :  { %v1024_v20 = vmul.f32 1.442695, %v1008_v15  ;;  %v1026_v21 = vmul.f32 1.442695, %v1009_v16  ;;  %v884_v22 = vmax.f32 %v882_v14, %v883_v19 }
 0x1f0   :  { %1799 = vpow2.f32 %v1024_v20  ;;  %v885_v23 = vrot.slane %v884_v22, 2  ;;  %v840_v24 = vpop.f32.mrf.mxu3 }
 0x1f1   :  { %1801 = vpow2.f32 %v1026_v21  ;;  %v889_v38 = vsel %vm870_vm0, %v840_v24, -inf }
 0x1f2   :  { %v886_v26 = vmax.f32 %v884_v22, %v885_v23 }
 0x1f4   :  { %v887_v29 = vrot.slane %v886_v26, 1 }
 0x1f6   :  { %v2333_v30 = vpop.eup %1799  ;;  %v888_v31 = vmax.f32 %v886_v26, %v887_v29 }
 0x1f7   :  { %v2336_v32 = vpop.eup %1801  ;;  %v1056_v56 = vsel %vm870_vm0, %v2333_v30, 0.0 }
 0x1f8   :  { %v1057_v4 = vsel %vm870_vm0, %v2336_v32, 0.0  ;;  %v960_v27 = vmax.f32 %v888_v31, %v944_v35  ;;  %v842_v33 = vpop.f32.mrf.mxu3 }
 0x1f9   :  { %v1058_v34 = vadd.f32 %v1057_v4, %v1056_v56  ;;  %v890_v40 = vsel %vm870_vm0, %v842_v33, -inf }
 0x1fa   :  { %v975_v42 = vrot.slane %v960_v27, 7  ;;  %v1001_v44 = vperm.slane %v960_v27, 0  ;;  %v891_v47 = vmax.f32 %v889_v38, %v890_v40 }
 0x1fb   :  { %v1059_v63 = vrot.slane %v1058_v34, 4 }
 0x1fc   :  { %v977_v50 = vsel %vm976_vm1, %v975_v42, %v959_v7  ;;  %v1010_v51 = vsub.f32 %v835_v2, %v1001_v44  ;;  %v1011_v43 = vsub.f32 %v837_v8, %v1001_v44  ;;  %v892_v55 = vrot.slane %v891_v47, 4 }
 0x1fd   :  { %v1060_v5 = vadd.f32 %v1059_v63, %v1058_v34  ;;  %v945_v7 = vrot.slane %v2326_v53, 2 }
 0x1fe   :  { %v1028_v57 = vmul.f32 1.442695, %v1010_v51  ;;  %v1030_v59 = vmul.f32 1.442695, %v1011_v43  ;;  %v893_v60 = vmax.f32 %v891_v47, %v892_v55 }
 0x1ff   :  { %v1061_v15 = vrot.slane %v1060_v5, 2 }
 0x200   :  { %1803 = vpow2.f32 %v1028_v57  ;;  %v894_v61 = vrot.slane %v893_v60, 2  ;;  %v2345_v62 = vpop.f32.mrf.mxu3 }
 0x201   :  { %1805 = vpow2.f32 %v1030_v59  ;;  %v898_v19 = vsel %vm870_vm0, %v2345_v62, -inf  ;;  %v1062_v4 = vadd.f32 %v1061_v15, %v1060_v5 }
 0x202   :  { %v895_v1 = vmax.f32 %v893_v60, %v894_v61 }
 0x203   :  { %v1063_v44 = vrot.slane %v1062_v4, 1 }
 0x204   :  { %v896_v3 = vrot.slane %v895_v1, 1 }
 0x205   :  { %v1064_v57 = vadd.f32 %v1063_v44, %v1062_v4  ;;  %v947_v44 = vrot.slane %v2326_v53, 4 }
 0x206   :  { %v2347_v6 = vpop.eup %1803  ;;  %v897_v11 = vmax.f32 %v895_v1, %v896_v3 }
 0x207   :  { %v2350_v2 = vpop.eup %1805  ;;  %v1065_v8 = vsel %vm870_vm0, %v2347_v6, 0.0 }
 0x208   :  { %v1066_v12 = vsel %vm870_vm0, %v2350_v2, 0.0  ;;  %v961_v13 = vmax.f32 %v897_v11, %v945_v7  ;;  %v847_v14 = vpop.f32.mrf.mxu3 }
 0x209   :  { %v1067_v16 = vadd.f32 %v1066_v12, %v1065_v8  ;;  %v899_v20 = vsel %vm870_vm0, %v847_v14, -inf }
 0x20a   :  { %v978_v21 = vrot.slane %v961_v13, 6  ;;  %v1002_v22 = vperm.slane %v961_v13, 0  ;;  %v900_v23 = vmax.f32 %v898_v19, %v899_v20 }
 0x20b   :  { %v1068_v26 = vrot.slane %v1067_v16, 4 }
 0x20c   :  { %v980_v29 = vsel %vm979_vm2, %v978_v21, %v977_v50  ;;  %v2360_v31 = vsub.f32 %v840_v24, %v1002_v22  ;;  %v2362_v35 = vsub.f32 %v842_v33, %v1002_v22  ;;  %v901_v56 = vrot.slane %v900_v23, 4 }
 0x20d   :  { %v1069_v27 = vadd.f32 %v1068_v26, %v1067_v16  ;;  %v946_v24 = vrot.slane %v2326_v53, 3 }
 0x20e   :  { %v902_v34 = vmax.f32 %v900_v23, %v901_v56 }
 0x20f   :  { %v1070_v38 = vrot.slane %v1069_v27, 2 }
 0x210   :  { %v903_v40 = vrot.slane %v902_v34, 2  ;;  %v850_v42 = vpop.f32.mrf.mxu3 }
 0x211   :  { %v1071_v47 = vadd.f32 %v1070_v38, %v1069_v27  ;;  %v907_v7 = vsel %vm870_vm0, %v850_v42, -inf }
 0x212   :  { %v904_v51 = vmax.f32 %v902_v34, %v903_v40 }
 0x213   :  { %v1072_v43 = vrot.slane %v1071_v47, 1 }
 0x214   :  { %v905_v55 = vrot.slane %v904_v51, 1 }
 0x215   :  { %v1073_v59 = vadd.f32 %v1072_v43, %v1071_v47 }
 0x216   :  { %v906_v60 = vmax.f32 %v904_v51, %v905_v55 }
 0x217   :  { %v2366_v33 = vsel %vm976_vm1, %v1073_v59, %v1064_v57  ;;  %v948_v59 = vrot.slane %v2326_v53, 5 }
 0x218   :  { %v962_v50 = vmax.f32 %v906_v60, %v946_v24  ;;  %v852_v61 = vpop.f32.mrf.mxu3 }
 0x219   :  { %v908_v11 = vsel %vm870_vm0, %v852_v61, -inf }
 0x21a   :  { %v981_v63 = vrot.slane %v962_v50, 5  ;;  %v1003_v1 = vperm.slane %v962_v50, 0  ;;  %v909_v8 = vmax.f32 %v907_v7, %v908_v11 }
 0x21c   :  { %v2369_v3 = vsel %vm982_vm3, %v981_v63, %v980_v29  ;;  %v1015_v5 = vsub.f32 %v847_v14, %v1003_v1  ;;  %v910_v13 = vrot.slane %v909_v8, 4 }
 0x21e   :  { %v911_v15 = vmax.f32 %v909_v8, %v910_v13  ;;  %v1014_v8 = vsub.f32 %v2345_v62, %v1003_v1 }
 0x220   :  { %v855_v12 = vpop.f32.mrf.mxu3  ;;  %v912_v22 = vrot.slane %v911_v15, 2 }
 0x221   :  { %v916_v19 = vsel %vm870_vm0, %v855_v12, -inf }
 0x222   :  { %v913_v29 = vmax.f32 %v911_v15, %v912_v22 }
 0x224   :  { %v914_v27 = vrot.slane %v913_v29, 1 }
 0x226   :  { %v915_v38 = vmax.f32 %v913_v29, %v914_v27 }
 0x228   :  { %v857_v16 = vpop.f32.mrf.mxu3  ;;  %v2378_v57 = vmax.f32 %v915_v38, %v947_v44 }
 0x229   :  { %v917_v20 = vsel %vm870_vm0, %v857_v16, -inf }
 0x22a   :  { %v918_v21 = vmax.f32 %v916_v19, %v917_v20  ;;  %v1004_v63 = vperm.slane %v2378_v57, 0  ;;  %v1032_v19 = vmul.f32 1.442695, %v2360_v31 }
 0x22c   :  { %v919_v23 = vrot.slane %v918_v21, 4  ;;  %v1016_v20 = vsub.f32 %v850_v42, %v1004_v63  ;;  %v1017_v22 = vsub.f32 %v852_v61, %v1004_v63  ;;  %1807 = vpow2.f32 %v1032_v19 }
 0x22e   :  { %v920_v26 = vmax.f32 %v918_v21, %v919_v23  ;;  %v1034_v21 = vmul.f32 1.442695, %v2362_v35  ;;  %v1040_v38 = vmul.f32 1.442695, %v1016_v20  ;;  %v1042_v62 = vmul.f32 1.442695, %v1017_v22 }
 0x230   :  { %v921_v56 = vrot.slane %v920_v26, 2  ;;  %v860_v14 = vpop.f32.mrf.mxu3  ;;  %1809 = vpow2.f32 %v1034_v21 }
 0x231   :  { %v925_v51 = vsel %vm870_vm0, %v860_v14, -inf }
 0x232   :  { %v922_v4 = vmax.f32 %v920_v26, %v921_v56  ;;  %v1036_v26 = vmul.f32 1.442695, %v1014_v8  ;;  %v1038_v56 = vmul.f32 1.442695, %v1015_v5 }
 0x234   :  { %v923_v34 = vrot.slane %v922_v4, 1  ;;  %1811 = vpow2.f32 %v1036_v26 }
 0x235   :  { %1813 = vpow2.f32 %v1038_v56 }
 0x236   :  { %v924_v47 = vmax.f32 %v922_v4, %v923_v34  ;;  %v949_v34 = vrot.slane %v2326_v53, 6  ;;  %1815 = vpow2.f32 %v1040_v38 }
 0x237   :  { %1817 = vpow2.f32 %v1042_v62 }
 0x238   :  { %v862_v40 = vpop.f32.mrf.mxu3  ;;  %v2381_v24 = vmax.f32 %v924_v47, %v948_v59 }
 0x239   :  { %v926_v43 = vsel %vm870_vm0, %v862_v40, -inf }
 0x23a   :  { %v927_v55 = vmax.f32 %v925_v51, %v926_v43  ;;  %v1005_v13 = vperm.slane %v2381_v24, 0  ;;  %v2397_v43 = vpop.eup %1807 }
 0x23b   :  { %v1074_v20 = vsel %vm870_vm0, %v2397_v43, 0.0 }
 0x23c   :  { %v928_v60 = vrot.slane %v927_v55, 4  ;;  %v1018_v29 = vsub.f32 %v855_v12, %v1005_v13  ;;  %v1019_v4 = vsub.f32 %v857_v16, %v1005_v13 }
 0x23e   :  { %v929_v50 = vmax.f32 %v927_v55, %v928_v60  ;;  %v1044_v31 = vmul.f32 1.442695, %v1018_v29  ;;  %v1046_v61 = vmul.f32 1.442695, %v1019_v4  ;;  %v2399_v55 = vpop.eup %1809 }
 0x23f   :  { %v2401_v63 = vpop.eup %1811  ;;  %v1075_v21 = vsel %vm870_vm0, %v2399_v55, 0.0 }
 0x240   :  { %v930_v11 = vrot.slane %v929_v50, 2  ;;  %v2384_v7 = vpop.f32.mrf.mxu3  ;;  %1819 = vpow2.f32 %v1044_v31  ;;  %v1076_v62 = vadd.f32 %v1075_v21, %v1074_v20 }
 0x241   :  { %v934_v35 = vsel %vm870_vm0, %v2384_v7, -inf  ;;  %1821 = vpow2.f32 %v1046_v61 }
 0x242   :  { %v931_v15 = vmax.f32 %v929_v50, %v930_v11  ;;  %v2403_v11 = vpop.eup %1813 }
 0x243   :  { %v2405_v13 = vpop.eup %1815  ;;  %v1084_v26 = vsel %vm870_vm0, %v2403_v11, 0.0 }
 0x244   :  { %v932_v23 = vrot.slane %v931_v15, 1  ;;  %v1092_v56 = vsel %vm870_vm0, %v2405_v13, 0.0 }
 0x246   :  { %v933_v27 = vmax.f32 %v931_v15, %v932_v23  ;;  %v1083_v23 = vsel %vm870_vm0, %v2401_v63, 0.0 }
 0x248   :  { %v2391_v1 = vmax.f32 %v933_v27, %v949_v34  ;;  %v867_v44 = vpop.f32.mrf.mxu3  ;;  %v950_v34 = vrot.slane %v2326_v53, 7 }
 0x249   :  { %v935_v42 = vsel %vm870_vm0, %v867_v44, -inf }
 0x24a   :  { %v1006_v5 = vperm.slane %v2391_v1, 0  ;;  %v936_v12 = vmax.f32 %v934_v35, %v935_v42  ;;  %v1085_v42 = vadd.f32 %v1084_v26, %v1083_v23 }
 0x24c   :  { %v1020_v16 = vsub.f32 %v860_v14, %v1006_v5  ;;  %v1021_v47 = vsub.f32 %v862_v40, %v1006_v5  ;;  %v937_v51 = vrot.slane %v936_v12, 4  ;;  %v2407_v14 = vpop.eup %1817 }
 0x24d   :  { %v2409_v15 = vpop.eup %1819  ;;  %v1093_v4 = vsel %vm870_vm0, %v2407_v14, 0.0 }
 0x24e   :  { %v1048_v59 = vmul.f32 1.442695, %v1020_v16  ;;  %v1050_v60 = vmul.f32 1.442695, %v1021_v47  ;;  %v938_v50 = vmax.f32 %v936_v12, %v937_v51  ;;  %v2411_v19 = vpop.eup %1821  ;;  %v1101_v31 = vsel %vm870_vm0, %v2409_v15, 0.0 }
 0x24f   :  { %v1102_v35 = vsel %vm870_vm0, %v2411_v19, 0.0  ;;  %v1094_v16 = vadd.f32 %v1093_v4, %v1092_v56 }
 0x250   :  { %1823 = vpow2.f32 %v1048_v59  ;;  %v939_v8 = vrot.slane %v938_v50, 2  ;;  %v1103_v47 = vadd.f32 %v1102_v35, %v1101_v31  ;;  %v1077_v59 = vrot.slane %v1076_v62, 4 }
 0x251   :  { %1825 = vpow2.f32 %v1050_v60  ;;  %v984_v31 = vrot.slane %v2378_v57, 4 }
 0x252   :  { %v940_v40 = vmax.f32 %v938_v50, %v939_v8  ;;  %v1146_v50 = vld [vmem:[%s2564_s9] sm:$0x3]  ;;  %v1086_v8 = vrot.slane %v1085_v42, 4  ;;  %v1104_v23 = vrot.slane %v1103_v47, 4  ;;  %v1078_v56 = vadd.f32 %v1077_v59, %v1076_v62 }
 0x253   :  { %v1154_v21 = vsel %vm1152_vm4, %v1146_v50, 0  ;;  %v986_v62 = vsel %vm985_vm5, %v984_v31, %v2369_v3 }
 0x254   :  { %v941_v22 = vrot.slane %v940_v40, 1  ;;  %1163 = vmatpush.bf16.msrb.mxu2 %v1154_v21 }
 0x256   :  { %v2421_v29 = vpop.eup %1823  ;;  %v942_v27 = vmax.f32 %v940_v40, %v941_v22  ;;  %v1095_v22 = vrot.slane %v1094_v16, 4 }
 0x257   :  { %v2428_v38 = vpop.eup %1825  ;;  %v1110_v61 = vsel %vm870_vm0, %v2421_v29, 0.0 }
 0x258   :  { %v1111_v5 = vsel %vm870_vm0, %v2428_v38, 0.0  ;;  %v966_v12 = vmax.f32 %v942_v27, %v950_v34  ;;  %1296 = vmatpush.bf16.msra.mxu2 %v1154_v21  ;;  %v1087_v34 = vadd.f32 %v1086_v8, %v1085_v42  ;;  %v1096_v35 = vadd.f32 %v1095_v22, %v1094_v16 }
 0x259   :  { %v1112_v60 = vadd.f32 %v1111_v5, %v1110_v61  ;;  %v987_v61 = vrot.slane %v2381_v24, 3  ;;  %v1079_v5 = vrot.slane %v1078_v56, 2 }
 0x25a   :  { %v1007_v51 = vperm.slane %v966_v12, 0  ;;  %v993_v50 = vrot.slane %v966_v12, 1  ;;  %v1097_v57 = vrot.slane %v1096_v35, 2 }
 0x25b   :  { %v1113_v4 = vrot.slane %v1112_v60, 4  ;;  %v989_v42 = vsel %vm988_vm6, %v987_v61, %v986_v62  ;;  %v1080_v59 = vadd.f32 %v1079_v5, %v1078_v56 }
 0x25c   :  { %v1022_v40 = vsub.f32 %v2384_v7, %v1007_v51  ;;  %v1023_v20 = vsub.f32 %v867_v44, %v1007_v51  ;;  %v1105_v7 = vadd.f32 %v1104_v23, %v1103_v47  ;;  %v990_v44 = vrot.slane %v2391_v1, 2 }
 0x25d   :  { %v1114_v51 = vadd.f32 %v1113_v4, %v1112_v60  ;;  %v1098_v3 = vadd.f32 %v1097_v57, %v1096_v35 }
 0x25e   :  { %v1052_v26 = vmul.f32 1.442695, %v1022_v40  ;;  %v1054_v27 = vmul.f32 1.442695, %v1023_v20  ;;  %v1088_v40 = vrot.slane %v1087_v34, 2  ;;  %v1106_v24 = vrot.slane %v1105_v7, 2 }
 0x25f   :  { %v992_v47 = vsel %vm991_vm7, %v990_v44, %v989_v42  ;;  %v1115_v1 = vrot.slane %v1114_v51, 2  ;;  %v1099_v61 = vrot.slane %v1098_v3, 1 }
 0x260   :  { %1827 = vpow2.f32 %v1052_v26  ;;  %v995_v8 = vsel %vm994_vm8, %v993_v50, %v992_v47  ;;  %v1089_v20 = vadd.f32 %v1088_v40, %v1087_v34  ;;  %v1107_v22 = vadd.f32 %v1106_v24, %v1105_v7 }
 0x261   :  { %1829 = vpow2.f32 %v1054_v27  ;;  %v997_v23 = vsub.f32 %v2326_v53, %v995_v8  ;;  %v1081_v27 = vrot.slane %v1080_v59, 1  ;;  %v1116_v4 = vadd.f32 %v1115_v1, %v1114_v51 }
 0x262   :  { %v1090_v56 = vrot.slane %v1089_v20, 1  ;;  %v1108_v44 = vrot.slane %v1107_v22, 1  ;;  %v1100_v35 = vadd.f32 %v1099_v61, %v1098_v3 }
 0x263   :  { %v998_v5 = vmul.f32 1.442695, %v997_v23  ;;  %v1082_v62 = vadd.f32 %v1081_v27, %v1080_v59  ;;  %v1117_v42 = vrot.slane %v1116_v4, 1 }
 0x264   :  { %v1091_v47 = vadd.f32 %v1090_v56, %v1089_v20  ;;  %v1109_v40 = vadd.f32 %v1108_v44, %v1107_v22 }
 0x265   :  { %1831 = vpow2.f32 %v998_v5  ;;  %v1137_v53 = vsel %vm979_vm2, %v1082_v62, %v2366_v33  ;;  %v1118_v7 = vadd.f32 %v1117_v42, %v1116_v4 }
 0x266   :  { %v2448_v16 = vpop.eup %1827  ;;  %v1138_v51 = vsel %vm982_vm3, %v1091_v47, %v1137_v53 }
 0x267   :  { %v1119_v12 = vsel %vm870_vm0, %v2448_v16, 0.0  ;;  %v2454_v60 = vpop.eup %1829  ;;  %v1139_v1 = vsel %vm985_vm5, %v1100_v35, %v1138_v51 }
 0x268   :  { %v1120_v21 = vsel %vm870_vm0, %v2454_v60, 0.0  ;;  %v1140_v8 = vsel %vm988_vm6, %v1109_v40, %v1139_v1 }
 0x269   :  { %v1121_v26 = vadd.f32 %v1120_v21, %v1119_v12  ;;  %v1141_v59 = vsel %vm991_vm7, %v1118_v7, %v1140_v8 }
 0x26b   :  { %v1122_v31 = vrot.slane %v1121_v26, 4  ;;  %v1832_v20 = vpop.eup %1831 }
 0x26d   :  { %v1123_v50 = vadd.f32 %v1122_v31, %v1121_v26 }
 0x26f   :  { %v1124_v34 = vrot.slane %v1123_v50, 2 }
 0x271   :  { %v1125_v57 = vadd.f32 %v1124_v34, %v1123_v50 }
 0x273   :  { %v1126_v24 = vrot.slane %v1125_v57, 1 }
 0x275   :  { %v1127_v12 = vadd.f32 %v1126_v24, %v1125_v57 }
 0x277   :  { %v1142_v3 = vsel %vm994_vm8, %v1127_v12, %v1141_v59 }
 0x278   :  { %v1144_v21 = vadd.f32 %v1832_v20, %v1142_v3 }
 0x27a   :  { %1833 = vrcp.f32 %v1144_v21 }
 0x280   :  { %v2466_v22 = vpop.eup %1833 }
 0x281   :  { %v1147_v33 = vmul.f32 %v2466_v22, %v1832_v20  ;;  %v1177_v23 = vperm.slane %v2466_v22, 0  ;;  %v1170_v26 = vrot.slane %v2466_v22, 1  ;;  %v1175_v35 = vrot.slane %v2466_v22, 6 }
 0x282   :  { %v1176_v7 = vrot.slane %v2466_v22, 7 }
 0x283   :  { %v1148_v27 = vpack.c.bf16 %v1147_v33, %v1147_v33  ;;  %v1193_v4 = vmul.f32 %v2333_v30, %v1177_v23  ;;  %v1194_v56 = vmul.f32 %v2336_v32, %v1177_v23  ;;  %v1178_v31 = vperm.slane %v1170_v26, 0 }
 0x284   :  { %v1183_v32 = vperm.slane %v1175_v35, 0 }
 0x285   :  { %1691 = vmatmul.msk.bf16.vlgmr.msrb.gmra.mxu2 %vm870_vm0, %v1148_v27  ;;  %v1209_v61 = vpack.c.bf16 %v1193_v4, %v1193_v4  ;;  %v1210_v44 = vpack.c.bf16 %v1194_v56, %v1194_v56  ;;  %v1195_v5 = vmul.f32 %v2347_v6, %v1178_v31  ;;  %v1196_v50 = vmul.f32 %v2350_v2, %v1178_v31 }
 0x286   :  { %v1205_v51 = vmul.f32 %v2421_v29, %v1183_v32  ;;  %v1206_v24 = vmul.f32 %v2428_v38, %v1183_v32  ;;  %v1184_v6 = vperm.slane %v1176_v7, 0  ;;  %v1171_v29 = vrot.slane %v2466_v22, 2 }
 0x287   :  { %v1241_v62 = vunpack.c.l.b16 %v1209_v61  ;;  %v1242_v42 = vunpack.c.l.b16 %v1210_v44  ;;  %v1211_v47 = vpack.c.bf16 %v1195_v5, %v1195_v5  ;;  %v1212_v34 = vpack.c.bf16 %v1196_v50, %v1196_v50 }
 0x288   :  { %v1221_v1 = vpack.c.bf16 %v1205_v51, %v1205_v51  ;;  %v1222_v2 = vpack.c.bf16 %v1206_v24, %v1206_v24  ;;  %v1207_v8 = vmul.f32 %v2448_v16, %v1184_v6  ;;  %v1208_v12 = vmul.f32 %v2454_v60, %v1184_v6 }
 0x289   :  { %v1257_v40 = vpack.c.b16 %v1242_v42, %v1241_v62  ;;  %v1243_v57 = vunpack.c.l.b16 %v1211_v47  ;;  %v1244_v30 = vunpack.c.l.b16 %v1212_v34  ;;  %v1179_v38 = vperm.slane %v1171_v29, 0 }
 0x28a   :  { %v1253_v59 = vunpack.c.l.b16 %v1221_v1  ;;  %v1254_v20 = vunpack.c.l.b16 %v1222_v2  ;;  %v1223_v3 = vpack.c.bf16 %v1207_v8, %v1207_v8  ;;  %v1224_v21 = vpack.c.bf16 %v1208_v12, %v1208_v12 }
 0x28b   :  { %v1258_v53 = vpack.c.b16 %v1244_v30, %v1243_v57  ;;  %v1197_v4 = vmul.f32 %v2397_v43, %v1179_v38  ;;  %v1198_v16 = vmul.f32 %v2399_v55, %v1179_v38  ;;  %v1172_v44 = vrot.slane %v2466_v22, 3 }
 0x28c   :  { %v1263_v33 = vpack.c.b16 %v1254_v20, %v1253_v59  ;;  %v1255_v23 = vunpack.c.l.b16 %v1223_v3  ;;  %v1256_v26 = vunpack.c.l.b16 %v1224_v21  ;;  %v1173_v55 = vrot.slane %v2466_v22, 4 }
 0x28d   :  { %v1213_v60 = vpack.c.bf16 %v1197_v4, %v1197_v4  ;;  %v1214_v56 = vpack.c.bf16 %v1198_v16, %v1198_v16  ;;  %v1180_v50 = vperm.slane %v1172_v44, 0 }
 0x28e   :  { %v1264_v27 = vpack.c.b16 %v1256_v26, %v1255_v23  ;;  %v1181_v57 = vperm.slane %v1173_v55, 0 }
 0x28f   :  { %v1245_v31 = vunpack.c.l.b16 %v1213_v60  ;;  %v1246_v61 = vunpack.c.l.b16 %v1214_v56  ;;  %v1199_v62 = vmul.f32 %v2401_v63, %v1180_v50  ;;  %v1200_v42 = vmul.f32 %v2403_v11, %v1180_v50 }
 0x290   :  { %v1201_v30 = vmul.f32 %v2405_v13, %v1181_v57  ;;  %v1174_v11 = vrot.slane %v2466_v22, 5 }
 0x291   :  { %v1259_v5 = vpack.c.b16 %v1246_v61, %v1245_v31  ;;  %v1215_v47 = vpack.c.bf16 %v1199_v62, %v1199_v62  ;;  %v1216_v34 = vpack.c.bf16 %v1200_v42, %v1200_v42 }
 0x292   :  { %v1217_v32 = vpack.c.bf16 %v1201_v30, %v1201_v30  ;;  %v1182_v6 = vperm.slane %v1174_v11, 0 }
 0x293   :  { %v1247_v35 = vunpack.c.l.b16 %v1215_v47  ;;  %v1248_v43 = vunpack.c.l.b16 %v1216_v34 }
 0x294   :  { %v1249_v51 = vunpack.c.l.b16 %v1217_v32  ;;  %v1203_v1 = vmul.f32 %v2409_v15, %v1182_v6  ;;  %v1204_v2 = vmul.f32 %v2411_v19, %v1182_v6  ;;  %v1779_v19 = vld [vmem:[#allocation13 + $0x38] sm:$0xff] }
 0x295   :  { %1692 = vmatmul.msk.bf16.vlgmr.msra.gmra.mxu2 %vm870_vm0, %v1257_v40  ;;  %v1260_v40 = vpack.c.b16 %v1248_v43, %v1247_v35  ;;  %1497 = vmatpush.bf16.msra.mxu0 %v1779_v19  ;;  %v1775_v19 = vld [vmem:[#allocation13 + $0x18] sm:$0xff] }
 0x296   :  { %v1219_v8 = vpack.c.bf16 %v1203_v1, %v1203_v1  ;;  %v1220_v12 = vpack.c.bf16 %v1204_v2, %v1204_v2 }
 0x298   :  { %v1251_v59 = vunpack.c.l.b16 %v1219_v8  ;;  %v1252_v13 = vunpack.c.l.b16 %v1220_v12 }
 0x29a   :  { %v1262_v20 = vpack.c.b16 %v1252_v13, %v1251_v59 }
 0x2a5   :  { %1693 = vmatmul.msk.bf16.gmra.mxu2 %vm870_vm0, %v1258_v53  ;;  %v1202_v53 = vmul.f32 %v2407_v14, %v1181_v57  ;;  %v2502_v14 = vperm.slane %v2259_v41, 1 }
 0x2a7   :  { %v1218_v7 = vpack.c.bf16 %v1202_v53, %v1202_v53  ;;  %v437_v22 = vadd.f32 %v2269_v54, %v2502_v14  ;;  %v599_v23 = vadd.f32 %v2276_v10, %v2502_v14  ;;  %v601_v41 = vadd.f32 %v2279_v18, %v2502_v14 }
 0x2a8   :  { %v604_v54 = vadd.f32 %v2283_v25, %v2502_v14  ;;  %v606_v31 = vadd.f32 %v2286_v36, %v2502_v14  ;;  %v609_v42 = vadd.f32 %v2290_v37, %v2502_v14  ;;  %v611_v36 = vadd.f32 %v2293_v48, %v2502_v14 }
 0x2a9   :  { %v1250_v63 = vunpack.c.l.b16 %v1218_v7  ;;  %v616_v48 = vadd.f32 %v2300_v0, %v2502_v14  ;;  %v621_v0 = vadd.f32 %v2307_v17, %v2502_v14  ;;  %v626_v17 = vadd.f32 %v2313_v46, %v2502_v14 }
 0x2aa   :  { %v631_v46 = vadd.f32 %v2320_v49, %v2502_v14  ;;  %v636_v49 = vadd.f32 %v2324_v52, %v2502_v14  ;;  %v1798_v52 = vld [vmem:[%s2566_s11] ss:$0 sm:$0xff] }
 0x2ab   :  { %v1261_v24 = vpack.c.b16 %v1250_v63, %v1249_v51  ;;  %v1776_v63 = vld [vmem:[#allocation13 + $0x20] sm:$0xff] }
 0x2b5   :  { %1694 = vmatmul.msk.bf16.gmra.mxu2 %vm870_vm0, %v1259_v5  ;;  %v1777_v5 = vld [vmem:[#allocation13 + $0x28] sm:$0xff] }
 0x2c5   :  { %1695 = vmatmul.msk.bf16.gmra.mxu2 %vm870_vm0, %v1260_v40 }
 0x2d5   :  { %1696 = vmatmul.msk.bf16.gmra.mxu2 %vm870_vm0, %v1261_v24  ;;  %v614_v24 = vadd.f32 %v2297_v58, %v2502_v14 }
 0x2e5   :  { %1697 = vmatmul.msk.bf16.gmra.mxu2 %vm870_vm0, %v1262_v20 }
 0x2f5   :  { %1698 = vmatmul.msk.bf16.gmra.mxu2 %vm870_vm0, %v1263_v33 }
 0x305   :  { %1699 = vmatmul.msk.bf16.gmra.mxu2 %vm870_vm0, %v1264_v27  ;;  %v1778_v27 = vld [vmem:[#allocation13 + $0x30] sm:$0xff] }
 0x306   :  { %1498 = vmatpush.bf16.msra.mxu0 %v1778_v27 }
 0x308   :  { %v1165_v15 = vpop.f32.mrf.mxu2 }
 0x309   :  { %v2507_v3 = vmul.f32 %v1165_v15, %v437_v22 }
 0x30a   :  { %1499 = vmatpush.bf16.msra.mxu0 %v1777_v5 }
 0x30e   :  { %1500 = vmatpush.bf16.msra.mxu0 %v1776_v63 }
 0x310   :  { %v1167_v21 = vpop.f32.mrf.mxu2 }
 0x312   :  { %1501 = vmatpush.bf16.msra.mxu0 %v1775_v19 }
 0x318   :  { %v1298_v26 = vpop.f32.mrf.mxu2 }
 0x319   :  { %v1339_v29 = vmul.f32 %v1298_v26, %v599_v23 }
 0x320   :  { %v1300_v33 = vpop.f32.mrf.mxu2 }
 0x321   :  { %v1340_v38 = vmul.f32 %v1300_v33, %v601_v41 }
 0x323   :  { %v1355_v4 = vadd.f32 %v1340_v38, %v1339_v29  ;;  %v619_v38 = vadd.f32 %v2304_v9, %v2502_v14  ;;  %v624_v9 = vadd.f32 %v2311_v28, %v2502_v14  ;;  %v629_v28 = vadd.f32 %v2318_v39, %v2502_v14 }
 0x324   :  { %v634_v39 = vadd.f32 %v2322_v45, %v2502_v14 }
 0x325   :  { %v1356_v56 = vrot.slane %v1355_v4, 4 }
 0x327   :  { %v1357_v10 = vadd.f32 %v1356_v56, %v1355_v4  ;;  %v1774_v56 = vld [vmem:[#allocation13 + $0x10] sm:$0xff] }
 0x328   :  { %v1303_v16 = vpop.f32.mrf.mxu2  ;;  %1502 = vmatpush.bf16.msra.mxu0 %v1774_v56 }
 0x329   :  { %v1341_v60 = vmul.f32 %v1303_v16, %v604_v54  ;;  %v1358_v50 = vrot.slane %v1357_v10, 2 }
 0x32b   :  { %v1359_v47 = vadd.f32 %v1358_v50, %v1357_v10 }
 0x32d   :  { %v1360_v55 = vrot.slane %v1359_v47, 1 }
 0x32f   :  { %v1361_v30 = vadd.f32 %v1360_v55, %v1359_v47 }
 0x330   :  { %v1305_v61 = vpop.f32.mrf.mxu2 }
 0x331   :  { %v1342_v44 = vmul.f32 %v1305_v61, %v606_v31 }
 0x333   :  { %v1362_v18 = vadd.f32 %v1342_v44, %v1341_v60 }
 0x335   :  { %v1363_v62 = vrot.slane %v1362_v18, 4 }
 0x337   :  { %v1364_v34 = vadd.f32 %v1363_v62, %v1362_v18 }
 0x338   :  { %v1308_v25 = vpop.f32.mrf.mxu2 }
 0x339   :  { %v1365_v35 = vrot.slane %v1364_v34, 2  ;;  %v1343_v43 = vmul.f32 %v1308_v25, %v609_v42  ;;  %v1773_v42 = vld [vmem:[#allocation13 + $0x8] sm:$0xff] }
 0x33a   :  { %1503 = vmatpush.bf16.msra.mxu0 %v1773_v42 }
 0x33b   :  { %v1366_v40 = vadd.f32 %v1365_v35, %v1364_v34 }
 0x33d   :  { %v1367_v57 = vrot.slane %v1366_v40, 1 }
 0x33f   :  { %v1368_v53 = vadd.f32 %v1367_v57, %v1366_v40 }
 0x340   :  { %v1310_v32 = vpop.f32.mrf.mxu2 }
 0x341   :  { %v1419_v7 = vsel %vm976_vm1, %v1368_v53, %v1361_v30  ;;  %v1344_v51 = vmul.f32 %v1310_v32, %v611_v36 }
 0x343   :  { %v1369_v11 = vadd.f32 %v1344_v51, %v1343_v43 }
 0x345   :  { %v1370_v37 = vrot.slane %v1369_v11, 4 }
 0x347   :  { %v1371_v6 = vadd.f32 %v1370_v37, %v1369_v11 }
 0x348   :  { %v1313_v1 = vpop.f32.mrf.mxu2 }
 0x349   :  { %v1372_v2 = vrot.slane %v1371_v6, 2  ;;  %v1345_v8 = vmul.f32 %v1313_v1, %v614_v24 }
 0x34b   :  { %v1373_v12 = vadd.f32 %v1372_v2, %v1371_v6 }
 0x34d   :  { %v1374_v59 = vrot.slane %v1373_v12, 1 }
 0x34f   :  { %v1375_v13 = vadd.f32 %v1374_v59, %v1373_v12 }
 0x350   :  { %v1315_v20 = vpop.f32.mrf.mxu2 }
 0x351   :  { %v1420_v22 = vsel %vm979_vm2, %v1375_v13, %v1419_v7  ;;  %v1346_v15 = vmul.f32 %v1315_v20, %v616_v48  ;;  %v1772_v7 = vld [vmem:[#allocation13] sm:$0xff] }
 0x352   :  { %1504 = vmatpush.bf16.msra.mxu0 %v1772_v7 }
 0x353   :  { %v1376_v21 = vadd.f32 %v1346_v15, %v1345_v8 }
 0x355   :  { %v1377_v23 = vrot.slane %v1376_v21, 4 }
 0x357   :  { %v1378_v26 = vadd.f32 %v1377_v23, %v1376_v21 }
 0x358   :  { %v1318_v58 = vpop.f32.mrf.mxu2 }
 0x359   :  { %v1379_v29 = vrot.slane %v1378_v26, 2  ;;  %v1347_v16 = vmul.f32 %v1318_v58, %v619_v38 }
 0x35b   :  { %v1380_v41 = vadd.f32 %v1379_v29, %v1378_v26 }
 0x35d   :  { %v1381_v33 = vrot.slane %v1380_v41, 1 }
 0x35f   :  { %v1382_v27 = vadd.f32 %v1381_v33, %v1380_v41 }
 0x360   :  { %v1320_v4 = vpop.f32.mrf.mxu2 }
 0x361   :  { %v1421_v54 = vsel %vm982_vm3, %v1382_v27, %v1420_v22  ;;  %v1348_v60 = vmul.f32 %v1320_v4, %v621_v0 }
 0x363   :  { %v1383_v31 = vadd.f32 %v1348_v60, %v1347_v16 }
 0x365   :  { %v1384_v10 = vrot.slane %v1383_v31, 4 }
 0x367   :  { %v1385_v61 = vadd.f32 %v1384_v10, %v1383_v31 }
 0x368   :  { %v1323_v44 = vpop.f32.mrf.mxu2 }
 0x369   :  { %v1386_v5 = vrot.slane %v1385_v61, 2  ;;  %v1349_v25 = vmul.f32 %v1323_v44, %v624_v9 }
 0x36b   :  { %v1387_v50 = vadd.f32 %v1386_v5, %v1385_v61 }
 0x36d   :  { %v1388_v18 = vrot.slane %v1387_v50, 1 }
 0x36f   :  { %v1389_v62 = vadd.f32 %v1388_v18, %v1387_v50 }
 0x370   :  { %v1325_v47 = vpop.f32.mrf.mxu2 }
 0x371   :  { %v1422_v34 = vsel %vm985_vm5, %v1389_v62, %v1421_v54  ;;  %v1350_v35 = vmul.f32 %v1325_v47, %v626_v17 }
 0x373   :  { %v1390_v43 = vadd.f32 %v1350_v35, %v1349_v25 }
 0x375   :  { %v1391_v55 = vrot.slane %v1390_v43, 4 }
 0x377   :  { %v1392_v40 = vadd.f32 %v1391_v55, %v1390_v43 }
 0x378   :  { %v1328_v57 = vpop.f32.mrf.mxu2 }
 0x379   :  { %v1393_v36 = vrot.slane %v1392_v40, 2  ;;  %v1351_v11 = vmul.f32 %v1328_v57, %v629_v28 }
 0x37b   :  { %v1394_v30 = vadd.f32 %v1393_v36, %v1392_v40 }
 0x37d   :  { %v1395_v53 = vrot.slane %v1394_v30, 1 }
 0x37f   :  { %v1396_v32 = vadd.f32 %v1395_v53, %v1394_v30 }
 0x380   :  { %v1330_v51 = vpop.f32.mrf.mxu2 }
 0x381   :  { %v1423_v63 = vsel %vm988_vm6, %v1396_v32, %v1422_v34  ;;  %v1352_v37 = vmul.f32 %v1330_v51, %v631_v46 }
 0x383   :  { %v1397_v24 = vadd.f32 %v1352_v37, %v1351_v11 }
 0x385   :  { %v1398_v6 = vrot.slane %v1397_v24, 4 }
 0x387   :  { %v1399_v1 = vadd.f32 %v1398_v6, %v1397_v24 }
 0x388   :  { %v1333_v2 = vpop.f32.mrf.mxu2 }
 0x389   :  { %v1400_v8 = vrot.slane %v1399_v1, 2  ;;  %v1353_v20 = vmul.f32 %v1333_v2, %v634_v39 }
 0x38b   :  { %v1401_v12 = vadd.f32 %v1400_v8, %v1399_v1 }
 0x38d   :  { %v1402_v59 = vrot.slane %v1401_v12, 1 }
 0x38f   :  { %v1403_v48 = vadd.f32 %v1402_v59, %v1401_v12 }
 0x390   :  { %v1335_v13 = vpop.f32.mrf.mxu2 }
 0x391   :  { %v1354_v22 = vmul.f32 %v1335_v13, %v636_v49  ;;  %v1424_v15 = vsel %vm991_vm7, %v1403_v48, %v1423_v63 }
 0x393   :  { %v1404_v19 = vadd.f32 %v1354_v22, %v1353_v20 }
 0x395   :  { %v1405_v21 = vrot.slane %v1404_v19, 4 }
 0x397   :  { %v1406_v23 = vadd.f32 %v1405_v21, %v1404_v19 }
 0x399   :  { %v1407_v26 = vrot.slane %v1406_v23, 2 }
 0x39b   :  { %v1408_v58 = vadd.f32 %v1407_v26, %v1406_v23 }
 0x39d   :  { %v1409_v29 = vrot.slane %v1408_v58, 1 }
 0x39f   :  { %v1410_v41 = vadd.f32 %v1409_v29, %v1408_v58 }
 0x3a1   :  { %v1425_v33 = vsel %vm994_vm8, %v1410_v41, %v1424_v15 }
 0x3a2   :  { %v1427_v45 = vadd.f32 %v1425_v33, %v2507_v3 }
 0x3a4   :  { %v1428_v38 = vpack.c.bf16 %v1427_v45, %v1427_v45 }
 0x3a6   :  { %1505 = vmatmul.bf16.vlgmr.msra.gmra.mxu0 %v1428_v38 }
 0x423   :  { %v1506_v14 = vpop.f32.mrf.mxu0 }
 0x424   :  { %v1507_v0 = vadd.f32 %v1798_v52, %v1506_v14 }
 0x426   :  { %1510 = vst [vmem:[#allocation14] sm:$0xff] %v1507_v0 }
 0x427   :  { %1521 = dma.vmem_to_hbm [thread:$0]  %s1517_s10, 128, %s1519_s29, [#allocation4]  }
 0x42b   :  { %v1508_v27 = vpop.f32.mrf.mxu0 }
 0x42c   :  { %2035 = dma.done.wait [#allocation4], 128  }
 0x42d   :  { %2036 = vsyncadd [#allocation4], 4294967168 }
 0x42e   :  { %1526 = vsyncpa [#allocation3], 1 }
 0x42f   :  { %1527 = vsyncpa [#allocation6], 1 }
 0x430   :  { %1528 = vsyncpa [#allocation9], 1 }
 0x431   :  { %1529 = vsyncpa [#allocation12], 1 }
 0x432   :  { %1530 = vsyncpa [#allocation4], 1 }

</bundles_post_ra>
